<compile_context>
chip_gen: v6e
topology: v6e:2x2x1
jax: 0.10.0
libtpu: 0.0.40
codegen_flags: <defaults>
</compile_context>

<pallas_src>
import jax
import jax.numpy as jnp
from jax import lax
from jax.experimental import pallas as pl
from jax.experimental.pallas import tpu as pltpu

V = 32      # vocab size (input_size) -- small demo vocab
H = 256     # hidden size, matches the PyTorch module (hidden_size = 256)
CHUNK = 8   # time-steps per unrolled chunk / per full-tile output store


# ---------------------------------------------------------------------------
# Kernel (one invocation, grid=(1,)):
#   tok_ref  : (Tp, 1)  int32  padded token ids
#   emb_ref  : (V, H)   bf16   embedding table
#   w_ih_ref : (H, 3H)  bf16   input->gates weights (gate order [r, z, n])
#   w_hh_ref : (H, 3H)  bf16   hidden->gates weights
#   b_gi_ref : (1, 3H)  f32    b_ih with (b_hr, b_hz) folded into the r/z thirds
#   b_hn_ref : (1, H)   f32    recurrent bias for the "new" gate only
#   h0_ref   : (1, H)   f32    initial hidden state
#   out_ref  : (Tp, H)  f32    out[t] = h_{t+1}
#   gi_scr   : (Tp, 3H) f32    VMEM scratch holding the hoisted input projection
# ---------------------------------------------------------------------------
def _encoder_gru_kernel(tok_ref, emb_ref, w_ih_ref, w_hh_ref, b_gi_ref,
                        b_hn_ref, h0_ref, out_ref, gi_scr):
    Tp, Hd = out_ref.shape
    Vn = emb_ref.shape[0]

    # ---- Prologue: fused embedding gather + input projection (MXU) ----------
    toks = tok_ref[...]                                             # (Tp, 1) i32
    iota = lax.broadcasted_iota(jnp.int32, (Tp, Vn), 1)             # (Tp, V)
    one_hot = jnp.where(toks == iota, 1.0, 0.0).astype(emb_ref.dtype)
    # Exact row-select of the bf16 embedding rows (accumulated in f32).
    x = jnp.dot(one_hot, emb_ref[...], preferred_element_type=jnp.float32)
    gi = jnp.dot(x.astype(w_ih_ref.dtype), w_ih_ref[...],
                 preferred_element_type=jnp.float32) + b_gi_ref[...]
    gi_scr[...] = gi                                                # keep in VMEM

    w_hh = w_hh_ref[...]                                            # (H, 3H) bf16
    b_hn = b_hn_ref[...]                                            # (1, H)  f32
    h0 = h0_ref[...].astype(jnp.float32)                            # (1, H)  f32

    n_chunks = Tp // CHUNK

    # ---- Recurrence: fori over chunks, 8 fully-unrolled steps per chunk -----
    def chunk_body(c, h):
        base = pl.multiple_of(c * CHUNK, CHUNK)
        gi_chunk = gi_scr[pl.ds(base, CHUNK), :]                    # (8, 3H) f32
        rows = []
        for j in range(CHUNK):                                      # unrolled
            g = gi_chunk[j:j + 1, :]                                # (1, 3H)
            gh = jnp.dot(h.astype(w_hh.dtype), w_hh,
                         preferred_element_type=jnp.float32)        # (1, 3H)
            # PyTorch GRU gate order [reset, update, new]; math in f32.
            r = jax.nn.sigmoid(g[:, 0 * Hd:1 * Hd] + gh[:, 0 * Hd:1 * Hd])
            z = jax.nn.sigmoid(g[:, 1 * Hd:2 * Hd] + gh[:, 1 * Hd:2 * Hd])
            n = jnp.tanh(g[:, 2 * Hd:3 * Hd] + r * (gh[:, 2 * Hd:3 * Hd] + b_hn))
            h = (1.0 - z) * n + z * h
            rows.append(h)
        # Sublane-dense flush: one full (8, H) unmasked store per chunk.
        out_ref[pl.ds(base, CHUNK), :] = jnp.concatenate(rows, axis=0).astype(out_ref.dtype)
        return h

    lax.fori_loop(0, n_chunks, chunk_body, h0)


# ---------------------------------------------------------------------------
# Whole-sequence wrapper: equivalent to calling EncoderRNN.forward once per
# token while threading the hidden state.
# ---------------------------------------------------------------------------
def encoder_rnn_encode(tokens, hidden0, params):
    """tokens: (T,) int32; hidden0: (1,1,H). Returns (outputs (T,1,H), hidden (1,1,H))."""
    emb = params["embedding"]                         # (V, H)  bf16
    w_ih = params["w_ih"]                             # (H, 3H) bf16
    w_hh = params["w_hh"]                             # (H, 3H) bf16
    b_ih = params["b_ih"].astype(jnp.float32)         # (3H,)   f32
    b_hh = params["b_hh"].astype(jnp.float32)         # (3H,)   f32

    Vn, Hd = emb.shape
    tokens = jnp.clip(jnp.asarray(tokens, jnp.int32).reshape(-1), 0, Vn - 1)
    T = int(tokens.shape[0])
    Tp = ((T + CHUNK - 1) // CHUNK) * CHUNK           # pad to a multiple of CHUNK
    toks_p = jnp.zeros((Tp, 1), jnp.int32).at[:T, 0].set(tokens)

    # Fold b_hr, b_hz into the input-side bias; only b_hn stays in the kernel.
    b_gi = jnp.concatenate([b_ih[:2 * Hd] + b_hh[:2 * Hd], b_ih[2 * Hd:]])
    b_gi = b_gi.reshape(1, 3 * Hd)
    b_hn = b_hh[2 * Hd:].reshape(1, Hd)

    h0 = hidden0.reshape(1, Hd).astype(jnp.float32)

    cost = pl.CostEstimate(
        flops=2 * Tp * (Vn * Hd + 2 * Hd * 3 * Hd),
        transcendentals=3 * Tp * Hd,
        bytes_accessed=(Vn * Hd + 2 * Hd * 3 * Hd) * 2 + Tp * Hd * 4 + Tp * 4 + Hd * 4,
    )

    out = pl.pallas_call(
        _encoder_gru_kernel,
        out_shape=jax.ShapeDtypeStruct((Tp, Hd), jnp.float32),
        grid=(1,),
        in_specs=[
            pl.BlockSpec((Tp, 1), lambda i: (0, 0)),          # tokens
            pl.BlockSpec((Vn, Hd), lambda i: (0, 0)),         # embedding
            pl.BlockSpec((Hd, 3 * Hd), lambda i: (0, 0)),     # W_ih
            pl.BlockSpec((Hd, 3 * Hd), lambda i: (0, 0)),     # W_hh
            pl.BlockSpec((1, 3 * Hd), lambda i: (0, 0)),      # folded input bias
            pl.BlockSpec((1, Hd), lambda i: (0, 0)),          # b_hn
            pl.BlockSpec((1, Hd), lambda i: (0, 0)),          # h0
        ],
        out_specs=pl.BlockSpec((Tp, Hd), lambda i: (0, 0)),   # lane-dense (Tp,H) slab
        scratch_shapes=[pltpu.VMEM((Tp, 3 * Hd), jnp.float32)],
        compiler_params=pltpu.CompilerParams(
            dimension_semantics=("arbitrary",)),              # recurrence is serial
        cost_estimate=cost,
    )(toks_p, emb, w_ih, w_hh, b_gi, b_hn, h0)

    outputs = out[:T].reshape(T, 1, Hd)                       # GRU output per step
    hidden_T = out[T - 1:T].reshape(1, 1, Hd)                 # final hidden state
    return outputs, hidden_T


def encoder_rnn_forward(token, hidden, params):
    """Single-step API mirroring EncoderRNN.forward(input, hidden)."""
    outputs, hidden_new = encoder_rnn_encode(
        jnp.asarray(token, jnp.int32).reshape(1), hidden, params)
    return outputs.reshape(1, 1, -1), hidden_new


# ---------------------------------------------------------------------------
# Parameter init (shapes match nn.Embedding(V, H) + nn.GRU(H, H)); GRU weights
# stored pre-transposed as (H, 3H) in bf16, biases in f32.
# ---------------------------------------------------------------------------
def init_params(key):
    k_emb, k_wih, k_whh, k_bih, k_bhh = jax.random.split(key, 5)
    bound = 1.0 / jnp.sqrt(jnp.float32(H))
    w_ih_pt = jax.random.uniform(k_wih, (3 * H, H), jnp.float32, -bound, bound)
    w_hh_pt = jax.random.uniform(k_whh, (3 * H, H), jnp.float32, -bound, bound)
    return {
        "embedding": jax.random.normal(k_emb, (V, H), jnp.float32).astype(jnp.bfloat16),
        "w_ih": w_ih_pt.T.astype(jnp.bfloat16),               # (H, 3H)
        "w_hh": w_hh_pt.T.astype(jnp.bfloat16),               # (H, 3H)
        "b_ih": jax.random.uniform(k_bih, (3 * H,), jnp.float32, -bound, bound),
        "b_hh": jax.random.uniform(k_bhh, (3 * H,), jnp.float32, -bound, bound),
    }


# ---------------------------------------------------------------------------
# Pure-JAX reference (same dtypes / same contraction precision) for checking.
# ---------------------------------------------------------------------------
def _reference_encode(tokens, hidden0, params):
    emb = params["embedding"]
    Vn, Hd = emb.shape
    tokens = jnp.clip(jnp.asarray(tokens, jnp.int32).reshape(-1), 0, Vn - 1)
    x = jnp.take(emb, tokens, axis=0)                                     # bf16
    gi = jnp.dot(x, params["w_ih"], preferred_element_type=jnp.float32) \
        + params["b_ih"][None, :]
    h = hidden0.reshape(1, Hd).astype(jnp.float32)
    outs = []
    for t in range(tokens.shape[0]):
        gh = jnp.dot(h.astype(params["w_hh"].dtype), params["w_hh"],
                     preferred_element_type=jnp.float32) + params["b_hh"][None, :]
        g = gi[t:t + 1]
        r = jax.nn.sigmoid(g[:, :Hd] + gh[:, :Hd])
        z = jax.nn.sigmoid(g[:, Hd:2 * Hd] + gh[:, Hd:2 * Hd])
        n = jnp.tanh(g[:, 2 * Hd:] + r * gh[:, 2 * Hd:])
        h = (1.0 - z) * n + z * h
        outs.append(h)
    out = jnp.concatenate(outs, axis=0)
    return out.reshape(-1, 1, Hd), out[-1:].reshape(1, 1, Hd)


if __name__ == "__main__":
    key = jax.random.PRNGKey(0)
    k_params, k_tok = jax.random.split(key)
    params = init_params(k_params)

    T = 8
    tokens = jax.random.randint(k_tok, (T,), 0, V, dtype=jnp.int32)
    hidden0 = jnp.zeros((1, 1, H), jnp.float32)            # EncoderRNN.initHidden()

    # Fused whole-sequence encode (single pallas_call for all T steps).
    outputs, hidden_T = encoder_rnn_encode(tokens, hidden0, params)
    outputs = jax.block_until_ready(outputs)
    hidden_T = jax.block_until_ready(hidden_T)

    # Single-step API (original forward signature) still works.
    out1, hid1 = encoder_rnn_forward(tokens[0], hidden0, params)
    out1 = jax.block_until_ready(out1)

    ref_out, ref_hid = _reference_encode(tokens, hidden0, params)

    assert outputs.shape == (T, 1, H) and hidden_T.shape == (1, 1, H)
    assert out1.shape == (1, 1, H) and hid1.shape == (1, 1, H)
    assert jnp.allclose(outputs, ref_out, atol=2e-3, rtol=2e-3)
    assert jnp.allclose(hidden_T, ref_hid, atol=2e-3, rtol=2e-3)
    assert jnp.allclose(out1.reshape(1, H), ref_out[0].reshape(1, H), atol=2e-3, rtol=2e-3)

    print("KERNEL_OK")
</pallas_src>

<mosaic_0001>
module attributes {stable_mosaic.version = 11 : i64} {
  func.func @_encoder_gru_kernel(%arg0: i32, %arg1: memref<8x1xi32, #tpu.memory_space<vmem>>, %arg2: memref<32x256xbf16, #tpu.memory_space<vmem>>, %arg3: memref<256x768xbf16, #tpu.memory_space<vmem>>, %arg4: memref<256x768xbf16, #tpu.memory_space<vmem>>, %arg5: memref<1x768xf32, #tpu.memory_space<vmem>>, %arg6: memref<1x256xf32, #tpu.memory_space<vmem>>, %arg7: memref<1x256xf32, #tpu.memory_space<vmem>>, %arg8: memref<8x256xf32, #tpu.memory_space<vmem>>, %arg9: memref<8x768xf32, #tpu.memory_space<vmem>>) attributes {dimension_semantics = [#tpu.dimension_semantics<arbitrary>], iteration_bounds = array<i64: 1>, scalar_prefetch = 0 : i64, scratch_operands = 1 : i64, tpu.core_type = #tpu.core_type<tc>, window_params = [{pipeline_mode = #tpu.pipeline_mode<synchronous>, transform_indices = @transform_0, window_bounds = array<i64: 8, 1>}, {pipeline_mode = #tpu.pipeline_mode<synchronous>, transform_indices = @transform_1, window_bounds = array<i64: 32, 256>}, {pipeline_mode = #tpu.pipeline_mode<synchronous>, transform_indices = @transform_2, window_bounds = array<i64: 256, 768>}, {pipeline_mode = #tpu.pipeline_mode<synchronous>, transform_indices = @transform_3, window_bounds = array<i64: 256, 768>}, {pipeline_mode = #tpu.pipeline_mode<synchronous>, transform_indices = @transform_4, window_bounds = array<i64: 1, 768>}, {pipeline_mode = #tpu.pipeline_mode<synchronous>, transform_indices = @transform_5, window_bounds = array<i64: 1, 256>}, {pipeline_mode = #tpu.pipeline_mode<synchronous>, transform_indices = @transform_6, window_bounds = array<i64: 1, 256>}, {pipeline_mode = #tpu.pipeline_mode<synchronous>, transform_indices = @transform_7, window_bounds = array<i64: 8, 256>}]} {
    %c0 = arith.constant 0 : index
    %c0_0 = arith.constant 0 : index
    %0 = vector.load %arg1[%c0, %c0_0] : memref<8x1xi32, #tpu.memory_space<vmem>>, vector<8x1xi32>
    %1 = tpu.iota {dimensions = array<i32: 1>} : vector<8x32xi32>
    %2 = vector.broadcast %0 : vector<8x1xi32> to vector<8x32xi32>
    %3 = arith.cmpi eq, %2, %1 : vector<8x32xi32>
    %cst = arith.constant 1.000000e+00 : f32
    %cst_1 = arith.constant 0.000000e+00 : f32
    %4 = vector.broadcast %cst : f32 to vector<8x32xf32>
    %5 = vector.broadcast %cst_1 : f32 to vector<8x32xf32>
    %6 = arith.select %3, %4, %5 : vector<8x32xi1>, vector<8x32xf32>
    %7 = arith.truncf %6 : vector<8x32xf32> to vector<8x32xbf16>
    %c0_2 = arith.constant 0 : index
    %c0_3 = arith.constant 0 : index
    %8 = vector.load %arg2[%c0_2, %c0_3] : memref<32x256xbf16, #tpu.memory_space<vmem>>, vector<32x256xbf16>
    %cst_4 = arith.constant dense<0.000000e+00> : vector<8x256xf32>
    %9 = tpu.matmul %7, %8, %cst_4 {dimension_numbers = #tpu.dot_dimension_numbers<[1], [0], [0], [1], [0, 0, 1, 1], [], []>} : vector<8x32xbf16>, vector<32x256xbf16>, vector<8x256xf32> -> vector<8x256xf32>
    %10 = arith.truncf %9 : vector<8x256xf32> to vector<8x256xbf16>
    %c0_5 = arith.constant 0 : index
    %c0_6 = arith.constant 0 : index
    %11 = vector.load %arg3[%c0_5, %c0_6] : memref<256x768xbf16, #tpu.memory_space<vmem>>, vector<256x768xbf16>
    %cst_7 = arith.constant dense<0.000000e+00> : vector<8x768xf32>
    %12 = tpu.matmul %10, %11, %cst_7 {dimension_numbers = #tpu.dot_dimension_numbers<[1], [0], [0], [1], [0, 0, 1, 1], [], []>} : vector<8x256xbf16>, vector<256x768xbf16>, vector<8x768xf32> -> vector<8x768xf32>
    %c0_8 = arith.constant 0 : index
    %c0_9 = arith.constant 0 : index
    %13 = vector.load %arg5[%c0_8, %c0_9] : memref<1x768xf32, #tpu.memory_space<vmem>>, vector<1x768xf32>
    %14 = vector.broadcast %13 : vector<1x768xf32> to vector<8x768xf32>
    %15 = arith.addf %12, %14 : vector<8x768xf32>
    %c0_10 = arith.constant 0 : index
    %c0_11 = arith.constant 0 : index
    %16 = vector.load %arg9[%c0_10, %c0_11] : memref<8x768xf32, #tpu.memory_space<vmem>>, vector<8x768xf32>
    tpu.vector_store %arg9[%c0_10, %c0_11], %15 {strides = array<i32>} : memref<8x768xf32, #tpu.memory_space<vmem>>, vector<8x768xf32>,
    %c0_12 = arith.constant 0 : index
    %c0_13 = arith.constant 0 : index
    %17 = vector.load %arg4[%c0_12, %c0_13] : memref<256x768xbf16, #tpu.memory_space<vmem>>, vector<256x768xbf16>
    %c0_14 = arith.constant 0 : index
    %c0_15 = arith.constant 0 : index
    %18 = vector.load %arg6[%c0_14, %c0_15] : memref<1x256xf32, #tpu.memory_space<vmem>>, vector<1x256xf32>
    %c0_16 = arith.constant 0 : index
    %c0_17 = arith.constant 0 : index
    %19 = vector.load %arg7[%c0_16, %c0_17] : memref<1x256xf32, #tpu.memory_space<vmem>>, vector<1x256xf32>
    %c0_i32 = arith.constant 0 : i32
    %c8_i32 = arith.constant 8 : i32
    %20 = arith.muli %c0_i32, %c8_i32 : i32
    %21 = tpu.assume_multiple %20, 8 : i32
    %22 = arith.index_cast %21 : i32 to index
    %c0_18 = arith.constant 0 : index
    %23 = vector.load %arg9[%22, %c0_18] : memref<8x768xf32, #tpu.memory_space<vmem>>, vector<8x768xf32>
    %24 = vector.extract_strided_slice %23 {offsets = [0, 0], sizes = [1, 768], strides = [1, 1]} : vector<8x768xf32> to vector<1x768xf32>
    %25 = arith.truncf %19 : vector<1x256xf32> to vector<1x256xbf16>
    %cst_19 = arith.constant dense<0.000000e+00> : vector<1x768xf32>
    %26 = tpu.matmul %25, %17, %cst_19 {dimension_numbers = #tpu.dot_dimension_numbers<[1], [0], [0], [1], [0, 0, 1, 1], [], []>} : vector<1x256xbf16>, vector<256x768xbf16>, vector<1x768xf32> -> vector<1x768xf32>
    %27 = vector.extract_strided_slice %24 {offsets = [0, 0], sizes = [1, 256], strides = [1, 1]} : vector<1x768xf32> to vector<1x256xf32>
    %28 = vector.extract_strided_slice %26 {offsets = [0, 0], sizes = [1, 256], strides = [1, 1]} : vector<1x768xf32> to vector<1x256xf32>
    %29 = arith.addf %27, %28 : vector<1x256xf32>
    %30 = arith.negf %29 : vector<1x256xf32>
    %31 = math.exp %30 : vector<1x256xf32>
    %cst_20 = arith.constant 1.000000e+00 : f32
    %32 = vector.broadcast %cst_20 : f32 to vector<1x256xf32>
    %33 = arith.addf %32, %31 : vector<1x256xf32>
    %34 = arith.divf %32, %33 : vector<1x256xf32>
    %35 = vector.extract_strided_slice %24 {offsets = [0, 256], sizes = [1, 256], strides = [1, 1]} : vector<1x768xf32> to vector<1x256xf32>
    %36 = vector.extract_strided_slice %26 {offsets = [0, 256], sizes = [1, 256], strides = [1, 1]} : vector<1x768xf32> to vector<1x256xf32>
    %37 = arith.addf %35, %36 : vector<1x256xf32>
    %38 = arith.negf %37 : vector<1x256xf32>
    %39 = math.exp %38 : vector<1x256xf32>
    %cst_21 = arith.constant 1.000000e+00 : f32
    %40 = vector.broadcast %cst_21 : f32 to vector<1x256xf32>
    %41 = arith.addf %40, %39 : vector<1x256xf32>
    %42 = arith.divf %40, %41 : vector<1x256xf32>
    %43 = vector.extract_strided_slice %24 {offsets = [0, 512], sizes = [1, 256], strides = [1, 1]} : vector<1x768xf32> to vector<1x256xf32>
    %44 = vector.extract_strided_slice %26 {offsets = [0, 512], sizes = [1, 256], strides = [1, 1]} : vector<1x768xf32> to vector<1x256xf32>
    %45 = arith.addf %44, %18 : vector<1x256xf32>
    %46 = arith.mulf %34, %45 : vector<1x256xf32>
    %47 = arith.addf %43, %46 : vector<1x256xf32>
    %48 = math.tanh %47 : vector<1x256xf32>
    %cst_22 = arith.constant 1.000000e+00 : f32
    %49 = vector.broadcast %cst_22 : f32 to vector<1x256xf32>
    %50 = arith.subf %49, %42 : vector<1x256xf32>
    %51 = arith.mulf %50, %48 : vector<1x256xf32>
    %52 = arith.mulf %42, %19 : vector<1x256xf32>
    %53 = arith.addf %51, %52 : vector<1x256xf32>
    %54 = vector.extract_strided_slice %23 {offsets = [1, 0], sizes = [1, 768], strides = [1, 1]} : vector<8x768xf32> to vector<1x768xf32>
    %55 = arith.truncf %53 : vector<1x256xf32> to vector<1x256xbf16>
    %cst_23 = arith.constant dense<0.000000e+00> : vector<1x768xf32>
    %56 = tpu.matmul %55, %17, %cst_23 {dimension_numbers = #tpu.dot_dimension_numbers<[1], [0], [0], [1], [0, 0, 1, 1], [], []>} : vector<1x256xbf16>, vector<256x768xbf16>, vector<1x768xf32> -> vector<1x768xf32>
    %57 = vector.extract_strided_slice %54 {offsets = [0, 0], sizes = [1, 256], strides = [1, 1]} : vector<1x768xf32> to vector<1x256xf32>
    %58 = vector.extract_strided_slice %56 {offsets = [0, 0], sizes = [1, 256], strides = [1, 1]} : vector<1x768xf32> to vector<1x256xf32>
    %59 = arith.addf %57, %58 : vector<1x256xf32>
    %60 = arith.negf %59 : vector<1x256xf32>
    %61 = math.exp %60 : vector<1x256xf32>
    %cst_24 = arith.constant 1.000000e+00 : f32
    %62 = vector.broadcast %cst_24 : f32 to vector<1x256xf32>
    %63 = arith.addf %62, %61 : vector<1x256xf32>
    %64 = arith.divf %62, %63 : vector<1x256xf32>
    %65 = vector.extract_strided_slice %54 {offsets = [0, 256], sizes = [1, 256], strides = [1, 1]} : vector<1x768xf32> to vector<1x256xf32>
    %66 = vector.extract_strided_slice %56 {offsets = [0, 256], sizes = [1, 256], strides = [1, 1]} : vector<1x768xf32> to vector<1x256xf32>
    %67 = arith.addf %65, %66 : vector<1x256xf32>
    %68 = arith.negf %67 : vector<1x256xf32>
    %69 = math.exp %68 : vector<1x256xf32>
    %cst_25 = arith.constant 1.000000e+00 : f32
    %70 = vector.broadcast %cst_25 : f32 to vector<1x256xf32>
    %71 = arith.addf %70, %69 : vector<1x256xf32>
    %72 = arith.divf %70, %71 : vector<1x256xf32>
    %73 = vector.extract_strided_slice %54 {offsets = [0, 512], sizes = [1, 256], strides = [1, 1]} : vector<1x768xf32> to vector<1x256xf32>
    %74 = vector.extract_strided_slice %56 {offsets = [0, 512], sizes = [1, 256], strides = [1, 1]} : vector<1x768xf32> to vector<1x256xf32>
    %75 = arith.addf %74, %18 : vector<1x256xf32>
    %76 = arith.mulf %64, %75 : vector<1x256xf32>
    %77 = arith.addf %73, %76 : vector<1x256xf32>
    %78 = math.tanh %77 : vector<1x256xf32>
    %cst_26 = arith.constant 1.000000e+00 : f32
    %79 = vector.broadcast %cst_26 : f32 to vector<1x256xf32>
    %80 = arith.subf %79, %72 : vector<1x256xf32>
    %81 = arith.mulf %80, %78 : vector<1x256xf32>
    %82 = arith.mulf %72, %53 : vector<1x256xf32>
    %83 = arith.addf %81, %82 : vector<1x256xf32>
    %84 = vector.extract_strided_slice %23 {offsets = [2, 0], sizes = [1, 768], strides = [1, 1]} : vector<8x768xf32> to vector<1x768xf32>
    %85 = arith.truncf %83 : vector<1x256xf32> to vector<1x256xbf16>
    %cst_27 = arith.constant dense<0.000000e+00> : vector<1x768xf32>
    %86 = tpu.matmul %85, %17, %cst_27 {dimension_numbers = #tpu.dot_dimension_numbers<[1], [0], [0], [1], [0, 0, 1, 1], [], []>} : vector<1x256xbf16>, vector<256x768xbf16>, vector<1x768xf32> -> vector<1x768xf32>
    %87 = vector.extract_strided_slice %84 {offsets = [0, 0], sizes = [1, 256], strides = [1, 1]} : vector<1x768xf32> to vector<1x256xf32>
    %88 = vector.extract_strided_slice %86 {offsets = [0, 0], sizes = [1, 256], strides = [1, 1]} : vector<1x768xf32> to vector<1x256xf32>
    %89 = arith.addf %87, %88 : vector<1x256xf32>
    %90 = arith.negf %89 : vector<1x256xf32>
    %91 = math.exp %90 : vector<1x256xf32>
    %cst_28 = arith.constant 1.000000e+00 : f32
    %92 = vector.broadcast %cst_28 : f32 to vector<1x256xf32>
    %93 = arith.addf %92, %91 : vector<1x256xf32>
    %94 = arith.divf %92, %93 : vector<1x256xf32>
    %95 = vector.extract_strided_slice %84 {offsets = [0, 256], sizes = [1, 256], strides = [1, 1]} : vector<1x768xf32> to vector<1x256xf32>
    %96 = vector.extract_strided_slice %86 {offsets = [0, 256], sizes = [1, 256], strides = [1, 1]} : vector<1x768xf32> to vector<1x256xf32>
    %97 = arith.addf %95, %96 : vector<1x256xf32>
    %98 = arith.negf %97 : vector<1x256xf32>
    %99 = math.exp %98 : vector<1x256xf32>
    %cst_29 = arith.constant 1.000000e+00 : f32
    %100 = vector.broadcast %cst_29 : f32 to vector<1x256xf32>
    %101 = arith.addf %100, %99 : vector<1x256xf32>
    %102 = arith.divf %100, %101 : vector<1x256xf32>
    %103 = vector.extract_strided_slice %84 {offsets = [0, 512], sizes = [1, 256], strides = [1, 1]} : vector<1x768xf32> to vector<1x256xf32>
    %104 = vector.extract_strided_slice %86 {offsets = [0, 512], sizes = [1, 256], strides = [1, 1]} : vector<1x768xf32> to vector<1x256xf32>
    %105 = arith.addf %104, %18 : vector<1x256xf32>
    %106 = arith.mulf %94, %105 : vector<1x256xf32>
    %107 = arith.addf %103, %106 : vector<1x256xf32>
    %108 = math.tanh %107 : vector<1x256xf32>
    %cst_30 = arith.constant 1.000000e+00 : f32
    %109 = vector.broadcast %cst_30 : f32 to vector<1x256xf32>
    %110 = arith.subf %109, %102 : vector<1x256xf32>
    %111 = arith.mulf %110, %108 : vector<1x256xf32>
    %112 = arith.mulf %102, %83 : vector<1x256xf32>
    %113 = arith.addf %111, %112 : vector<1x256xf32>
    %114 = vector.extract_strided_slice %23 {offsets = [3, 0], sizes = [1, 768], strides = [1, 1]} : vector<8x768xf32> to vector<1x768xf32>
    %115 = arith.truncf %113 : vector<1x256xf32> to vector<1x256xbf16>
    %cst_31 = arith.constant dense<0.000000e+00> : vector<1x768xf32>
    %116 = tpu.matmul %115, %17, %cst_31 {dimension_numbers = #tpu.dot_dimension_numbers<[1], [0], [0], [1], [0, 0, 1, 1], [], []>} : vector<1x256xbf16>, vector<256x768xbf16>, vector<1x768xf32> -> vector<1x768xf32>
    %117 = vector.extract_strided_slice %114 {offsets = [0, 0], sizes = [1, 256], strides = [1, 1]} : vector<1x768xf32> to vector<1x256xf32>
    %118 = vector.extract_strided_slice %116 {offsets = [0, 0], sizes = [1, 256], strides = [1, 1]} : vector<1x768xf32> to vector<1x256xf32>
    %119 = arith.addf %117, %118 : vector<1x256xf32>
    %120 = arith.negf %119 : vector<1x256xf32>
    %121 = math.exp %120 : vector<1x256xf32>
    %cst_32 = arith.constant 1.000000e+00 : f32
    %122 = vector.broadcast %cst_32 : f32 to vector<1x256xf32>
    %123 = arith.addf %122, %121 : vector<1x256xf32>
    %124 = arith.divf %122, %123 : vector<1x256xf32>
    %125 = vector.extract_strided_slice %114 {offsets = [0, 256], sizes = [1, 256], strides = [1, 1]} : vector<1x768xf32> to vector<1x256xf32>
    %126 = vector.extract_strided_slice %116 {offsets = [0, 256], sizes = [1, 256], strides = [1, 1]} : vector<1x768xf32> to vector<1x256xf32>
    %127 = arith.addf %125, %126 : vector<1x256xf32>
    %128 = arith.negf %127 : vector<1x256xf32>
    %129 = math.exp %128 : vector<1x256xf32>
    %cst_33 = arith.constant 1.000000e+00 : f32
    %130 = vector.broadcast %cst_33 : f32 to vector<1x256xf32>
    %131 = arith.addf %130, %129 : vector<1x256xf32>
    %132 = arith.divf %130, %131 : vector<1x256xf32>
    %133 = vector.extract_strided_slice %114 {offsets = [0, 512], sizes = [1, 256], strides = [1, 1]} : vector<1x768xf32> to vector<1x256xf32>
    %134 = vector.extract_strided_slice %116 {offsets = [0, 512], sizes = [1, 256], strides = [1, 1]} : vector<1x768xf32> to vector<1x256xf32>
    %135 = arith.addf %134, %18 : vector<1x256xf32>
    %136 = arith.mulf %124, %135 : vector<1x256xf32>
    %137 = arith.addf %133, %136 : vector<1x256xf32>
    %138 = math.tanh %137 : vector<1x256xf32>
    %cst_34 = arith.constant 1.000000e+00 : f32
    %139 = vector.broadcast %cst_34 : f32 to vector<1x256xf32>
    %140 = arith.subf %139, %132 : vector<1x256xf32>
    %141 = arith.mulf %140, %138 : vector<1x256xf32>
    %142 = arith.mulf %132, %113 : vector<1x256xf32>
    %143 = arith.addf %141, %142 : vector<1x256xf32>
    %144 = vector.extract_strided_slice %23 {offsets = [4, 0], sizes = [1, 768], strides = [1, 1]} : vector<8x768xf32> to vector<1x768xf32>
    %145 = arith.truncf %143 : vector<1x256xf32> to vector<1x256xbf16>
    %cst_35 = arith.constant dense<0.000000e+00> : vector<1x768xf32>
    %146 = tpu.matmul %145, %17, %cst_35 {dimension_numbers = #tpu.dot_dimension_numbers<[1], [0], [0], [1], [0, 0, 1, 1], [], []>} : vector<1x256xbf16>, vector<256x768xbf16>, vector<1x768xf32> -> vector<1x768xf32>
    %147 = vector.extract_strided_slice %144 {offsets = [0, 0], sizes = [1, 256], strides = [1, 1]} : vector<1x768xf32> to vector<1x256xf32>
    %148 = vector.extract_strided_slice %146 {offsets = [0, 0], sizes = [1, 256], strides = [1, 1]} : vector<1x768xf32> to vector<1x256xf32>
    %149 = arith.addf %147, %148 : vector<1x256xf32>
    %150 = arith.negf %149 : vector<1x256xf32>
    %151 = math.exp %150 : vector<1x256xf32>
    %cst_36 = arith.constant 1.000000e+00 : f32
    %152 = vector.broadcast %cst_36 : f32 to vector<1x256xf32>
    %153 = arith.addf %152, %151 : vector<1x256xf32>
    %154 = arith.divf %152, %153 : vector<1x256xf32>
    %155 = vector.extract_strided_slice %144 {offsets = [0, 256], sizes = [1, 256], strides = [1, 1]} : vector<1x768xf32> to vector<1x256xf32>
    %156 = vector.extract_strided_slice %146 {offsets = [0, 256], sizes = [1, 256], strides = [1, 1]} : vector<1x768xf32> to vector<1x256xf32>
    %157 = arith.addf %155, %156 : vector<1x256xf32>
    %158 = arith.negf %157 : vector<1x256xf32>
    %159 = math.exp %158 : vector<1x256xf32>
    %cst_37 = arith.constant 1.000000e+00 : f32
    %160 = vector.broadcast %cst_37 : f32 to vector<1x256xf32>
    %161 = arith.addf %160, %159 : vector<1x256xf32>
    %162 = arith.divf %160, %161 : vector<1x256xf32>
    %163 = vector.extract_strided_slice %144 {offsets = [0, 512], sizes = [1, 256], strides = [1, 1]} : vector<1x768xf32> to vector<1x256xf32>
    %164 = vector.extract_strided_slice %146 {offsets = [0, 512], sizes = [1, 256], strides = [1, 1]} : vector<1x768xf32> to vector<1x256xf32>
    %165 = arith.addf %164, %18 : vector<1x256xf32>
    %166 = arith.mulf %154, %165 : vector<1x256xf32>
    %167 = arith.addf %163, %166 : vector<1x256xf32>
    %168 = math.tanh %167 : vector<1x256xf32>
    %cst_38 = arith.constant 1.000000e+00 : f32
    %169 = vector.broadcast %cst_38 : f32 to vector<1x256xf32>
    %170 = arith.subf %169, %162 : vector<1x256xf32>
    %171 = arith.mulf %170, %168 : vector<1x256xf32>
    %172 = arith.mulf %162, %143 : vector<1x256xf32>
    %173 = arith.addf %171, %172 : vector<1x256xf32>
    %174 = vector.extract_strided_slice %23 {offsets = [5, 0], sizes = [1, 768], strides = [1, 1]} : vector<8x768xf32> to vector<1x768xf32>
    %175 = arith.truncf %173 : vector<1x256xf32> to vector<1x256xbf16>
    %cst_39 = arith.constant dense<0.000000e+00> : vector<1x768xf32>
    %176 = tpu.matmul %175, %17, %cst_39 {dimension_numbers = #tpu.dot_dimension_numbers<[1], [0], [0], [1], [0, 0, 1, 1], [], []>} : vector<1x256xbf16>, vector<256x768xbf16>, vector<1x768xf32> -> vector<1x768xf32>
    %177 = vector.extract_strided_slice %174 {offsets = [0, 0], sizes = [1, 256], strides = [1, 1]} : vector<1x768xf32> to vector<1x256xf32>
    %178 = vector.extract_strided_slice %176 {offsets = [0, 0], sizes = [1, 256], strides = [1, 1]} : vector<1x768xf32> to vector<1x256xf32>
    %179 = arith.addf %177, %178 : vector<1x256xf32>
    %180 = arith.negf %179 : vector<1x256xf32>
    %181 = math.exp %180 : vector<1x256xf32>
    %cst_40 = arith.constant 1.000000e+00 : f32
    %182 = vector.broadcast %cst_40 : f32 to vector<1x256xf32>
    %183 = arith.addf %182, %181 : vector<1x256xf32>
    %184 = arith.divf %182, %183 : vector<1x256xf32>
    %185 = vector.extract_strided_slice %174 {offsets = [0, 256], sizes = [1, 256], strides = [1, 1]} : vector<1x768xf32> to vector<1x256xf32>
    %186 = vector.extract_strided_slice %176 {offsets = [0, 256], sizes = [1, 256], strides = [1, 1]} : vector<1x768xf32> to vector<1x256xf32>
    %187 = arith.addf %185, %186 : vector<1x256xf32>
    %188 = arith.negf %187 : vector<1x256xf32>
    %189 = math.exp %188 : vector<1x256xf32>
    %cst_41 = arith.constant 1.000000e+00 : f32
    %190 = vector.broadcast %cst_41 : f32 to vector<1x256xf32>
    %191 = arith.addf %190, %189 : vector<1x256xf32>
    %192 = arith.divf %190, %191 : vector<1x256xf32>
    %193 = vector.extract_strided_slice %174 {offsets = [0, 512], sizes = [1, 256], strides = [1, 1]} : vector<1x768xf32> to vector<1x256xf32>
    %194 = vector.extract_strided_slice %176 {offsets = [0, 512], sizes = [1, 256], strides = [1, 1]} : vector<1x768xf32> to vector<1x256xf32>
    %195 = arith.addf %194, %18 : vector<1x256xf32>
    %196 = arith.mulf %184, %195 : vector<1x256xf32>
    %197 = arith.addf %193, %196 : vector<1x256xf32>
    %198 = math.tanh %197 : vector<1x256xf32>
    %cst_42 = arith.constant 1.000000e+00 : f32
    %199 = vector.broadcast %cst_42 : f32 to vector<1x256xf32>
    %200 = arith.subf %199, %192 : vector<1x256xf32>
    %201 = arith.mulf %200, %198 : vector<1x256xf32>
    %202 = arith.mulf %192, %173 : vector<1x256xf32>
    %203 = arith.addf %201, %202 : vector<1x256xf32>
    %204 = vector.extract_strided_slice %23 {offsets = [6, 0], sizes = [1, 768], strides = [1, 1]} : vector<8x768xf32> to vector<1x768xf32>
    %205 = arith.truncf %203 : vector<1x256xf32> to vector<1x256xbf16>
    %cst_43 = arith.constant dense<0.000000e+00> : vector<1x768xf32>
    %206 = tpu.matmul %205, %17, %cst_43 {dimension_numbers = #tpu.dot_dimension_numbers<[1], [0], [0], [1], [0, 0, 1, 1], [], []>} : vector<1x256xbf16>, vector<256x768xbf16>, vector<1x768xf32> -> vector<1x768xf32>
    %207 = vector.extract_strided_slice %204 {offsets = [0, 0], sizes = [1, 256], strides = [1, 1]} : vector<1x768xf32> to vector<1x256xf32>
    %208 = vector.extract_strided_slice %206 {offsets = [0, 0], sizes = [1, 256], strides = [1, 1]} : vector<1x768xf32> to vector<1x256xf32>
    %209 = arith.addf %207, %208 : vector<1x256xf32>
    %210 = arith.negf %209 : vector<1x256xf32>
    %211 = math.exp %210 : vector<1x256xf32>
    %cst_44 = arith.constant 1.000000e+00 : f32
    %212 = vector.broadcast %cst_44 : f32 to vector<1x256xf32>
    %213 = arith.addf %212, %211 : vector<1x256xf32>
    %214 = arith.divf %212, %213 : vector<1x256xf32>
    %215 = vector.extract_strided_slice %204 {offsets = [0, 256], sizes = [1, 256], strides = [1, 1]} : vector<1x768xf32> to vector<1x256xf32>
    %216 = vector.extract_strided_slice %206 {offsets = [0, 256], sizes = [1, 256], strides = [1, 1]} : vector<1x768xf32> to vector<1x256xf32>
    %217 = arith.addf %215, %216 : vector<1x256xf32>
    %218 = arith.negf %217 : vector<1x256xf32>
    %219 = math.exp %218 : vector<1x256xf32>
    %cst_45 = arith.constant 1.000000e+00 : f32
    %220 = vector.broadcast %cst_45 : f32 to vector<1x256xf32>
    %221 = arith.addf %220, %219 : vector<1x256xf32>
    %222 = arith.divf %220, %221 : vector<1x256xf32>
    %223 = vector.extract_strided_slice %204 {offsets = [0, 512], sizes = [1, 256], strides = [1, 1]} : vector<1x768xf32> to vector<1x256xf32>
    %224 = vector.extract_strided_slice %206 {offsets = [0, 512], sizes = [1, 256], strides = [1, 1]} : vector<1x768xf32> to vector<1x256xf32>
    %225 = arith.addf %224, %18 : vector<1x256xf32>
    %226 = arith.mulf %214, %225 : vector<1x256xf32>
    %227 = arith.addf %223, %226 : vector<1x256xf32>
    %228 = math.tanh %227 : vector<1x256xf32>
    %cst_46 = arith.constant 1.000000e+00 : f32
    %229 = vector.broadcast %cst_46 : f32 to vector<1x256xf32>
    %230 = arith.subf %229, %222 : vector<1x256xf32>
    %231 = arith.mulf %230, %228 : vector<1x256xf32>
    %232 = arith.mulf %222, %203 : vector<1x256xf32>
    %233 = arith.addf %231, %232 : vector<1x256xf32>
    %234 = vector.extract_strided_slice %23 {offsets = [7, 0], sizes = [1, 768], strides = [1, 1]} : vector<8x768xf32> to vector<1x768xf32>
    %235 = arith.truncf %233 : vector<1x256xf32> to vector<1x256xbf16>
    %cst_47 = arith.constant dense<0.000000e+00> : vector<1x768xf32>
    %236 = tpu.matmul %235, %17, %cst_47 {dimension_numbers = #tpu.dot_dimension_numbers<[1], [0], [0], [1], [0, 0, 1, 1], [], []>} : vector<1x256xbf16>, vector<256x768xbf16>, vector<1x768xf32> -> vector<1x768xf32>
    %237 = vector.extract_strided_slice %234 {offsets = [0, 0], sizes = [1, 256], strides = [1, 1]} : vector<1x768xf32> to vector<1x256xf32>
    %238 = vector.extract_strided_slice %236 {offsets = [0, 0], sizes = [1, 256], strides = [1, 1]} : vector<1x768xf32> to vector<1x256xf32>
    %239 = arith.addf %237, %238 : vector<1x256xf32>
    %240 = arith.negf %239 : vector<1x256xf32>
    %241 = math.exp %240 : vector<1x256xf32>
    %cst_48 = arith.constant 1.000000e+00 : f32
    %242 = vector.broadcast %cst_48 : f32 to vector<1x256xf32>
    %243 = arith.addf %242, %241 : vector<1x256xf32>
    %244 = arith.divf %242, %243 : vector<1x256xf32>
    %245 = vector.extract_strided_slice %234 {offsets = [0, 256], sizes = [1, 256], strides = [1, 1]} : vector<1x768xf32> to vector<1x256xf32>
    %246 = vector.extract_strided_slice %236 {offsets = [0, 256], sizes = [1, 256], strides = [1, 1]} : vector<1x768xf32> to vector<1x256xf32>
    %247 = arith.addf %245, %246 : vector<1x256xf32>
    %248 = arith.negf %247 : vector<1x256xf32>
    %249 = math.exp %248 : vector<1x256xf32>
    %cst_49 = arith.constant 1.000000e+00 : f32
    %250 = vector.broadcast %cst_49 : f32 to vector<1x256xf32>
    %251 = arith.addf %250, %249 : vector<1x256xf32>
    %252 = arith.divf %250, %251 : vector<1x256xf32>
    %253 = vector.extract_strided_slice %234 {offsets = [0, 512], sizes = [1, 256], strides = [1, 1]} : vector<1x768xf32> to vector<1x256xf32>
    %254 = vector.extract_strided_slice %236 {offsets = [0, 512], sizes = [1, 256], strides = [1, 1]} : vector<1x768xf32> to vector<1x256xf32>
    %255 = arith.addf %254, %18 : vector<1x256xf32>
    %256 = arith.mulf %244, %255 : vector<1x256xf32>
    %257 = arith.addf %253, %256 : vector<1x256xf32>
    %258 = math.tanh %257 : vector<1x256xf32>
    %cst_50 = arith.constant 1.000000e+00 : f32
    %259 = vector.broadcast %cst_50 : f32 to vector<1x256xf32>
    %260 = arith.subf %259, %252 : vector<1x256xf32>
    %261 = arith.mulf %260, %258 : vector<1x256xf32>
    %262 = arith.mulf %252, %233 : vector<1x256xf32>
    %263 = arith.addf %261, %262 : vector<1x256xf32>
    %264 = tpu.concatenate %53, %83, %113, %143, %173, %203, %233, %263 in 0 : vector<1x256xf32>, vector<1x256xf32>, vector<1x256xf32>, vector<1x256xf32>, vector<1x256xf32>, vector<1x256xf32>, vector<1x256xf32>, vector<1x256xf32> -> vector<8x256xf32>
    %265 = arith.index_cast %21 : i32 to index
    %c0_51 = arith.constant 0 : index
    %266 = vector.load %arg8[%265, %c0_51] : memref<8x256xf32, #tpu.memory_space<vmem>>, vector<8x256xf32>
    tpu.vector_store %arg8[%265, %c0_51], %264 {strides = array<i32>} : memref<8x256xf32, #tpu.memory_space<vmem>>, vector<8x256xf32>,
    %c1_i32 = arith.constant 1 : i32
    return
  }
  func.func @transform_0(%arg0: i32) -> (i32, i32) {
    %c0_i32 = arith.constant 0 : i32
    %c0_i32_0 = arith.constant 0 : i32
    %c0_i32_1 = arith.constant 0 : i32
    return %c0_i32, %c0_i32_0 : i32, i32
  }
  func.func @transform_1(%arg0: i32) -> (i32, i32) {
    %c0_i32 = arith.constant 0 : i32
    %c0_i32_0 = arith.constant 0 : i32
    %c0_i32_1 = arith.constant 0 : i32
    return %c0_i32, %c0_i32_0 : i32, i32
  }
  func.func @transform_2(%arg0: i32) -> (i32, i32) {
    %c0_i32 = arith.constant 0 : i32
    %c0_i32_0 = arith.constant 0 : i32
    %c0_i32_1 = arith.constant 0 : i32
    return %c0_i32, %c0_i32_0 : i32, i32
  }
  func.func @transform_3(%arg0: i32) -> (i32, i32) {
    %c0_i32 = arith.constant 0 : i32
    %c0_i32_0 = arith.constant 0 : i32
    %c0_i32_1 = arith.constant 0 : i32
    return %c0_i32, %c0_i32_0 : i32, i32
  }
  func.func @transform_4(%arg0: i32) -> (i32, i32) {
    %c0_i32 = arith.constant 0 : i32
    %c0_i32_0 = arith.constant 0 : i32
    %c0_i32_1 = arith.constant 0 : i32
    return %c0_i32, %c0_i32_0 : i32, i32
  }
  func.func @transform_5(%arg0: i32) -> (i32, i32) {
    %c0_i32 = arith.constant 0 : i32
    %c0_i32_0 = arith.constant 0 : i32
    %c0_i32_1 = arith.constant 0 : i32
    return %c0_i32, %c0_i32_0 : i32, i32
  }
  func.func @transform_6(%arg0: i32) -> (i32, i32) {
    %c0_i32 = arith.constant 0 : i32
    %c0_i32_0 = arith.constant 0 : i32
    %c0_i32_1 = arith.constant 0 : i32
    return %c0_i32, %c0_i32_0 : i32, i32
  }
  func.func @transform_7(%arg0: i32) -> (i32, i32) {
    %c0_i32 = arith.constant 0 : i32
    %c0_i32_0 = arith.constant 0 : i32
    %c0_i32_1 = arith.constant 0 : i32
    return %c0_i32, %c0_i32_0 : i32, i32
  }
}

</mosaic_0001>

<bundles_post_ra>
// kernel: tpu_custom_call.1
= control target key start
LH: loop header
LB: loop body
LE: loop exit
PB: predicated region body
PF: predicated region fallthrough
CT: control target
= control target key end

     0   :  { %12 = vsyncpa [#allocation4], 0  ;;  %s5691_s0 = inlined_call_operand.vmem [shape: s32[8,1], index: 0, kind: input, shape index: {}]   ;;  %s5692_s1 = inlined_call_operand.hbm [shape: bf16[32,256], index: 1, kind: input, shape index: {}]   ;;  %s5693_s2 = inlined_call_operand.hbm [shape: bf16[256,768], index: 2, kind: input, shape index: {}]   ;;  %s5694_s3 = inlined_call_operand.hbm [shape: bf16[256,768], index: 3, kind: input, shape index: {}]   ;;  %s5695_s4 = inlined_call_operand.vmem [shape: f32[1,768], index: 4, kind: input, shape index: {}]   ;;  %s5696_s5 = inlined_call_operand.vmem [shape: f32[1,256], index: 5, kind: input, shape index: {}]   ;;  %s5697_s6 = inlined_call_operand.vmem [shape: f32[1,256], index: 6, kind: input, shape index: {}]   ;;  %s5698_s7 = inlined_call_operand.hbm [shape: f32[8,256], index: 7, kind: output, shape index: {}]  }
   0x1   :  { %13 = vsyncpa [#allocation7], 0 }
   0x2   :  { %14 = vsyncpa [#allocation5], 0  ;;  %s4075_s24 = smov [#allocation6]  }
   0x3   :  { %s34_s25 = sshll.u32 %s4075_s24, 4  ;;  %s35_s25 = int_to_ptr.vmem [resolvable:$true] %s34_s25 }
   0x4   :  { %s3997_s26 = scalar_lea.vmem %s35_s25, 12288  ;;  %p4002_p1 = scmp.lt.s32.totalorder %s35_s25, %s35_s25 }
   0x5   :  { %p3998_p0 = scmp.ne.s32.totalorder %s35_s25, %s3997_s26  ;;  %p4003_p2 = scmp.lt.s32.totalorder %s3997_s26, %s3997_s26 }
   0x7   :  { %p4004_p3 = por %p4003_p2, %p4002_p1 }
   0x9   :  { %p4005_p4 = pnand %p4004_p3, %p3998_p0 }
   0xb   :  { %4008 = shalt.err (!%p4005_p4)
}
   0xc   :  { %s4076_s27 = smov 384   ;;  %s4077_s28 = smov 24  }
   0xd   :  { %40 = dma.hbm_to_vmem [thread:$0]  %s5693_s2, 12288, %s35_s25, [#allocation7], %s4076_s27, %s4076_s27, %s4077_s28  }
   0xe   :  { %s4078_s8 = smov [#allocation3]  }
   0xf   :  { %s22_s9 = sshll.u32 %s4078_s8, 4  ;;  %s23_s9 = int_to_ptr.vmem [resolvable:$true] %s22_s9 }
  0x10   :  { %s4017_s10 = scalar_lea.vmem %s23_s9, 512  ;;  %p4022_p6 = scmp.lt.s32.totalorder %s23_s9, %s23_s9 }
  0x11   :  { %p4018_p5 = scmp.ne.s32.totalorder %s23_s9, %s4017_s10  ;;  %p4023_p7 = scmp.lt.s32.totalorder %s4017_s10, %s4017_s10 }
  0x13   :  { %p4024_p8 = por %p4023_p7, %p4022_p6 }
  0x15   :  { %p4025_p9 = pnand %p4024_p8, %p4018_p5 }
  0x17   :  { %4028 = shalt.err (!%p4025_p9)
}
  0x18   :  { %s4079_s11 = smov 128   ;;  %s4080_s12 = smov 8  }
  0x19   :  { %28 = dma.hbm_to_vmem [thread:$0]  %s5692_s1, 512, %s23_s9, [#allocation4], %s4079_s11, %s4079_s11, %s4080_s12  }
  0x1a   :  { %s4081_s15 = smov [#allocation8]  }
  0x1b   :  { %s46_s16 = sshll.u32 %s4081_s15, 4  ;;  %s47_s16 = int_to_ptr.vmem [resolvable:$true] %s46_s16 }
  0x1c   :  { %s4037_s2 = scalar_lea.vmem %s47_s16, 12288  ;;  %p4042_p11 = scmp.lt.s32.totalorder %s47_s16, %s47_s16 }
  0x1d   :  { %p4038_p10 = scmp.ne.s32.totalorder %s47_s16, %s4037_s2  ;;  %p4043_p12 = scmp.lt.s32.totalorder %s4037_s2, %s4037_s2 }
  0x1f   :  { %p4044_p13 = por %p4043_p12, %p4042_p11 }
  0x21   :  { %p4045_p0 = pnand %p4044_p13, %p4038_p10 }
  0x23   :  { %4048 = shalt.err (!%p4045_p0)
}
  0x24   :  { %52 = dma.hbm_to_vmem [thread:$0]  %s5694_s3, 12288, %s47_s16, [#allocation7], %s4076_s27, %s4076_s27, %s4077_s28  }
  0x25   :  { %4069 = dma.done.wait [#allocation4], 512  }
  0x26   :  { %4070 = vsyncadd [#allocation4], 4294966784 }
  0x27   :  { %4071 = dma.done.wait [#allocation7], 24576  }
  0x28   :  { %4072 = vsyncadd [#allocation7], 4294942720  ;;  %v4082_v0 = vmov 0   ;;  %v69_v1 = vld [vmem:[%s5691_s0] sm:$0xff]  ;;  %v3343_v2 = vld [vmem:[#allocation3 + $0x14] ss:$8 sps:$4 sm:$0xff]   ;;  %v70_v37 = vlaneseq }
  0x29   :  { %3342 = vset.pattern.permute.xlu0 %v4082_v0  ;;  %138 = vmatprep.mubr.bf16.mxu0 %v4082_v0  ;;  %v3345_v3 = vld [vmem:[#allocation3 + $0x10] ss:$8 sps:$4 sm:$0xff]   ;;  %v3346_v4 = vld [vmem:[#allocation3 + $0x4] ss:$8 sps:$4 sm:$0xff]   ;;  %v3348_v6 = vld [vmem:[#allocation3] ss:$8 sps:$4 sm:$0xff]  }
  0x2a   :  { %73 = vperm.xlu0 %3342, %v69_v1   ;;  %118 = vmatprep.subr.bf16.mxu0 %v3343_v2  ;;  %v3349_v5 = vld [vmem:[#allocation6 + $0x154] ss:$24 sps:$4 sm:$0xff]   ;;  %v3354_v8 = vld [vmem:[#allocation6 + $0x150] ss:$24 sps:$4 sm:$0xff]   ;;  %v3355_v9 = vld [vmem:[#allocation6 + $0x124] ss:$24 sps:$4 sm:$0xff]  }
  0x2b   :  { %119 = vmatpush1.bf16.msra.mxu0 %v3345_v3  ;;  %757 = vmatprep.subr.bf16.mxu1 %v3349_v5  ;;  %v3353_v7 = vld [vmem:[#allocation6 + $0x15c] ss:$24 sps:$4 sm:$0xff]   ;;  %v3360_v10 = vld [vmem:[#allocation6 + $0x120] ss:$24 sps:$4 sm:$0xff]   ;;  %v3366_v12 = vld [vmem:[#allocation6 + $0xf0] ss:$24 sps:$4 sm:$0xff]  }
  0x2c   :  { %120 = vmatprep.subr.bf16.mxu0 %v3346_v4  ;;  %758 = vmatpush1.bf16.msra.mxu1 %v3354_v8  ;;  %v3361_v11 = vld [vmem:[#allocation6 + $0xf4] ss:$24 sps:$4 sm:$0xff]   ;;  %v3367_v13 = vld [vmem:[#allocation6 + $0xc4] ss:$24 sps:$4 sm:$0xff]   ;;  %v3372_v14 = vld [vmem:[#allocation6 + $0xc0] ss:$24 sps:$4 sm:$0xff]  }
  0x2d   :  { %759 = vmatprep.subr.bf16.mxu1 %v3355_v9  ;;  %v3373_v15 = vld [vmem:[#allocation6 + $0x94] ss:$24 sps:$4 sm:$0xff]   ;;  %v3378_v16 = vld [vmem:[#allocation6 + $0x90] ss:$24 sps:$4 sm:$0xff]   ;;  %v3379_v17 = vld [vmem:[#allocation6 + $0x64] ss:$24 sps:$4 sm:$0xff]  }
  0x2e   :  { %v3384_v18 = vld [vmem:[#allocation6 + $0x60] ss:$24 sps:$4 sm:$0xff]   ;;  %v3385_v19 = vld [vmem:[#allocation6 + $0x34] ss:$24 sps:$4 sm:$0xff]   ;;  %v3390_v20 = vld [vmem:[#allocation6 + $0x30] ss:$24 sps:$4 sm:$0xff]  }
  0x2f   :  { %121 = vmatpush1.bf16.msra.mxu0 %v3348_v6  ;;  %v3391_v21 = vld [vmem:[#allocation6 + $0x4] ss:$24 sps:$4 sm:$0xff]   ;;  %v3396_v22 = vld [vmem:[#allocation6] ss:$24 sps:$4 sm:$0xff]   ;;  %v3397_v23 = vld [vmem:[#allocation6 + $0x2d4] ss:$24 sps:$4 sm:$0xff]  }
  0x30   :  { %798 = vmatprep.subr.bf16.mxu0 %v3353_v7  ;;  %760 = vmatpush1.bf16.msra.mxu1 %v3360_v10  ;;  %v3402_v24 = vld [vmem:[#allocation6 + $0x2d0] ss:$24 sps:$4 sm:$0xff]   ;;  %v3403_v25 = vld [vmem:[#allocation6 + $0x2a4] ss:$24 sps:$4 sm:$0xff]   ;;  %v3408_v26 = vld [vmem:[#allocation6 + $0x2a0] ss:$24 sps:$4 sm:$0xff]  }
  0x31   :  { %761 = vmatprep.subr.bf16.mxu1 %v3361_v11  ;;  %v3409_v27 = vld [vmem:[#allocation6 + $0x274] ss:$24 sps:$4 sm:$0xff]   ;;  %v3414_v28 = vld [vmem:[#allocation6 + $0x270] ss:$24 sps:$4 sm:$0xff]   ;;  %v3415_v29 = vld [vmem:[#allocation6 + $0x244] ss:$24 sps:$4 sm:$0xff]  }
  0x32   :  { %v3420_v30 = vld [vmem:[#allocation6 + $0x240] ss:$24 sps:$4 sm:$0xff]   ;;  %v3421_v31 = vld [vmem:[#allocation6 + $0x214] ss:$24 sps:$4 sm:$0xff]   ;;  %v3426_v32 = vld [vmem:[#allocation6 + $0x210] ss:$24 sps:$4 sm:$0xff]  }
  0x33   :  { %v3427_v33 = vld [vmem:[#allocation6 + $0x1e4] ss:$24 sps:$4 sm:$0xff]   ;;  %v3432_v34 = vld [vmem:[#allocation6 + $0x1e0] ss:$24 sps:$4 sm:$0xff]   ;;  %v3433_v35 = vld [vmem:[#allocation6 + $0x1b4] ss:$24 sps:$4 sm:$0xff]  }
  0x34   :  { %762 = vmatpush1.bf16.msra.mxu1 %v3366_v12  ;;  %v3438_v36 = vld [vmem:[#allocation6 + $0x1b0] ss:$24 sps:$4 sm:$0xff]   ;;  %v71_v38 = vand.u32 127, %v70_v37  ;;  %v4083_v40 = vmov 0.0   ;;  %vm102_vm1 = vcmask 261120   ;;  %vm3061_vm2 = vcmask 1040384  }
  0x35   :  { %763 = vmatprep.subr.bf16.mxu1 %v3367_v13  ;;  %v3351_v42 = vld [vmem:[#allocation6 + $0x158] ss:$24 sps:$4 sm:$0xff]   ;;  %v3359_v44 = vld [vmem:[#allocation6 + $0x12c] ss:$24 sps:$4 sm:$0xff]   ;;  %v3357_v45 = vld [vmem:[#allocation6 + $0x128] ss:$24 sps:$4 sm:$0xff]  }
  0x36   :  { %v3365_v46 = vld [vmem:[#allocation6 + $0xfc] ss:$24 sps:$4 sm:$0xff]   ;;  %v3363_v47 = vld [vmem:[#allocation6 + $0xf8] ss:$24 sps:$4 sm:$0xff]   ;;  %v3371_v48 = vld [vmem:[#allocation6 + $0xcc] ss:$24 sps:$4 sm:$0xff]  }
  0x37   :  { %v3369_v49 = vld [vmem:[#allocation6 + $0xc8] ss:$24 sps:$4 sm:$0xff]   ;;  %v3377_v50 = vld [vmem:[#allocation6 + $0x9c] ss:$24 sps:$4 sm:$0xff]   ;;  %v3375_v51 = vld [vmem:[#allocation6 + $0x98] ss:$24 sps:$4 sm:$0xff]  }
  0x38   :  { %764 = vmatpush1.bf16.msra.mxu1 %v3372_v14  ;;  %v3383_v52 = vld [vmem:[#allocation6 + $0x6c] ss:$24 sps:$4 sm:$0xff]   ;;  %v3381_v53 = vld [vmem:[#allocation6 + $0x68] ss:$24 sps:$4 sm:$0xff]   ;;  %v3389_v54 = vld [vmem:[#allocation6 + $0x3c] ss:$24 sps:$4 sm:$0xff]  }
  0x39   :  { %765 = vmatprep.subr.bf16.mxu1 %v3373_v15  ;;  %v3387_v55 = vld [vmem:[#allocation6 + $0x38] ss:$24 sps:$4 sm:$0xff]   ;;  %v3395_v56 = vld [vmem:[#allocation6 + $0xc] ss:$24 sps:$4 sm:$0xff]   ;;  %v3393_v57 = vld [vmem:[#allocation6 + $0x8] ss:$24 sps:$4 sm:$0xff]  }
  0x3a   :  { %v3401_v58 = vld [vmem:[#allocation6 + $0x2dc] ss:$24 sps:$4 sm:$0xff]   ;;  %v3399_v59 = vld [vmem:[#allocation6 + $0x2d8] ss:$24 sps:$4 sm:$0xff]   ;;  %v3407_v60 = vld [vmem:[#allocation6 + $0x2ac] ss:$24 sps:$4 sm:$0xff]  }
  0x3b   :  { %v3405_v61 = vld [vmem:[#allocation6 + $0x2a8] ss:$24 sps:$4 sm:$0xff]   ;;  %v3413_v62 = vld [vmem:[#allocation6 + $0x27c] ss:$24 sps:$4 sm:$0xff]   ;;  %v3411_v63 = vld [vmem:[#allocation6 + $0x278] ss:$24 sps:$4 sm:$0xff]  }
  0x3c   :  { %766 = vmatpush1.bf16.msra.mxu1 %v3378_v16  ;;  %v3419_v0 = vld [vmem:[#allocation6 + $0x24c] ss:$24 sps:$4 sm:$0xff]   ;;  %v3417_v1 = vld [vmem:[#allocation6 + $0x248] ss:$24 sps:$4 sm:$0xff]   ;;  %v3425_v2 = vld [vmem:[#allocation6 + $0x21c] ss:$24 sps:$4 sm:$0xff]  }
  0x3d   :  { %767 = vmatprep.subr.bf16.mxu1 %v3379_v17  ;;  %v3423_v3 = vld [vmem:[#allocation6 + $0x218] ss:$24 sps:$4 sm:$0xff]   ;;  %v3431_v4 = vld [vmem:[#allocation6 + $0x1ec] ss:$24 sps:$4 sm:$0xff]   ;;  %v3429_v5 = vld [vmem:[#allocation6 + $0x1e8] ss:$24 sps:$4 sm:$0xff]  }
  0x3e   :  { %v3437_v6 = vld [vmem:[#allocation6 + $0x1bc] ss:$24 sps:$4 sm:$0xff]   ;;  %v3435_v7 = vld [vmem:[#allocation6 + $0x1b8] ss:$24 sps:$4 sm:$0xff]   ;;  %v3443_v9 = vld [vmem:[#allocation6 + $0x18c] ss:$24 sps:$4 sm:$0xff]  }
  0x3f   :  { %v3439_v8 = vld [vmem:[#allocation6 + $0x184] ss:$24 sps:$4 sm:$0xff]   ;;  %v3441_v10 = vld [vmem:[#allocation6 + $0x188] ss:$24 sps:$4 sm:$0xff]   ;;  %v4138_v13 = vld [vmem:[#allocation8 + $0x154] ss:$24 sps:$4 sm:$0xff]  }
  0x40   :  { %768 = vmatpush1.bf16.msra.mxu1 %v3384_v18  ;;  %v3444_v11 = vld [vmem:[#allocation6 + $0x180] ss:$24 sps:$4 sm:$0xff]   ;;  %v3447_v12 = vld [vmem:[#allocation6 + $0x164] ss:$24 sps:$4 sm:$0xff]   ;;  %v4142_v14 = vshrl.u32 %v70_v37, 7  ;;  %vm3064_vm3 = vcmask 1041408  }
  0x41   :  { %769 = vmatprep.subr.bf16.mxu1 %v3385_v19  ;;  %v4150_v16 = vld [vmem:[%s5697_s6] sm:$0x3]  ;;  %v3463_v37 = vld [vmem:[#allocation6 + $0xd0] ss:$24 sps:$4 sm:$0xff]   ;;  %vm3067_vm4 = vcmask 1042432   ;;  %vm3070_vm5 = vcmask 1043456  }
  0x42   :  { %5948 = vst [vmem:[#allocation13_spill] sm:$0xff] %v4142_v14  ;;  %v4145_v15 = vsub.s32 1, %v4142_v14  ;;  %vm3073_vm6 = vcmask 1044480   ;;  %vm3076_vm7 = vcmask 1045504   ;;  %vm3079_vm8 = vcmask 1046528  }
  0x44   :  { %770 = vmatpush1.bf16.msra.mxu1 %v3390_v20  ;;  %5949 = vst [vmem:[#allocation14_spill] sm:$0xff] %v4145_v15  ;;  %v4154_v18 = vrot.slane %v4150_v16, %v4145_v15  ;;  %v4411_v15 = vld [vmem:[#allocation8 + $0x250] ss:$24 sps:$4 sm:$0xff]  }
  0x45   :  { %771 = vmatprep.subr.bf16.mxu1 %v3391_v21  ;;  %v3445_v21 = vld [vmem:[#allocation6 + $0x160] ss:$24 sps:$4 sm:$0xff]   ;;  %6004 = vst [vmem:[#allocation69_spill] sm:$0xff] %v4411_v15 }
  0x46   :  { %5950 = vst [vmem:[#allocation15_spill] sm:$0xff] %v4154_v18 }
  0x48   :  { %772 = vmatpush1.bf16.msra.mxu1 %v3396_v22  ;;  %v4156_v22 = vld [vmem:[#allocation8 + $0x150] ss:$24 sps:$4 sm:$0xff]  }
  0x49   :  { %773 = vmatprep.subr.bf16.mxu1 %v3397_v23 }
  0x4c   :  { %774 = vmatpush2.bf16.msra.mxu1 %v3402_v24 }
  0x4d   :  { %775 = vmatprep.subr.bf16.mxu1 %v3403_v25  ;;  %v3453_v25 = vld [vmem:[#allocation6 + $0x134] ss:$24 sps:$4 sm:$0xff]  }
  0x50   :  { %776 = vmatpush2.bf16.msra.mxu1 %v3408_v26  ;;  %v4160_v26 = vld [vmem:[#allocation8 + $0x124] ss:$24 sps:$4 sm:$0xff]  }
  0x51   :  { %777 = vmatprep.subr.bf16.mxu1 %v3409_v27  ;;  %v4164_v27 = vpack.c.bf16 %v4154_v18, %v4154_v18  ;;  %v4393_v18 = vld [vmem:[#allocation8 + $0x284] ss:$24 sps:$4 sm:$0xff]  }
  0x52   :  { %5998 = vst [vmem:[#allocation63_spill] sm:$0xff] %v4393_v18 }
  0x54   :  { %778 = vmatpush2.bf16.msra.mxu1 %v3414_v28 }
  0x55   :  { %779 = vmatprep.subr.bf16.mxu1 %v3415_v29  ;;  %v3451_v29 = vld [vmem:[#allocation6 + $0x130] ss:$24 sps:$4 sm:$0xff]  }
  0x58   :  { %780 = vmatpush2.bf16.msra.mxu1 %v3420_v30  ;;  %v4169_v30 = vld [vmem:[#allocation8 + $0x120] ss:$24 sps:$4 sm:$0xff]  }
  0x59   :  { %781 = vmatprep.subr.bf16.mxu1 %v3421_v31  ;;  %v3459_v31 = vld [vmem:[#allocation6 + $0x104] ss:$24 sps:$4 sm:$0xff]  }
  0x5c   :  { %782 = vmatpush2.bf16.msra.mxu1 %v3426_v32  ;;  %v4171_v32 = vld [vmem:[#allocation8 + $0xf4] ss:$24 sps:$4 sm:$0xff]  }
  0x5d   :  { %783 = vmatprep.subr.bf16.mxu1 %v3427_v33  ;;  %v3457_v33 = vld [vmem:[#allocation6 + $0x100] ss:$24 sps:$4 sm:$0xff]  }
  0x60   :  { %784 = vmatpush2.bf16.msra.mxu1 %v3432_v34  ;;  %v4176_v34 = vld [vmem:[#allocation8 + $0xf0] ss:$24 sps:$4 sm:$0xff]  }
  0x61   :  { %785 = vmatprep.subr.bf16.mxu1 %v3433_v35  ;;  %v3465_v35 = vld [vmem:[#allocation6 + $0xd4] ss:$24 sps:$4 sm:$0xff]  }
  0x64   :  { %786 = vmatpush2.bf16.msra.mxu1 %v3438_v36  ;;  %v4179_v36 = vld [vmem:[#allocation8 + $0xc4] ss:$24 sps:$4 sm:$0xff]  }
  0x65   :  { %787 = vmatprep.subr.bf16.mxu1 %v3439_v8  ;;  %v4233_v8 = vld [vmem:[#allocation8 + $0x214] ss:$24 sps:$4 sm:$0xff]  }
  0x68   :  { %788 = vmatpush2.bf16.msra.mxu1 %v3444_v11  ;;  %v3525_v11 = vld [vmem:[#allocation6 + $0x1f4] ss:$24 sps:$4 sm:$0xff]  }
  0x69   :  { %839 = vmatprep.subr.bf16.mxu1 %v3447_v12  ;;  %v4239_v12 = vld [vmem:[#allocation8 + $0x1e4] ss:$24 sps:$4 sm:$0xff]  }
  0xa5   :  { %v74_v39 = vpop.permute.xlu0 %73 }
  0xa6   :  { %vm75_vm0 = vcmp.eq.s32.totalorder %v74_v39, %v71_v38  ;;  %v4182_v38 = vld [vmem:[#allocation8 + $0xc0] ss:$24 sps:$4 sm:$0xff]   ;;  %v3471_v39 = vld [vmem:[#allocation6 + $0xa4] ss:$24 sps:$4 sm:$0xff]  }
  0xa7   :  { %v76_v41 = vsel %vm75_vm0, 1.0, %v4083_v40  ;;  %v4185_v40 = vld [vmem:[#allocation8 + $0x94] ss:$24 sps:$4 sm:$0xff]  }
  0xa8   :  { %v77_v43 = vpack.c.bf16 %v76_v41, %v76_v41  ;;  %v3469_v41 = vld [vmem:[#allocation6 + $0xa0] ss:$24 sps:$4 sm:$0xff]  }
  0xaa   :  { %3107 = vmatmul.mubr.msk.bf16.vlgmr.msra.gmra.mxu0 %vm102_vm1, %v77_v43  ;;  %v3477_v43 = vld [vmem:[#allocation6 + $0x74] ss:$24 sps:$4 sm:$0xff]  }
  0xab   :  { %799 = vmatpush1.bf16.msra.mxu0 %v3351_v42  ;;  %v4188_v42 = vld [vmem:[#allocation8 + $0x90] ss:$24 sps:$4 sm:$0xff]  }
  0xac   :  { %800 = vmatprep.subr.bf16.mxu0 %v3359_v44  ;;  %v4191_v44 = vld [vmem:[#allocation8 + $0x64] ss:$24 sps:$4 sm:$0xff]  }
  0xaf   :  { %801 = vmatpush1.bf16.msra.mxu0 %v3357_v45  ;;  %v3475_v45 = vld [vmem:[#allocation6 + $0x70] ss:$24 sps:$4 sm:$0xff]  }
  0xb0   :  { %802 = vmatprep.subr.bf16.mxu0 %v3365_v46  ;;  %v4194_v46 = vld [vmem:[#allocation8 + $0x60] ss:$24 sps:$4 sm:$0xff]  }
  0xb3   :  { %803 = vmatpush1.bf16.msra.mxu0 %v3363_v47  ;;  %v3483_v47 = vld [vmem:[#allocation6 + $0x44] ss:$24 sps:$4 sm:$0xff]  }
  0xb4   :  { %804 = vmatprep.subr.bf16.mxu0 %v3371_v48  ;;  %v4197_v48 = vld [vmem:[#allocation8 + $0x34] ss:$24 sps:$4 sm:$0xff]  }
  0xb7   :  { %805 = vmatpush1.bf16.msra.mxu0 %v3369_v49  ;;  %v3481_v49 = vld [vmem:[#allocation6 + $0x40] ss:$24 sps:$4 sm:$0xff]  }
  0xb8   :  { %806 = vmatprep.subr.bf16.mxu0 %v3377_v50  ;;  %v4200_v50 = vld [vmem:[#allocation8 + $0x30] ss:$24 sps:$4 sm:$0xff]  }
  0xbb   :  { %807 = vmatpush1.bf16.msra.mxu0 %v3375_v51  ;;  %v3489_v51 = vld [vmem:[#allocation6 + $0x14] ss:$24 sps:$4 sm:$0xff]  }
  0xbc   :  { %808 = vmatprep.subr.bf16.mxu0 %v3383_v52  ;;  %v4203_v52 = vld [vmem:[#allocation8 + $0x4] ss:$24 sps:$4 sm:$0xff]  }
  0xbf   :  { %809 = vmatpush1.bf16.msra.mxu0 %v3381_v53  ;;  %v3487_v53 = vld [vmem:[#allocation6 + $0x10] ss:$24 sps:$4 sm:$0xff]  }
  0xc0   :  { %810 = vmatprep.subr.bf16.mxu0 %v3389_v54  ;;  %v4206_v54 = vld [vmem:[#allocation8] ss:$24 sps:$4 sm:$0xff]  }
  0xc3   :  { %811 = vmatpush1.bf16.msra.mxu0 %v3387_v55  ;;  %v3495_v55 = vld [vmem:[#allocation6 + $0x2e4] ss:$24 sps:$4 sm:$0xff]  }
  0xc4   :  { %812 = vmatprep.subr.bf16.mxu0 %v3395_v56  ;;  %v4209_v56 = vld [vmem:[#allocation8 + $0x2d4] ss:$24 sps:$4 sm:$0xff]  }
  0xc7   :  { %813 = vmatpush1.bf16.msra.mxu0 %v3393_v57  ;;  %v3493_v57 = vld [vmem:[#allocation6 + $0x2e0] ss:$24 sps:$4 sm:$0xff]  }
  0xc8   :  { %814 = vmatprep.subr.bf16.mxu0 %v3401_v58  ;;  %v4212_v58 = vld [vmem:[#allocation8 + $0x2d0] ss:$24 sps:$4 sm:$0xff]  }
  0xcb   :  { %815 = vmatpush2.bf16.msra.mxu0 %v3399_v59  ;;  %v3501_v59 = vld [vmem:[#allocation6 + $0x2b4] ss:$24 sps:$4 sm:$0xff]  }
  0xcc   :  { %816 = vmatprep.subr.bf16.mxu0 %v3407_v60  ;;  %v4215_v60 = vld [vmem:[#allocation8 + $0x2a4] ss:$24 sps:$4 sm:$0xff]  }
  0xcf   :  { %817 = vmatpush2.bf16.msra.mxu0 %v3405_v61  ;;  %v3499_v61 = vld [vmem:[#allocation6 + $0x2b0] ss:$24 sps:$4 sm:$0xff]  }
  0xd0   :  { %818 = vmatprep.subr.bf16.mxu0 %v3413_v62  ;;  %v4218_v62 = vld [vmem:[#allocation8 + $0x2a0] ss:$24 sps:$4 sm:$0xff]  }
  0xd3   :  { %819 = vmatpush2.bf16.msra.mxu0 %v3411_v63  ;;  %v3507_v63 = vld [vmem:[#allocation6 + $0x284] ss:$24 sps:$4 sm:$0xff]  }
  0xd4   :  { %820 = vmatprep.subr.bf16.mxu0 %v3419_v0  ;;  %v4221_v0 = vld [vmem:[#allocation8 + $0x274] ss:$24 sps:$4 sm:$0xff]  }
  0xd7   :  { %821 = vmatpush2.bf16.msra.mxu0 %v3417_v1  ;;  %v3505_v1 = vld [vmem:[#allocation6 + $0x280] ss:$24 sps:$4 sm:$0xff]  }
  0xd8   :  { %822 = vmatprep.subr.bf16.mxu0 %v3425_v2  ;;  %v4224_v2 = vld [vmem:[#allocation8 + $0x270] ss:$24 sps:$4 sm:$0xff]  }
  0xdb   :  { %823 = vmatpush2.bf16.msra.mxu0 %v3423_v3  ;;  %v3513_v3 = vld [vmem:[#allocation6 + $0x254] ss:$24 sps:$4 sm:$0xff]  }
  0xdc   :  { %824 = vmatprep.subr.bf16.mxu0 %v3431_v4  ;;  %v4227_v4 = vld [vmem:[#allocation8 + $0x244] ss:$24 sps:$4 sm:$0xff]  }
  0xdf   :  { %825 = vmatpush2.bf16.msra.mxu0 %v3429_v5  ;;  %v3511_v5 = vld [vmem:[#allocation6 + $0x250] ss:$24 sps:$4 sm:$0xff]  }
  0xe0   :  { %826 = vmatprep.subr.bf16.mxu0 %v3437_v6  ;;  %v4230_v6 = vld [vmem:[#allocation8 + $0x240] ss:$24 sps:$4 sm:$0xff]  }
  0xe3   :  { %827 = vmatpush2.bf16.msra.mxu0 %v3435_v7  ;;  %v3519_v7 = vld [vmem:[#allocation6 + $0x224] ss:$24 sps:$4 sm:$0xff]  }
  0xe4   :  { %828 = vmatprep.subr.bf16.mxu0 %v3443_v9  ;;  %v3517_v9 = vld [vmem:[#allocation6 + $0x220] ss:$24 sps:$4 sm:$0xff]  }
  0xe7   :  { %829 = vmatpush2.bf16.msra.mxu0 %v3441_v10  ;;  %v4236_v10 = vld [vmem:[#allocation8 + $0x210] ss:$24 sps:$4 sm:$0xff]  }
  0xe8   :  { %1486 = vmatprep.subr.bf16.mxu0 %v4138_v13 }
 0x16a   :  { %v140_v17 = vpop.f32.mrf.mxu0 }
 0x16b   :  { %v4158_v23 = vpack.c.bf16 %v140_v17, %v140_v17  ;;  %v3523_v17 = vld [vmem:[#allocation6 + $0x1f0] ss:$24 sps:$4 sm:$0xff]  }
 0x16c   :  { %v142_v19 = vpop.f32.mrf.mxu0 }
 0x16d   :  { %v148_v20 = vpack.c.bf16 %v142_v19, %v142_v19  ;;  %v4242_v19 = vld [vmem:[#allocation8 + $0x1e0] ss:$24 sps:$4 sm:$0xff]  }
 0x16e   :  { %v144_v24 = vpop.f32.mrf.mxu0  ;;  %5951 = vst [vmem:[#allocation16_spill] sm:$0xff] %v4242_v19 }
 0x16f   :  { %789 = vmatprep.mubr.bf16.mxu1 %v148_v20  ;;  %830 = vmatprep.mubr.bf16.mxu0 %v148_v20  ;;  %v4248_v24 = vsub.s32 0, %v4142_v14  ;;  %v4405_v14 = vld [vmem:[#allocation8 + $0x254] ss:$24 sps:$4 sm:$0xff]  }
 0x170   :  { %v145_v28 = vpop.f32.mrf.mxu0  ;;  %790 = vmatmul.mubr.bf16.vlgmr.msra.gmra.mxu1 %v4158_v23  ;;  %831 = vmatmul.mubr.bf16.vlgmr.msra.gmra.mxu0 %v4158_v23  ;;  %6002 = vst [vmem:[#allocation67_spill] sm:$0xff] %v4405_v14 }
 0x171   :  { %840 = vmatpush1.bf16.msra.mxu1 %v3445_v21  ;;  %1487 = vmatpush1.bf16.msra.mxu0 %v4156_v22  ;;  %v4245_v21 = vld [vmem:[#allocation8 + $0x1b4] ss:$24 sps:$4 sm:$0xff]   ;;  %5953 = vst [vmem:[#allocation18_spill] sm:$0xff] %v4248_v24  ;;  %v4251_v28 = vld [vmem:[#allocation8 + $0x1b0] ss:$24 sps:$4 sm:$0xff]  }
 0x172   :  { %871 = vmatprep.mubr.bf16.mxu1 %v148_v20  ;;  %841 = vmatprep.subr.bf16.mxu1 %v3453_v25  ;;  %v3531_v20 = vld [vmem:[#allocation6 + $0x1c4] ss:$24 sps:$4 sm:$0xff]   ;;  %5952 = vst [vmem:[#allocation17_spill] sm:$0xff] %v4245_v21  ;;  %v3529_v25 = vld [vmem:[#allocation6 + $0x1c0] ss:$24 sps:$4 sm:$0xff]   ;;  %5954 = vst [vmem:[#allocation19_spill] sm:$0xff] %v4251_v28 }
 0x173   :  { %1488 = vmatprep.subr.bf16.mxu0 %v4160_v26  ;;  %1518 = vmatprep.mubr.bf16.mxu0 %v4164_v27 }
 0x175   :  { %842 = vmatpush1.bf16.msra.mxu1 %v3451_v29  ;;  %1489 = vmatpush1.bf16.msra.mxu0 %v4169_v30  ;;  %v3537_v29 = vld [vmem:[#allocation6 + $0x194] ss:$24 sps:$4 sm:$0xff]  }
 0x176   :  { %843 = vmatprep.subr.bf16.mxu1 %v3459_v31  ;;  %1490 = vmatprep.subr.bf16.mxu0 %v4171_v32  ;;  %v4254_v31 = vld [vmem:[#allocation8 + $0x184] ss:$24 sps:$4 sm:$0xff]  }
 0x177   :  { %5955 = vst [vmem:[#allocation20_spill] sm:$0xff] %v4254_v31 }
 0x179   :  { %844 = vmatpush1.bf16.msra.mxu1 %v3457_v33  ;;  %1491 = vmatpush1.bf16.msra.mxu0 %v4176_v34  ;;  %v4258_v33 = vrot.slane %v4150_v16, %v4248_v24  ;;  %v4273_v16 = vld [vmem:[#allocation8 + $0x158] ss:$24 sps:$4 sm:$0xff]   ;;  %v4417_v24 = vld [vmem:[#allocation8 + $0x224] ss:$24 sps:$4 sm:$0xff]  }
 0x17a   :  { %845 = vmatprep.subr.bf16.mxu1 %v3465_v35  ;;  %1492 = vmatprep.subr.bf16.mxu0 %v4179_v36  ;;  %v3535_v35 = vld [vmem:[#allocation6 + $0x190] ss:$24 sps:$4 sm:$0xff]   ;;  %5959 = vst [vmem:[#allocation24_spill] sm:$0xff] %v4273_v16  ;;  %6006 = vst [vmem:[#allocation71_spill] sm:$0xff] %v4417_v24 }
 0x17b   :  { %5956 = vst [vmem:[#allocation21_spill] sm:$0xff] %v4258_v33 }
 0x17d   :  { %846 = vmatpush1.bf16.msra.mxu1 %v3463_v37  ;;  %1493 = vmatpush1.bf16.msra.mxu0 %v4182_v38  ;;  %v4261_v37 = vld [vmem:[#allocation8 + $0x180] ss:$24 sps:$4 sm:$0xff]  }
 0x17e   :  { %847 = vmatprep.subr.bf16.mxu1 %v3471_v39  ;;  %1494 = vmatprep.subr.bf16.mxu0 %v4185_v40  ;;  %5957 = vst [vmem:[#allocation22_spill] sm:$0xff] %v4261_v37  ;;  %v4264_v39 = vld [vmem:[#allocation8 + $0x15c] ss:$24 sps:$4 sm:$0xff]  }
 0x181   :  { %848 = vmatpush1.bf16.msra.mxu1 %v3469_v41  ;;  %1495 = vmatpush1.bf16.msra.mxu0 %v4188_v42  ;;  %v4266_v41 = vld [vmem:[#allocation8 + $0x164] ss:$24 sps:$4 sm:$0xff]  }
 0x182   :  { %849 = vmatprep.subr.bf16.mxu1 %v3477_v43  ;;  %1496 = vmatprep.subr.bf16.mxu0 %v4191_v44  ;;  %5958 = vst [vmem:[#allocation23_spill] sm:$0xff] %v4266_v41  ;;  %v4270_v43 = vpack.c.bf16 %v4258_v33, %v4258_v33  ;;  %v4399_v33 = vld [vmem:[#allocation8 + $0x280] ss:$24 sps:$4 sm:$0xff]  }
 0x183   :  { %6000 = vst [vmem:[#allocation65_spill] sm:$0xff] %v4399_v33 }
 0x185   :  { %850 = vmatpush1.bf16.msra.mxu1 %v3475_v45  ;;  %1497 = vmatpush1.bf16.msra.mxu0 %v4194_v46  ;;  %v4275_v45 = vld [vmem:[#allocation8 + $0x160] ss:$24 sps:$4 sm:$0xff]  }
 0x186   :  { %851 = vmatprep.subr.bf16.mxu1 %v3483_v47  ;;  %1498 = vmatprep.subr.bf16.mxu0 %v4197_v48  ;;  %5960 = vst [vmem:[#allocation25_spill] sm:$0xff] %v4275_v45  ;;  %v4279_v47 = vld [vmem:[#allocation8 + $0x12c] ss:$24 sps:$4 sm:$0xff]  }
 0x187   :  { %5961 = vst [vmem:[#allocation26_spill] sm:$0xff] %v4279_v47 }
 0x189   :  { %852 = vmatpush1.bf16.msra.mxu1 %v3481_v49  ;;  %1499 = vmatpush1.bf16.msra.mxu0 %v4200_v50  ;;  %v4281_v49 = vld [vmem:[#allocation8 + $0x134] ss:$24 sps:$4 sm:$0xff]  }
 0x18a   :  { %853 = vmatprep.subr.bf16.mxu1 %v3489_v51  ;;  %1500 = vmatprep.subr.bf16.mxu0 %v4203_v52  ;;  %5962 = vst [vmem:[#allocation27_spill] sm:$0xff] %v4281_v49  ;;  %v4287_v51 = vld [vmem:[#allocation8 + $0x128] ss:$24 sps:$4 sm:$0xff]  }
 0x18b   :  { %5963 = vst [vmem:[#allocation28_spill] sm:$0xff] %v4287_v51 }
 0x18d   :  { %854 = vmatpush1.bf16.msra.mxu1 %v3487_v53  ;;  %1501 = vmatpush1.bf16.msra.mxu0 %v4206_v54  ;;  %v4289_v53 = vld [vmem:[#allocation8 + $0x130] ss:$24 sps:$4 sm:$0xff]  }
 0x18e   :  { %855 = vmatprep.subr.bf16.mxu1 %v3495_v55  ;;  %1502 = vmatprep.subr.bf16.mxu0 %v4209_v56  ;;  %5964 = vst [vmem:[#allocation29_spill] sm:$0xff] %v4289_v53  ;;  %v4293_v55 = vld [vmem:[#allocation8 + $0xfc] ss:$24 sps:$4 sm:$0xff]  }
 0x18f   :  { %5965 = vst [vmem:[#allocation30_spill] sm:$0xff] %v4293_v55 }
 0x191   :  { %856 = vmatpush2.bf16.msra.mxu1 %v3493_v57  ;;  %1503 = vmatpush2.bf16.msra.mxu0 %v4212_v58  ;;  %v4295_v57 = vld [vmem:[#allocation8 + $0x104] ss:$24 sps:$4 sm:$0xff]  }
 0x192   :  { %857 = vmatprep.subr.bf16.mxu1 %v3501_v59  ;;  %1504 = vmatprep.subr.bf16.mxu0 %v4215_v60  ;;  %5966 = vst [vmem:[#allocation31_spill] sm:$0xff] %v4295_v57  ;;  %v4303_v59 = vld [vmem:[#allocation8 + $0x100] ss:$24 sps:$4 sm:$0xff]  }
 0x193   :  { %5968 = vst [vmem:[#allocation33_spill] sm:$0xff] %v4303_v59 }
 0x195   :  { %858 = vmatpush2.bf16.msra.mxu1 %v3499_v61  ;;  %1505 = vmatpush2.bf16.msra.mxu0 %v4218_v62  ;;  %v4307_v61 = vld [vmem:[#allocation8 + $0xcc] ss:$24 sps:$4 sm:$0xff]  }
 0x196   :  { %859 = vmatprep.subr.bf16.mxu1 %v3507_v63  ;;  %1506 = vmatprep.subr.bf16.mxu0 %v4221_v0  ;;  %5969 = vst [vmem:[#allocation34_spill] sm:$0xff] %v4307_v61  ;;  %v4309_v63 = vld [vmem:[#allocation8 + $0xd4] ss:$24 sps:$4 sm:$0xff]  }
 0x197   :  { %5970 = vst [vmem:[#allocation35_spill] sm:$0xff] %v4309_v63 }
 0x199   :  { %860 = vmatpush2.bf16.msra.mxu1 %v3505_v1  ;;  %1507 = vmatpush2.bf16.msra.mxu0 %v4224_v2  ;;  %v4315_v1 = vld [vmem:[#allocation8 + $0xd0] ss:$24 sps:$4 sm:$0xff]  }
 0x19a   :  { %861 = vmatprep.subr.bf16.mxu1 %v3513_v3  ;;  %1508 = vmatprep.subr.bf16.mxu0 %v4227_v4  ;;  %5972 = vst [vmem:[#allocation37_spill] sm:$0xff] %v4315_v1  ;;  %v4319_v3 = vld [vmem:[#allocation8 + $0x9c] ss:$24 sps:$4 sm:$0xff]  }
 0x19b   :  { %5973 = vst [vmem:[#allocation38_spill] sm:$0xff] %v4319_v3 }
 0x19d   :  { %862 = vmatpush2.bf16.msra.mxu1 %v3511_v5  ;;  %1509 = vmatpush2.bf16.msra.mxu0 %v4230_v6  ;;  %v4321_v5 = vld [vmem:[#allocation8 + $0xa4] ss:$24 sps:$4 sm:$0xff]  }
 0x19e   :  { %863 = vmatprep.subr.bf16.mxu1 %v3519_v7  ;;  %1510 = vmatprep.subr.bf16.mxu0 %v4233_v8  ;;  %5974 = vst [vmem:[#allocation39_spill] sm:$0xff] %v4321_v5  ;;  %v4325_v7 = vld [vmem:[#allocation8 + $0x98] ss:$24 sps:$4 sm:$0xff]  }
 0x19f   :  { %5975 = vst [vmem:[#allocation40_spill] sm:$0xff] %v4325_v7 }
 0x1a1   :  { %864 = vmatpush2.bf16.msra.mxu1 %v3517_v9  ;;  %1511 = vmatpush2.bf16.msra.mxu0 %v4236_v10  ;;  %v4327_v9 = vld [vmem:[#allocation8 + $0xa0] ss:$24 sps:$4 sm:$0xff]  }
 0x1a2   :  { %865 = vmatprep.subr.bf16.mxu1 %v3525_v11  ;;  %1512 = vmatprep.subr.bf16.mxu0 %v4239_v12  ;;  %5976 = vst [vmem:[#allocation41_spill] sm:$0xff] %v4327_v9  ;;  %v4331_v11 = vld [vmem:[#allocation8 + $0x6c] ss:$24 sps:$4 sm:$0xff]  }
 0x1a3   :  { %5977 = vst [vmem:[#allocation42_spill] sm:$0xff] %v4331_v11 }
 0x1a5   :  { %866 = vmatpush2.bf16.msra.mxu1 %v3523_v17  ;;  %1513 = vmatpush2.bf16.msra.mxu0 %v4242_v19  ;;  %v4333_v17 = vld [vmem:[#allocation8 + $0x74] ss:$24 sps:$4 sm:$0xff]  }
 0x1a6   :  { %867 = vmatprep.subr.bf16.mxu1 %v3531_v20  ;;  %1514 = vmatprep.subr.bf16.mxu0 %v4245_v21  ;;  %5978 = vst [vmem:[#allocation43_spill] sm:$0xff] %v4333_v17  ;;  %v4337_v20 = vld [vmem:[#allocation8 + $0x68] ss:$24 sps:$4 sm:$0xff]   ;;  %v4453_v19 = vld [vmem:[#allocation8 + $0x194] ss:$24 sps:$4 sm:$0xff]  }
 0x1a7   :  { %5979 = vst [vmem:[#allocation44_spill] sm:$0xff] %v4337_v20  ;;  %v4447_v21 = vld [vmem:[#allocation8 + $0x1c0] ss:$24 sps:$4 sm:$0xff]  }
 0x1a9   :  { %868 = vmatpush2.bf16.msra.mxu1 %v3529_v25  ;;  %1515 = vmatpush2.bf16.msra.mxu0 %v4251_v28  ;;  %v4339_v25 = vld [vmem:[#allocation8 + $0x70] ss:$24 sps:$4 sm:$0xff]   ;;  %v4441_v28 = vld [vmem:[#allocation8 + $0x1c4] ss:$24 sps:$4 sm:$0xff]  }
 0x1aa   :  { %869 = vmatprep.subr.bf16.mxu1 %v3537_v29  ;;  %1516 = vmatprep.subr.bf16.mxu0 %v4254_v31  ;;  %5980 = vst [vmem:[#allocation45_spill] sm:$0xff] %v4339_v25  ;;  %v4343_v29 = vld [vmem:[#allocation8 + $0x3c] ss:$24 sps:$4 sm:$0xff]   ;;  %v4435_v31 = vld [vmem:[#allocation8 + $0x1f0] ss:$24 sps:$4 sm:$0xff]  }
 0x1ab   :  { %5981 = vst [vmem:[#allocation46_spill] sm:$0xff] %v4343_v29 }
 0x1ad   :  { %870 = vmatpush2.bf16.msra.mxu1 %v3535_v35  ;;  %1517 = vmatpush2.bf16.msra.mxu0 %v4261_v37  ;;  %v4345_v35 = vld [vmem:[#allocation8 + $0x44] ss:$24 sps:$4 sm:$0xff]   ;;  %v4429_v37 = vld [vmem:[#allocation8 + $0x1f4] ss:$24 sps:$4 sm:$0xff]  }
 0x1ae   :  { %1527 = vmatprep.subr.bf16.mxu1 %v4264_v39  ;;  %1568 = vmatprep.subr.bf16.mxu0 %v4266_v41  ;;  %5982 = vst [vmem:[#allocation47_spill] sm:$0xff] %v4345_v35  ;;  %v4423_v41 = vld [vmem:[#allocation8 + $0x220] ss:$24 sps:$4 sm:$0xff]   ;;  %6010 = vst [vmem:[#allocation75_spill] sm:$0xff] %v4429_v37 }
 0x1af   :  { %6008 = vst [vmem:[#allocation73_spill] sm:$0xff] %v4423_v41 }
 0x1b0   :  { %872 = vmatmul.mubr.bf16.vlgmr.msra.gmra.mxu1 %v4158_v23  ;;  %1519 = vmatmul.mubr.bf16.vlgmr.msra.gmra.mxu0 %v4270_v43  ;;  %v4301_v23 = vld [vmem:[#allocation8 + $0xf8] ss:$24 sps:$4 sm:$0xff]  }
 0x1b1   :  { %1528 = vmatpush1.bf16.msra.mxu1 %v4273_v16  ;;  %1569 = vmatpush1.bf16.msra.mxu0 %v4275_v45  ;;  %5967 = vst [vmem:[#allocation32_spill] sm:$0xff] %v4301_v23  ;;  %v4387_v45 = vld [vmem:[#allocation8 + $0x2b0] ss:$24 sps:$4 sm:$0xff]  }
 0x1b2   :  { %1529 = vmatprep.subr.bf16.mxu1 %v4279_v47  ;;  %1570 = vmatprep.subr.bf16.mxu0 %v4281_v49  ;;  %v4381_v49 = vld [vmem:[#allocation8 + $0x2b4] ss:$24 sps:$4 sm:$0xff]   ;;  %5996 = vst [vmem:[#allocation61_spill] sm:$0xff] %v4387_v45 }
 0x1b3   :  { %1559 = vmatprep.mubr.bf16.mxu1 %v4164_v27  ;;  %1600 = vmatprep.mubr.bf16.mxu0 %v4164_v27  ;;  %v4313_v27 = vld [vmem:[#allocation8 + $0xc8] ss:$24 sps:$4 sm:$0xff]   ;;  %5994 = vst [vmem:[#allocation59_spill] sm:$0xff] %v4381_v49 }
 0x1b4   :  { %5971 = vst [vmem:[#allocation36_spill] sm:$0xff] %v4313_v27 }
 0x1b5   :  { %1530 = vmatpush1.bf16.msra.mxu1 %v4287_v51  ;;  %1571 = vmatpush1.bf16.msra.mxu0 %v4289_v53  ;;  %v4375_v53 = vld [vmem:[#allocation8 + $0x2e0] ss:$24 sps:$4 sm:$0xff]  }
 0x1b6   :  { %1531 = vmatprep.subr.bf16.mxu1 %v4293_v55  ;;  %1572 = vmatprep.subr.bf16.mxu0 %v4295_v57  ;;  %v4369_v57 = vld [vmem:[#allocation8 + $0x2e4] ss:$24 sps:$4 sm:$0xff]   ;;  %5992 = vst [vmem:[#allocation57_spill] sm:$0xff] %v4375_v53 }
 0x1b7   :  { %5990 = vst [vmem:[#allocation55_spill] sm:$0xff] %v4369_v57 }
 0x1b9   :  { %1532 = vmatpush1.bf16.msra.mxu1 %v4301_v23  ;;  %1573 = vmatpush1.bf16.msra.mxu0 %v4303_v59  ;;  %v4363_v59 = vld [vmem:[#allocation8 + $0x10] ss:$24 sps:$4 sm:$0xff]  }
 0x1ba   :  { %1533 = vmatprep.subr.bf16.mxu1 %v4307_v61  ;;  %1574 = vmatprep.subr.bf16.mxu0 %v4309_v63  ;;  %v4357_v63 = vld [vmem:[#allocation8 + $0x14] ss:$24 sps:$4 sm:$0xff]   ;;  %5988 = vst [vmem:[#allocation53_spill] sm:$0xff] %v4363_v59 }
 0x1bb   :  { %5986 = vst [vmem:[#allocation51_spill] sm:$0xff] %v4357_v63 }
 0x1bd   :  { %1534 = vmatpush1.bf16.msra.mxu1 %v4313_v27  ;;  %1575 = vmatpush1.bf16.msra.mxu0 %v4315_v1  ;;  %v4351_v1 = vld [vmem:[#allocation8 + $0x40] ss:$24 sps:$4 sm:$0xff]  }
 0x1be   :  { %1535 = vmatprep.subr.bf16.mxu1 %v4319_v3  ;;  %1576 = vmatprep.subr.bf16.mxu0 %v4321_v5  ;;  %v4349_v5 = vld [vmem:[#allocation8 + $0x38] ss:$24 sps:$4 sm:$0xff]   ;;  %5984 = vst [vmem:[#allocation49_spill] sm:$0xff] %v4351_v1 }
 0x1bf   :  { %5983 = vst [vmem:[#allocation48_spill] sm:$0xff] %v4349_v5 }
 0x1c1   :  { %1536 = vmatpush1.bf16.msra.mxu1 %v4325_v7  ;;  %1577 = vmatpush1.bf16.msra.mxu0 %v4327_v9  ;;  %v4355_v9 = vld [vmem:[#allocation8 + $0xc] ss:$24 sps:$4 sm:$0xff]  }
 0x1c2   :  { %1537 = vmatprep.subr.bf16.mxu1 %v4331_v11  ;;  %1578 = vmatprep.subr.bf16.mxu0 %v4333_v17  ;;  %5985 = vst [vmem:[#allocation50_spill] sm:$0xff] %v4355_v9  ;;  %v4361_v17 = vld [vmem:[#allocation8 + $0x8] ss:$24 sps:$4 sm:$0xff]  }
 0x1c3   :  { %5987 = vst [vmem:[#allocation52_spill] sm:$0xff] %v4361_v17 }
 0x1c5   :  { %1538 = vmatpush1.bf16.msra.mxu1 %v4337_v20  ;;  %1579 = vmatpush1.bf16.msra.mxu0 %v4339_v25  ;;  %v4367_v25 = vld [vmem:[#allocation8 + $0x2dc] ss:$24 sps:$4 sm:$0xff]  }
 0x1c6   :  { %1539 = vmatprep.subr.bf16.mxu1 %v4343_v29  ;;  %1580 = vmatprep.subr.bf16.mxu0 %v4345_v35  ;;  %5989 = vst [vmem:[#allocation54_spill] sm:$0xff] %v4367_v25  ;;  %v4373_v35 = vld [vmem:[#allocation8 + $0x2d8] ss:$24 sps:$4 sm:$0xff]  }
 0x1c7   :  { %5991 = vst [vmem:[#allocation56_spill] sm:$0xff] %v4373_v35 }
 0x1c9   :  { %1540 = vmatpush1.bf16.msra.mxu1 %v4349_v5  ;;  %1581 = vmatpush1.bf16.msra.mxu0 %v4351_v1  ;;  %v4379_v1 = vld [vmem:[#allocation8 + $0x2ac] ss:$24 sps:$4 sm:$0xff]  }
 0x1ca   :  { %1541 = vmatprep.subr.bf16.mxu1 %v4355_v9  ;;  %1582 = vmatprep.subr.bf16.mxu0 %v4357_v63  ;;  %5993 = vst [vmem:[#allocation58_spill] sm:$0xff] %v4379_v1  ;;  %v4385_v63 = vld [vmem:[#allocation8 + $0x2a8] ss:$24 sps:$4 sm:$0xff]  }
 0x1cb   :  { %5995 = vst [vmem:[#allocation60_spill] sm:$0xff] %v4385_v63 }
 0x1cd   :  { %1542 = vmatpush1.bf16.msra.mxu1 %v4361_v17  ;;  %1583 = vmatpush1.bf16.msra.mxu0 %v4363_v59  ;;  %v4391_v59 = vld [vmem:[#allocation8 + $0x27c] ss:$24 sps:$4 sm:$0xff]  }
 0x1ce   :  { %1543 = vmatprep.subr.bf16.mxu1 %v4367_v25  ;;  %1584 = vmatprep.subr.bf16.mxu0 %v4369_v57  ;;  %5997 = vst [vmem:[#allocation62_spill] sm:$0xff] %v4391_v59  ;;  %v4397_v57 = vld [vmem:[#allocation8 + $0x278] ss:$24 sps:$4 sm:$0xff]  }
 0x1cf   :  { %5999 = vst [vmem:[#allocation64_spill] sm:$0xff] %v4397_v57 }
 0x1d1   :  { %1544 = vmatpush2.bf16.msra.mxu1 %v4373_v35  ;;  %1585 = vmatpush2.bf16.msra.mxu0 %v4375_v53  ;;  %v4403_v53 = vld [vmem:[#allocation8 + $0x24c] ss:$24 sps:$4 sm:$0xff]  }
 0x1d2   :  { %1545 = vmatprep.subr.bf16.mxu1 %v4379_v1  ;;  %1586 = vmatprep.subr.bf16.mxu0 %v4381_v49  ;;  %6001 = vst [vmem:[#allocation66_spill] sm:$0xff] %v4403_v53  ;;  %v4409_v49 = vld [vmem:[#allocation8 + $0x248] ss:$24 sps:$4 sm:$0xff]  }
 0x1d3   :  { %6003 = vst [vmem:[#allocation68_spill] sm:$0xff] %v4409_v49 }
 0x1d5   :  { %1546 = vmatpush2.bf16.msra.mxu1 %v4385_v63  ;;  %1587 = vmatpush2.bf16.msra.mxu0 %v4387_v45  ;;  %v4415_v45 = vld [vmem:[#allocation8 + $0x21c] ss:$24 sps:$4 sm:$0xff]  }
 0x1d6   :  { %1547 = vmatprep.subr.bf16.mxu1 %v4391_v59  ;;  %1588 = vmatprep.subr.bf16.mxu0 %v4393_v18  ;;  %6005 = vst [vmem:[#allocation70_spill] sm:$0xff] %v4415_v45  ;;  %v4421_v18 = vld [vmem:[#allocation8 + $0x218] ss:$24 sps:$4 sm:$0xff]  }
 0x1d7   :  { %6007 = vst [vmem:[#allocation72_spill] sm:$0xff] %v4421_v18 }
 0x1d9   :  { %1548 = vmatpush2.bf16.msra.mxu1 %v4397_v57  ;;  %1589 = vmatpush2.bf16.msra.mxu0 %v4399_v33  ;;  %v4427_v33 = vld [vmem:[#allocation8 + $0x1ec] ss:$24 sps:$4 sm:$0xff]  }
 0x1da   :  { %1549 = vmatprep.subr.bf16.mxu1 %v4403_v53  ;;  %1590 = vmatprep.subr.bf16.mxu0 %v4405_v14  ;;  %6009 = vst [vmem:[#allocation74_spill] sm:$0xff] %v4427_v33  ;;  %v4433_v14 = vld [vmem:[#allocation8 + $0x1e8] ss:$24 sps:$4 sm:$0xff]  }
 0x1db   :  { %6011 = vst [vmem:[#allocation76_spill] sm:$0xff] %v4433_v14 }
 0x1dd   :  { %1550 = vmatpush2.bf16.msra.mxu1 %v4409_v49  ;;  %1591 = vmatpush2.bf16.msra.mxu0 %v4411_v15  ;;  %v4439_v15 = vld [vmem:[#allocation8 + $0x1bc] ss:$24 sps:$4 sm:$0xff]  }
 0x1de   :  { %1551 = vmatprep.subr.bf16.mxu1 %v4415_v45  ;;  %1592 = vmatprep.subr.bf16.mxu0 %v4417_v24  ;;  %6012 = vst [vmem:[#allocation77_spill] sm:$0xff] %v4439_v15  ;;  %v4445_v24 = vld [vmem:[#allocation8 + $0x1b8] ss:$24 sps:$4 sm:$0xff]  }
 0x1df   :  { %6013 = vst [vmem:[#allocation78_spill] sm:$0xff] %v4445_v24 }
 0x1e1   :  { %1552 = vmatpush2.bf16.msra.mxu1 %v4421_v18  ;;  %1593 = vmatpush2.bf16.msra.mxu0 %v4423_v41  ;;  %v4451_v41 = vld [vmem:[#allocation8 + $0x18c] ss:$24 sps:$4 sm:$0xff]  }
 0x1e2   :  { %1553 = vmatprep.subr.bf16.mxu1 %v4427_v33  ;;  %1594 = vmatprep.subr.bf16.mxu0 %v4429_v37  ;;  %6014 = vst [vmem:[#allocation79_spill] sm:$0xff] %v4451_v41  ;;  %v4457_v37 = vld [vmem:[#allocation8 + $0x188] ss:$24 sps:$4 sm:$0xff]  }
 0x1e3   :  { %6015 = vst [vmem:[#allocation80_spill] sm:$0xff] %v4457_v37 }
 0x1e5   :  { %1554 = vmatpush2.bf16.msra.mxu1 %v4433_v14  ;;  %1595 = vmatpush2.bf16.msra.mxu0 %v4435_v31  ;;  %v4459_v14 = vld [vmem:[#allocation8 + $0x190] ss:$24 sps:$4 sm:$0xff]  }
 0x1e6   :  { %1555 = vmatprep.subr.bf16.mxu1 %v4439_v15  ;;  %1596 = vmatprep.subr.bf16.mxu0 %v4441_v28 }
 0x1e9   :  { %1556 = vmatpush2.bf16.msra.mxu1 %v4445_v24  ;;  %1597 = vmatpush2.bf16.msra.mxu0 %v4447_v21 }
 0x1ea   :  { %1557 = vmatprep.subr.bf16.mxu1 %v4451_v41  ;;  %1598 = vmatprep.subr.bf16.mxu0 %v4453_v19 }
 0x1ed   :  { %1558 = vmatpush2.bf16.msra.mxu1 %v4457_v37  ;;  %1599 = vmatpush2.bf16.msra.mxu0 %v4459_v14 }
 0x1ee   :  { %1666 = vmatprep.subr.bf16.mxu1 %v4138_v13  ;;  %1707 = vmatprep.subr.bf16.mxu0 %v4264_v39 }
 0x1f0   :  { %1560 = vmatmul.mubr.bf16.vlgmr.msra.gmra.mxu1 %v4270_v43  ;;  %1601 = vmatmul.mubr.bf16.vlgmr.msra.gmra.mxu0 %v4270_v43  ;;  %v6016_v43 = vld [vmem:[#allocation16_spill] sm:$0xff] }
 0x1f1   :  { %1667 = vmatpush1.bf16.msra.mxu1 %v4156_v22  ;;  %1708 = vmatpush1.bf16.msra.mxu0 %v4273_v16 }
 0x1f2   :  { %1668 = vmatprep.subr.bf16.mxu1 %v4160_v26  ;;  %1709 = vmatprep.subr.bf16.mxu0 %v4279_v47 }
 0x1f5   :  { %1669 = vmatpush1.bf16.msra.mxu1 %v4169_v30  ;;  %1710 = vmatpush1.bf16.msra.mxu0 %v4287_v51 }
 0x1f6   :  { %1670 = vmatprep.subr.bf16.mxu1 %v4171_v32  ;;  %1711 = vmatprep.subr.bf16.mxu0 %v4293_v55 }
 0x1f9   :  { %1671 = vmatpush1.bf16.msra.mxu1 %v4176_v34  ;;  %1712 = vmatpush1.bf16.msra.mxu0 %v4301_v23 }
 0x1fa   :  { %1672 = vmatprep.subr.bf16.mxu1 %v4179_v36  ;;  %1713 = vmatprep.subr.bf16.mxu0 %v4307_v61 }
 0x1fd   :  { %1673 = vmatpush1.bf16.msra.mxu1 %v4182_v38  ;;  %1714 = vmatpush1.bf16.msra.mxu0 %v4313_v27  ;;  %v6024_v27 = vld [vmem:[#allocation14_spill] sm:$0xff] }
 0x1fe   :  { %1674 = vmatprep.subr.bf16.mxu1 %v4185_v40  ;;  %1715 = vmatprep.subr.bf16.mxu0 %v4319_v3 }
 0x201   :  { %1675 = vmatpush1.bf16.msra.mxu1 %v4188_v42  ;;  %1716 = vmatpush1.bf16.msra.mxu0 %v4325_v7  ;;  %v6023_v7 = vld [vmem:[#allocation18_spill] sm:$0xff] }
 0x202   :  { %1676 = vmatprep.subr.bf16.mxu1 %v4191_v44  ;;  %1717 = vmatprep.subr.bf16.mxu0 %v4331_v11 }
 0x205   :  { %1677 = vmatpush1.bf16.msra.mxu1 %v4194_v46  ;;  %1718 = vmatpush1.bf16.msra.mxu0 %v4337_v20 }
 0x206   :  { %1678 = vmatprep.subr.bf16.mxu1 %v4197_v48  ;;  %1719 = vmatprep.subr.bf16.mxu0 %v4343_v29 }
 0x209   :  { %1679 = vmatpush1.bf16.msra.mxu1 %v4200_v50  ;;  %1720 = vmatpush1.bf16.msra.mxu0 %v4349_v5 }
 0x20a   :  { %1680 = vmatprep.subr.bf16.mxu1 %v4203_v52  ;;  %1721 = vmatprep.subr.bf16.mxu0 %v4355_v9 }
 0x20d   :  { %1681 = vmatpush1.bf16.msra.mxu1 %v4206_v54  ;;  %1722 = vmatpush1.bf16.msra.mxu0 %v4361_v17 }
 0x20e   :  { %1682 = vmatprep.subr.bf16.mxu1 %v4209_v56  ;;  %1723 = vmatprep.subr.bf16.mxu0 %v4367_v25 }
 0x211   :  { %1683 = vmatpush2.bf16.msra.mxu1 %v4212_v58  ;;  %1724 = vmatpush2.bf16.msra.mxu0 %v4373_v35 }
 0x212   :  { %1684 = vmatprep.subr.bf16.mxu1 %v4215_v60  ;;  %1725 = vmatprep.subr.bf16.mxu0 %v4379_v1 }
 0x215   :  { %1685 = vmatpush2.bf16.msra.mxu1 %v4218_v62  ;;  %1726 = vmatpush2.bf16.msra.mxu0 %v4385_v63 }
 0x216   :  { %1686 = vmatprep.subr.bf16.mxu1 %v4221_v0  ;;  %1727 = vmatprep.subr.bf16.mxu0 %v4391_v59 }
 0x219   :  { %1687 = vmatpush2.bf16.msra.mxu1 %v4224_v2  ;;  %1728 = vmatpush2.bf16.msra.mxu0 %v4397_v57  ;;  %v6017_v57 = vld [vmem:[#allocation76_spill] sm:$0xff] }
 0x21a   :  { %1688 = vmatprep.subr.bf16.mxu1 %v4227_v4  ;;  %1729 = vmatprep.subr.bf16.mxu0 %v4403_v53  ;;  %v6018_v53 = vld [vmem:[#allocation17_spill] sm:$0xff] }
 0x21d   :  { %1689 = vmatpush2.bf16.msra.mxu1 %v4230_v6  ;;  %1730 = vmatpush2.bf16.msra.mxu0 %v4409_v49  ;;  %v6019_v49 = vld [vmem:[#allocation19_spill] sm:$0xff] }
 0x21e   :  { %1690 = vmatprep.subr.bf16.mxu1 %v4233_v8  ;;  %1731 = vmatprep.subr.bf16.mxu0 %v4415_v45  ;;  %v6020_v45 = vld [vmem:[#allocation20_spill] sm:$0xff] }
 0x221   :  { %1691 = vmatpush2.bf16.msra.mxu1 %v4236_v10  ;;  %1732 = vmatpush2.bf16.msra.mxu0 %v4421_v18  ;;  %v6021_v18 = vld [vmem:[#allocation22_spill] sm:$0xff] }
 0x222   :  { %1692 = vmatprep.subr.bf16.mxu1 %v4239_v12  ;;  %1733 = vmatprep.subr.bf16.mxu0 %v4427_v33  ;;  %v6022_v33 = vld [vmem:[#allocation23_spill] sm:$0xff] }
 0x225   :  { %1693 = vmatpush2.bf16.msra.mxu1 %v6016_v43  ;;  %1734 = vmatpush2.bf16.msra.mxu0 %v6017_v57 }
 0x226   :  { %1694 = vmatprep.subr.bf16.mxu1 %v6018_v53  ;;  %1735 = vmatprep.subr.bf16.mxu0 %v4439_v15 }
 0x229   :  { %1695 = vmatpush2.bf16.msra.mxu1 %v6019_v49  ;;  %1736 = vmatpush2.bf16.msra.mxu0 %v4445_v24 }
 0x22a   :  { %1696 = vmatprep.subr.bf16.mxu1 %v6020_v45  ;;  %1737 = vmatprep.subr.bf16.mxu0 %v4451_v41 }
 0x22d   :  { %1697 = vmatpush2.bf16.msra.mxu1 %v6021_v18  ;;  %1738 = vmatpush2.bf16.msra.mxu0 %v4457_v37 }
 0x22e   :  { %1748 = vmatprep.subr.bf16.mxu1 %v6022_v33  ;;  %1867 = vmatprep.subr.bf16.mxu0 %v4138_v13  ;;  %v245_v13 = vld [vmem:[%s5695_s4] sm:$0x3f] }
 0x22f   :  { %v250_v3 = vrot.slane %v245_v13, %v6023_v7  ;;  %v254_v61 = vrot.slane %v245_v13, %v6024_v27 }
 0x230   :  { %v791_v57 = vpop.f32.mrf.mxu1  ;;  %v832_v59 = vpop.f32.mrf.mxu0 }
 0x232   :  { %v793_v63 = vpop.f32.mrf.mxu1  ;;  %v834_v15 = vpop.f32.mrf.mxu0 }
 0x234   :  { %v795_v1 = vpop.f32.mrf.mxu1  ;;  %v836_v35 = vpop.f32.mrf.mxu0 }
 0x235   :  { %v4538_v1 = vadd.f32 %v791_v57, %v250_v3 }
 0x236   :  { %v796_v25 = vpop.f32.mrf.mxu1  ;;  %v837_v24 = vpop.f32.mrf.mxu0 }
 0x237   :  { %6025 = vst [vmem:[#allocation16_spill] sm:$0xff] %v4538_v1  ;;  %v4541_v25 = vadd.f32 %v793_v63, %v254_v61 }
 0x270   :  { %v873_v17 = vpop.f32.mrf.mxu1  ;;  %v1520_v9 = vpop.f32.mrf.mxu0 }
 0x271   :  { %v1609_v24 = vadd.f32 %v1520_v9, %v4538_v1 }
 0x272   :  { %v875_v5 = vpop.f32.mrf.mxu1  ;;  %v1522_v41 = vpop.f32.mrf.mxu0 }
 0x273   :  { %v1610_v35 = vadd.f32 %v1522_v41, %v4541_v25 }
 0x274   :  { %v877_v29 = vpop.f32.mrf.mxu1  ;;  %v1524_v20 = vpop.f32.mrf.mxu0 }
 0x275   :  { %v3300_v29 = vmul.f32 -1.442695, %v1609_v24  ;;  %v3301_v20 = vmul.f32 -1.442695, %v1610_v35 }
 0x276   :  { %v878_v11 = vpop.f32.mrf.mxu1  ;;  %v1525_v37 = vpop.f32.mrf.mxu0 }
 0x277   :  { %3637 = vpow2.f32 %v3300_v29  ;;  %v6026_v37 = vld [vmem:[#allocation13_spill] sm:$0xff] }
 0x278   :  { %3639 = vpow2.f32 %v3301_v20  ;;  %v257_v11 = vsub.s32 2, %v6026_v37  ;;  %v261_v23 = vsub.s32 3, %v6026_v37 }
 0x27a   :  { %v258_v51 = vrot.slane %v245_v13, %v257_v11  ;;  %v262_v16 = vrot.slane %v245_v13, %v261_v23  ;;  %v982_v23 = vld [vmem:[%s5696_s5] sm:$0x3]  ;;  %v265_v11 = vsub.s32 4, %v6026_v37  ;;  %s4084_s5 = smov [#allocation9]  }
 0x27b   :  { %s3093_s22 = sshll.u32 %s4084_s5, 4  ;;  %s3094_s22 = int_to_ptr.vmem [resolvable:$true] %s3093_s22 }
 0x27c   :  { %v4546_v3 = vadd.f32 %v832_v59, %v258_v51  ;;  %v4548_v1 = vadd.f32 %v834_v15, %v262_v16  ;;  %v4556_v16 = vrot.slane %v982_v23, %v6023_v7  ;;  %s4049_s23 = scalar_lea.vmem %s3094_s22, 256  ;;  %p4054_p2 = scmp.lt.s32.totalorder %s3094_s22, %s3094_s22 }
 0x27d   :  { %p4050_p1 = scmp.ne.s32.totalorder %s3094_s22, %s4049_s23  ;;  %p4055_p3 = scmp.lt.s32.totalorder %s4049_s23, %s4049_s23 }
 0x27e   :  { %6027 = vst [vmem:[#allocation17_spill] sm:$0xff] %v4548_v1 }
 0x27f   :  { %p4056_p4 = por %p4055_p3, %p4054_p2 }
 0x281   :  { %p4057_p5 = pnand %p4056_p4, %p4050_p1 }
 0x284   :  { %v3638_v55 = vpop.eup %3637 }
 0x285   :  { %v3640_v47 = vpop.eup %3639  ;;  %v1617_v57 = vadd.f32 1.0, %v3638_v55 }
 0x286   :  { %v1618_v9 = vadd.f32 1.0, %v3640_v47 }
 0x287   :  { %3641 = vrcp.f32 %v1617_v57  ;;  %v4560_v57 = vrot.slane %v982_v23, %v6024_v27 }
 0x288   :  { %3643 = vrcp.f32 %v1618_v9  ;;  %v266_v9 = vrot.slane %v245_v13, %v265_v11 }
 0x2b0   :  { %v1561_v61 = vpop.f32.mrf.mxu1  ;;  %v1602_v63 = vpop.f32.mrf.mxu0 }
 0x2b1   :  { %v1623_v41 = vadd.f32 %v1561_v61, %v4546_v3  ;;  %v1648_v61 = vadd.f32 %v4556_v16, %v1602_v63 }
 0x2b2   :  { %v1563_v24 = vpop.f32.mrf.mxu1  ;;  %v1604_v35 = vpop.f32.mrf.mxu0 }
 0x2b3   :  { %v3302_v29 = vmul.f32 -1.442695, %v1623_v41  ;;  %v1624_v20 = vadd.f32 %v1563_v24, %v4548_v1  ;;  %v269_v41 = vsub.s32 5, %v6026_v37  ;;  %v3642_v24 = vpop.eup %3641 }
 0x2b4   :  { %v1565_v51 = vpop.f32.mrf.mxu1  ;;  %v1606_v55 = vpop.f32.mrf.mxu0 }
 0x2b5   :  { %3645 = vpow2.f32 %v3302_v29  ;;  %v3303_v47 = vmul.f32 -1.442695, %v1624_v20  ;;  %v1649_v29 = vadd.f32 %v4560_v57, %v1604_v35  ;;  %v1650_v20 = vmul.f32 %v3642_v24, %v1648_v61  ;;  %v3644_v55 = vpop.eup %3643  ;;  %v6028_v24 = vld [vmem:[#allocation21_spill] sm:$0xff] }
 0x2b6   :  { %v1566_v59 = vpop.f32.mrf.mxu1  ;;  %v1607_v15 = vpop.f32.mrf.mxu0  ;;  %v270_v51 = vrot.slane %v245_v13, %v269_v41 }
 0x2b7   :  { %3647 = vpow2.f32 %v3303_v47  ;;  %v4565_v59 = vadd.f32 %v873_v17, %v266_v9  ;;  %v1651_v47 = vmul.f32 %v3644_v55, %v1649_v29 }
 0x2b8   :  { %v4568_v27 = vadd.f32 %v875_v5, %v270_v51  ;;  %v6029_v5 = vld [vmem:[#allocation15_spill] sm:$0xff] }
 0x2b9   :  { %v1652_v1 = vadd.f32 %v1650_v20, %v4565_v59 }
 0x2ba   :  { %v1653_v37 = vadd.f32 %v1651_v47, %v4568_v27 }
 0x2c2   :  { %v3646_v7 = vpop.eup %3645 }
 0x2c3   :  { %v1631_v15 = vadd.f32 1.0, %v3646_v7 }
 0x2c4   :  { %v3648_v23 = vpop.eup %3647 }
 0x2c5   :  { %3649 = vrcp.f32 %v1631_v15  ;;  %v1632_v63 = vadd.f32 1.0, %v3648_v23  ;;  %v6030_v15 = vld [vmem:[#allocation25_spill] sm:$0xff]  ;;  %v6031_v23 = vld [vmem:[#allocation27_spill] sm:$0xff] }
 0x2c6   :  { %3651 = vtanh.f32 %v1652_v1 }
 0x2c7   :  { %3653 = vrcp.f32 %v1632_v63  ;;  %v6032_v63 = vld [vmem:[#allocation29_spill] sm:$0xff] }
 0x2c8   :  { %3655 = vtanh.f32 %v1653_v37  ;;  %v6033_v37 = vld [vmem:[#allocation31_spill] sm:$0xff] }
 0x2d2   :  { %v3650_v35 = vpop.eup %3649 }
 0x2d3   :  { %v1656_v13 = vsub.f32 1.0, %v3650_v35  ;;  %v3652_v11 = vpop.eup %3651  ;;  %v1660_v29 = vmul.f32 %v3650_v35, %v6028_v24  ;;  %v6034_v35 = vld [vmem:[#allocation33_spill] sm:$0xff]  ;;  %v6074_v24 = vld [vmem:[#allocation60_spill] sm:$0xff] }
 0x2d4   :  { %v3654_v17 = vpop.eup %3653 }
 0x2d5   :  { %v1658_v61 = vmul.f32 %v3652_v11, %v1656_v13  ;;  %v1657_v41 = vsub.f32 1.0, %v3654_v17  ;;  %v3656_v9 = vpop.eup %3655  ;;  %v1661_v51 = vmul.f32 %v3654_v17, %v6029_v5  ;;  %v6035_v13 = vld [vmem:[#allocation35_spill] sm:$0xff]  ;;  %v6036_v11 = vld [vmem:[#allocation37_spill] sm:$0xff]  ;;  %v6070_v17 = vld [vmem:[#allocation52_spill] sm:$0xff] }
 0x2d6   :  { %v6077_v5 = vld [vmem:[#allocation66_spill] sm:$0xff] }
 0x2d7   :  { %v1659_v20 = vmul.f32 %v3656_v9, %v1657_v41  ;;  %v4573_v55 = vadd.f32 %v1660_v29, %v1658_v61  ;;  %v6071_v61 = vld [vmem:[#allocation54_spill] sm:$0xff]  ;;  %v6072_v41 = vld [vmem:[#allocation56_spill] sm:$0xff] }
 0x2d8   :  { %v6073_v9 = vld [vmem:[#allocation58_spill] sm:$0xff] }
 0x2d9   :  { %v4575_v7 = vadd.f32 %v1661_v51, %v1659_v20  ;;  %v4581_v47 = vpack.c.bf16 %v4573_v55, %v4573_v55  ;;  %v6075_v29 = vld [vmem:[#allocation62_spill] sm:$0xff]  ;;  %v6076_v20 = vld [vmem:[#allocation64_spill] sm:$0xff] }
 0x2da   :  { %v6078_v51 = vld [vmem:[#allocation68_spill] sm:$0xff] }
 0x2db   :  { %v1665_v1 = vpack.c.bf16 %v4575_v7, %v4575_v7 }
 0x2dd   :  { %1698 = vmatprep.mubr.bf16.mxu1 %v1665_v1  ;;  %1739 = vmatprep.mubr.bf16.mxu0 %v1665_v1 }
 0x2de   :  { %1699 = vmatmul.mubr.bf16.vlgmr.msra.gmra.mxu1 %v4581_v47  ;;  %1740 = vmatmul.mubr.bf16.vlgmr.msra.gmra.mxu0 %v4581_v47 }
 0x2df   :  { %1749 = vmatpush1.bf16.msra.mxu1 %v6030_v15  ;;  %1780 = vmatprep.mubr.bf16.mxu1 %v1665_v1  ;;  %v6079_v1 = vld [vmem:[#allocation70_spill] sm:$0xff] }
 0x2e0   :  { %1750 = vmatprep.subr.bf16.mxu1 %v6031_v23  ;;  %1868 = vmatpush1.bf16.msra.mxu0 %v4156_v22  ;;  %v6037_v22 = vld [vmem:[#allocation39_spill] sm:$0xff] }
 0x2e1   :  { %1869 = vmatprep.subr.bf16.mxu0 %v4160_v26  ;;  %v6038_v26 = vld [vmem:[#allocation41_spill] sm:$0xff] }
 0x2e3   :  { %1751 = vmatpush1.bf16.msra.mxu1 %v6032_v63 }
 0x2e4   :  { %1752 = vmatprep.subr.bf16.mxu1 %v6033_v37  ;;  %1870 = vmatpush1.bf16.msra.mxu0 %v4169_v30  ;;  %v6039_v30 = vld [vmem:[#allocation43_spill] sm:$0xff] }
 0x2e5   :  { %1871 = vmatprep.subr.bf16.mxu0 %v4171_v32  ;;  %v6040_v32 = vld [vmem:[#allocation45_spill] sm:$0xff] }
 0x2e7   :  { %1753 = vmatpush1.bf16.msra.mxu1 %v6034_v35 }
 0x2e8   :  { %1754 = vmatprep.subr.bf16.mxu1 %v6035_v13  ;;  %1872 = vmatpush1.bf16.msra.mxu0 %v4176_v34  ;;  %v6041_v34 = vld [vmem:[#allocation47_spill] sm:$0xff] }
 0x2e9   :  { %1873 = vmatprep.subr.bf16.mxu0 %v4179_v36  ;;  %v6042_v36 = vld [vmem:[#allocation49_spill] sm:$0xff] }
 0x2eb   :  { %1755 = vmatpush1.bf16.msra.mxu1 %v6036_v11 }
 0x2ec   :  { %1756 = vmatprep.subr.bf16.mxu1 %v6037_v22  ;;  %1874 = vmatpush1.bf16.msra.mxu0 %v4182_v38  ;;  %v6043_v38 = vld [vmem:[#allocation51_spill] sm:$0xff] }
 0x2ed   :  { %1875 = vmatprep.subr.bf16.mxu0 %v4185_v40  ;;  %v6044_v40 = vld [vmem:[#allocation53_spill] sm:$0xff] }
 0x2ef   :  { %1757 = vmatpush1.bf16.msra.mxu1 %v6038_v26 }
 0x2f0   :  { %1758 = vmatprep.subr.bf16.mxu1 %v6039_v30  ;;  %1876 = vmatpush1.bf16.msra.mxu0 %v4188_v42  ;;  %v6045_v42 = vld [vmem:[#allocation55_spill] sm:$0xff] }
 0x2f1   :  { %1877 = vmatprep.subr.bf16.mxu0 %v4191_v44  ;;  %v6046_v44 = vld [vmem:[#allocation57_spill] sm:$0xff] }
 0x2f3   :  { %1759 = vmatpush1.bf16.msra.mxu1 %v6040_v32 }
 0x2f4   :  { %1760 = vmatprep.subr.bf16.mxu1 %v6041_v34  ;;  %1878 = vmatpush1.bf16.msra.mxu0 %v4194_v46  ;;  %v6047_v46 = vld [vmem:[#allocation59_spill] sm:$0xff] }
 0x2f5   :  { %1879 = vmatprep.subr.bf16.mxu0 %v4197_v48  ;;  %v6048_v48 = vld [vmem:[#allocation61_spill] sm:$0xff] }
 0x2f7   :  { %1761 = vmatpush1.bf16.msra.mxu1 %v6042_v36 }
 0x2f8   :  { %1762 = vmatprep.subr.bf16.mxu1 %v6043_v38  ;;  %1880 = vmatpush1.bf16.msra.mxu0 %v4200_v50  ;;  %v6049_v50 = vld [vmem:[#allocation63_spill] sm:$0xff] }
 0x2f9   :  { %1881 = vmatprep.subr.bf16.mxu0 %v4203_v52  ;;  %v6050_v52 = vld [vmem:[#allocation65_spill] sm:$0xff] }
 0x2fb   :  { %1763 = vmatpush1.bf16.msra.mxu1 %v6044_v40 }
 0x2fc   :  { %1764 = vmatprep.subr.bf16.mxu1 %v6045_v42  ;;  %1882 = vmatpush1.bf16.msra.mxu0 %v4206_v54  ;;  %v6051_v54 = vld [vmem:[#allocation67_spill] sm:$0xff] }
 0x2fd   :  { %1883 = vmatprep.subr.bf16.mxu0 %v4209_v56  ;;  %v6052_v56 = vld [vmem:[#allocation69_spill] sm:$0xff] }
 0x2ff   :  { %1765 = vmatpush2.bf16.msra.mxu1 %v6046_v44 }
 0x300   :  { %1766 = vmatprep.subr.bf16.mxu1 %v6047_v46  ;;  %1884 = vmatpush2.bf16.msra.mxu0 %v4212_v58  ;;  %v6053_v58 = vld [vmem:[#allocation71_spill] sm:$0xff] }
 0x301   :  { %1885 = vmatprep.subr.bf16.mxu0 %v4215_v60  ;;  %v6054_v60 = vld [vmem:[#allocation73_spill] sm:$0xff] }
 0x303   :  { %1767 = vmatpush2.bf16.msra.mxu1 %v6048_v48 }
 0x304   :  { %1768 = vmatprep.subr.bf16.mxu1 %v6049_v50  ;;  %1886 = vmatpush2.bf16.msra.mxu0 %v4218_v62  ;;  %v6055_v62 = vld [vmem:[#allocation75_spill] sm:$0xff] }
 0x305   :  { %1887 = vmatprep.subr.bf16.mxu0 %v4221_v0  ;;  %v6056_v0 = vld [vmem:[#allocation24_spill] sm:$0xff] }
 0x307   :  { %1769 = vmatpush2.bf16.msra.mxu1 %v6050_v52 }
 0x308   :  { %1770 = vmatprep.subr.bf16.mxu1 %v6051_v54  ;;  %1888 = vmatpush2.bf16.msra.mxu0 %v4224_v2  ;;  %v6057_v2 = vld [vmem:[#allocation26_spill] sm:$0xff] }
 0x309   :  { %1889 = vmatprep.subr.bf16.mxu0 %v4227_v4  ;;  %v6058_v4 = vld [vmem:[#allocation28_spill] sm:$0xff] }
 0x30b   :  { %1771 = vmatpush2.bf16.msra.mxu1 %v6052_v56 }
 0x30c   :  { %1772 = vmatprep.subr.bf16.mxu1 %v6053_v58  ;;  %1890 = vmatpush2.bf16.msra.mxu0 %v4230_v6  ;;  %v6059_v6 = vld [vmem:[#allocation30_spill] sm:$0xff] }
 0x30d   :  { %1891 = vmatprep.subr.bf16.mxu0 %v4233_v8  ;;  %v6060_v8 = vld [vmem:[#allocation32_spill] sm:$0xff] }
 0x30f   :  { %1773 = vmatpush2.bf16.msra.mxu1 %v6054_v60 }
 0x310   :  { %1774 = vmatprep.subr.bf16.mxu1 %v6055_v62  ;;  %1892 = vmatpush2.bf16.msra.mxu0 %v4236_v10  ;;  %v6061_v10 = vld [vmem:[#allocation34_spill] sm:$0xff] }
 0x311   :  { %1893 = vmatprep.subr.bf16.mxu0 %v4239_v12  ;;  %v6062_v12 = vld [vmem:[#allocation36_spill] sm:$0xff] }
 0x313   :  { %1775 = vmatpush2.bf16.msra.mxu1 %v4435_v31 }
 0x314   :  { %1776 = vmatprep.subr.bf16.mxu1 %v4441_v28  ;;  %1894 = vmatpush2.bf16.msra.mxu0 %v6016_v43  ;;  %v6069_v43 = vld [vmem:[#allocation50_spill] sm:$0xff] }
 0x315   :  { %1895 = vmatprep.subr.bf16.mxu0 %v6018_v53  ;;  %v6068_v53 = vld [vmem:[#allocation48_spill] sm:$0xff] }
 0x317   :  { %1777 = vmatpush2.bf16.msra.mxu1 %v4447_v21 }
 0x318   :  { %1778 = vmatprep.subr.bf16.mxu1 %v4453_v19  ;;  %1896 = vmatpush2.bf16.msra.mxu0 %v6019_v49  ;;  %v6067_v49 = vld [vmem:[#allocation46_spill] sm:$0xff] }
 0x319   :  { %1897 = vmatprep.subr.bf16.mxu0 %v6020_v45  ;;  %v6066_v45 = vld [vmem:[#allocation44_spill] sm:$0xff] }
 0x31b   :  { %1779 = vmatpush2.bf16.msra.mxu1 %v4459_v14 }
 0x31c   :  { %1908 = vmatprep.subr.bf16.mxu1 %v4264_v39  ;;  %1898 = vmatpush2.bf16.msra.mxu0 %v6021_v18  ;;  %v6063_v39 = vld [vmem:[#allocation38_spill] sm:$0xff]  ;;  %v6064_v18 = vld [vmem:[#allocation40_spill] sm:$0xff] }
 0x31d   :  { %1949 = vmatprep.subr.bf16.mxu0 %v6022_v33  ;;  %v6065_v33 = vld [vmem:[#allocation42_spill] sm:$0xff] }
 0x31e   :  { %1781 = vmatmul.mubr.bf16.vlgmr.msra.gmra.mxu1 %v4581_v47  ;;  %v6080_v47 = vld [vmem:[#allocation72_spill] sm:$0xff] }
 0x31f   :  { %1909 = vmatpush1.bf16.msra.mxu1 %v6056_v0  ;;  %v6081_v0 = vld [vmem:[#allocation74_spill] sm:$0xff] }
 0x320   :  { %1910 = vmatprep.subr.bf16.mxu1 %v6057_v2  ;;  %v6082_v2 = vld [vmem:[#allocation76_spill] sm:$0xff] }
 0x323   :  { %1911 = vmatpush1.bf16.msra.mxu1 %v6058_v4  ;;  %v6083_v4 = vld [vmem:[#allocation77_spill] sm:$0xff] }
 0x324   :  { %1912 = vmatprep.subr.bf16.mxu1 %v6059_v6  ;;  %v6084_v6 = vld [vmem:[#allocation78_spill] sm:$0xff] }
 0x327   :  { %1913 = vmatpush1.bf16.msra.mxu1 %v6060_v8  ;;  %v6085_v8 = vld [vmem:[#allocation79_spill] sm:$0xff] }
 0x328   :  { %1914 = vmatprep.subr.bf16.mxu1 %v6061_v10  ;;  %v6086_v10 = vld [vmem:[#allocation80_spill] sm:$0xff] }
 0x32b   :  { %1915 = vmatpush1.bf16.msra.mxu1 %v6062_v12 }
 0x32c   :  { %1916 = vmatprep.subr.bf16.mxu1 %v6063_v39 }
 0x32f   :  { %1917 = vmatpush1.bf16.msra.mxu1 %v6064_v18 }
 0x330   :  { %1918 = vmatprep.subr.bf16.mxu1 %v6065_v33 }
 0x333   :  { %1919 = vmatpush1.bf16.msra.mxu1 %v6066_v45 }
 0x334   :  { %1920 = vmatprep.subr.bf16.mxu1 %v6067_v49 }
 0x337   :  { %1921 = vmatpush1.bf16.msra.mxu1 %v6068_v53  ;;  %v6089_v53 = vld [vmem:[#allocation17_spill] sm:$0xff] }
 0x338   :  { %1922 = vmatprep.subr.bf16.mxu1 %v6069_v43 }
 0x33b   :  { %1923 = vmatpush1.bf16.msra.mxu1 %v6070_v17 }
 0x33c   :  { %1924 = vmatprep.subr.bf16.mxu1 %v6071_v61 }
 0x33f   :  { %1925 = vmatpush2.bf16.msra.mxu1 %v6072_v41  ;;  %v6088_v41 = vld [vmem:[#allocation16_spill] sm:$0xff] }
 0x340   :  { %1926 = vmatprep.subr.bf16.mxu1 %v6073_v9 }
 0x343   :  { %1927 = vmatpush2.bf16.msra.mxu1 %v6074_v24 }
 0x344   :  { %1928 = vmatprep.subr.bf16.mxu1 %v6075_v29 }
 0x347   :  { %1929 = vmatpush2.bf16.msra.mxu1 %v6076_v20  ;;  %v4681_v20 = vld [vmem:[#allocation8 + $0x154] ss:$24 sps:$4 sm:$0xff]  }
 0x348   :  { %1930 = vmatprep.subr.bf16.mxu1 %v6077_v5  ;;  %6087 = vst [vmem:[#allocation19_spill] sm:$0xff] %v4681_v20 }
 0x34b   :  { %1931 = vmatpush2.bf16.msra.mxu1 %v6078_v51 }
 0x34c   :  { %1932 = vmatprep.subr.bf16.mxu1 %v6079_v1 }
 0x34f   :  { %1933 = vmatpush2.bf16.msra.mxu1 %v6080_v47 }
 0x350   :  { %1934 = vmatprep.subr.bf16.mxu1 %v6081_v0 }
 0x353   :  { %1935 = vmatpush2.bf16.msra.mxu1 %v6082_v2 }
 0x354   :  { %1936 = vmatprep.subr.bf16.mxu1 %v6083_v4 }
 0x357   :  { %1937 = vmatpush2.bf16.msra.mxu1 %v6084_v6 }
 0x358   :  { %1938 = vmatprep.subr.bf16.mxu1 %v6085_v8 }
 0x35b   :  { %1939 = vmatpush2.bf16.msra.mxu1 %v6086_v10 }
 0x35c   :  { %2066 = vmatprep.subr.bf16.mxu1 %v4681_v20 }
 0x39e   :  { %v1700_v51 = vpop.f32.mrf.mxu1  ;;  %v1741_v1 = vpop.f32.mrf.mxu0 }
 0x39f   :  { %v1791_v9 = vrot.slane %v1700_v51, 7  ;;  %v1811_v17 = vrot.slane %v1741_v1, 7 }
 0x3a0   :  { %v1702_v5 = vpop.f32.mrf.mxu1  ;;  %v1743_v47 = vpop.f32.mrf.mxu0 }
 0x3a1   :  { %v1792_v4 = vrot.slane %v1702_v5, 7  ;;  %v1795_v6 = vadd.f32 %v1791_v9, %v6088_v41  ;;  %v1812_v20 = vrot.slane %v1743_v47, 7  ;;  %v1815_v43 = vadd.f32 %v1811_v17, %v4546_v3 }
 0x3a2   :  { %v1704_v29 = vpop.f32.mrf.mxu1  ;;  %v1745_v0 = vpop.f32.mrf.mxu0 }
 0x3a3   :  { %v1796_v8 = vadd.f32 %v1792_v4, %v4541_v25  ;;  %v3304_v61 = vmul.f32 -1.442695, %v1795_v6  ;;  %v1816_v49 = vadd.f32 %v1812_v20, %v6089_v53  ;;  %v3306_v29 = vmul.f32 -1.442695, %v1815_v43 }
 0x3a4   :  { %v1705_v24 = vpop.f32.mrf.mxu1  ;;  %v1746_v2 = vpop.f32.mrf.mxu0 }
 0x3a5   :  { %v3305_v10 = vmul.f32 -1.442695, %v1796_v8  ;;  %3657 = vpow2.f32 %v3304_v61  ;;  %v3307_v0 = vmul.f32 -1.442695, %v1816_v49 }
 0x3a7   :  { %3659 = vpow2.f32 %v3305_v10 }
 0x3a8   :  { %3661 = vpow2.f32 %v3306_v29 }
 0x3a9   :  { %3663 = vpow2.f32 %v3307_v0 }
 0x3b2   :  { %v3658_v24 = vpop.eup %3657 }
 0x3b3   :  { %v1803_v5 = vadd.f32 1.0, %v3658_v24 }
 0x3b4   :  { %v3660_v51 = vpop.eup %3659 }
 0x3b5   :  { %v1804_v9 = vadd.f32 1.0, %v3660_v51  ;;  %3665 = vrcp.f32 %v1803_v5  ;;  %v3662_v2 = vpop.eup %3661 }
 0x3b6   :  { %v3664_v4 = vpop.eup %3663  ;;  %v1823_v1 = vadd.f32 1.0, %v3662_v2 }
 0x3b7   :  { %3667 = vrcp.f32 %v1804_v9  ;;  %v1824_v17 = vadd.f32 1.0, %v3664_v4 }
 0x3b8   :  { %3669 = vrcp.f32 %v1823_v1  ;;  %v1850_v1 = vrot.slane %v4575_v7, 7 }
 0x3b9   :  { %3671 = vrcp.f32 %v1824_v17 }
 0x3c2   :  { %v3666_v49 = vpop.eup %3665 }
 0x3c4   :  { %v3668_v0 = vpop.eup %3667 }
 0x3c5   :  { %v3670_v2 = vpop.eup %3669 }
 0x3c6   :  { %v3672_v4 = vpop.eup %3671 }
 0x3de   :  { %v1782_v61 = vpop.f32.mrf.mxu1 }
 0x3df   :  { %v1829_v47 = vadd.f32 %v1782_v61, %v4556_v16  ;;  %v1843_v61 = vsub.f32 1.0, %v3670_v2 }
 0x3e0   :  { %v1784_v6 = vpop.f32.mrf.mxu1 }
 0x3e1   :  { %v1833_v8 = vrot.slane %v1829_v47, 7  ;;  %v1830_v43 = vadd.f32 %v1784_v6, %v4560_v57  ;;  %v1849_v47 = vrot.slane %v4573_v55, 7 }
 0x3e2   :  { %v1786_v20 = vpop.f32.mrf.mxu1 }
 0x3e3   :  { %v1837_v10 = vmul.f32 %v3666_v49, %v1833_v8  ;;  %v1834_v29 = vrot.slane %v1830_v43, 7  ;;  %v1844_v20 = vsub.f32 1.0, %v3672_v4  ;;  %v1853_v43 = vmul.f32 %v3670_v2, %v1849_v47  ;;  %v4708_v2 = vld [vmem:[#allocation8 + $0x150] ss:$24 sps:$4 sm:$0xff]   ;;  %v4727_v47 = vld [vmem:[#allocation8 + $0xc4] ss:$24 sps:$4 sm:$0xff]  }
 0x3e4   :  { %v1787_v24 = vpop.f32.mrf.mxu1 }
 0x3e5   :  { %v1839_v51 = vadd.f32 %v1837_v10, %v4565_v59  ;;  %v1838_v5 = vmul.f32 %v3668_v0, %v1834_v29  ;;  %v1854_v24 = vmul.f32 %v3672_v4, %v1850_v1  ;;  %v4711_v4 = vld [vmem:[#allocation8 + $0x124] ss:$24 sps:$4 sm:$0xff]   ;;  %v4849_v1 = vld [vmem:[#allocation8 + $0xf8] ss:$24 sps:$4 sm:$0xff]  }
 0x3e6   :  { %6106 = vst [vmem:[#allocation41_spill] sm:$0xff] %v4849_v1 }
 0x3e7   :  { %3673 = vtanh.f32 %v1839_v51  ;;  %v1840_v9 = vadd.f32 %v1838_v5, %v4568_v27 }
 0x3e9   :  { %3675 = vtanh.f32 %v1840_v9 }
 0x3f4   :  { %v3674_v6 = vpop.eup %3673 }
 0x3f5   :  { %v1845_v8 = vmul.f32 %v3674_v6, %v1843_v61  ;;  %v4716_v61 = vld [vmem:[#allocation8 + $0x120] ss:$24 sps:$4 sm:$0xff]   ;;  %v4840_v6 = vld [vmem:[#allocation8 + $0x12c] ss:$24 sps:$4 sm:$0xff]  }
 0x3f6   :  { %v3676_v49 = vpop.eup %3675  ;;  %6103 = vst [vmem:[#allocation35_spill] sm:$0xff] %v4840_v6 }
 0x3f7   :  { %v1846_v17 = vmul.f32 %v3676_v49, %v1844_v20  ;;  %v4694_v10 = vadd.f32 %v1853_v43, %v1845_v8  ;;  %v4846_v20 = vld [vmem:[#allocation8 + $0xfc] ss:$24 sps:$4 sm:$0xff]   ;;  %v4852_v8 = vld [vmem:[#allocation8 + $0xcc] ss:$24 sps:$4 sm:$0xff]  }
 0x3f8   :  { %6105 = vst [vmem:[#allocation39_spill] sm:$0xff] %v4846_v20  ;;  %6107 = vst [vmem:[#allocation43_spill] sm:$0xff] %v4852_v8  ;;  %v6108_v43 = vld [vmem:[#allocation46_spill] sm:$0xff]  ;;  %v6109_v49 = vld [vmem:[#allocation48_spill] sm:$0xff] }
 0x3f9   :  { %v4696_v29 = vadd.f32 %v1854_v24, %v1846_v17  ;;  %v1857_v0 = vpack.c.bf16 %v4694_v10, %v4694_v10  ;;  %v6110_v17 = vld [vmem:[#allocation50_spill] sm:$0xff]  ;;  %v6111_v24 = vld [vmem:[#allocation52_spill] sm:$0xff] }
 0x3fb   :  { %v1858_v51 = vpack.c.bf16 %v4696_v29, %v4696_v29  ;;  %v4702_v9 = vshrl.u32 %v1857_v0, 16  ;;  %v6112_v0 = vld [vmem:[#allocation54_spill] sm:$0xff] }
 0x3fd   :  { %v1863_v5 = vshrl.u32 %v1858_v51, 16  ;;  %v6113_v51 = vld [vmem:[#allocation56_spill] sm:$0xff] }
 0x3ff   :  { %1899 = vmatprep.mubr.bf16.mxu0 %v1863_v5  ;;  %1940 = vmatprep.mubr.bf16.mxu1 %v1863_v5 }
 0x400   :  { %1900 = vmatmul.mubr.bf16.vlgmr.msra.gmra.mxu0 %v4702_v9  ;;  %1941 = vmatmul.mubr.bf16.vlgmr.msra.gmra.mxu1 %v4702_v9 }
 0x401   :  { %1950 = vmatpush1.bf16.msra.mxu0 %v6030_v15  ;;  %1981 = vmatprep.mubr.bf16.mxu0 %v1863_v5  ;;  %v4719_v15 = vld [vmem:[#allocation8 + $0xf4] ss:$24 sps:$4 sm:$0xff]  }
 0x402   :  { %1951 = vmatprep.subr.bf16.mxu0 %v6031_v23  ;;  %2067 = vmatpush1.bf16.msra.mxu1 %v4708_v2  ;;  %v4724_v23 = vld [vmem:[#allocation8 + $0xf0] ss:$24 sps:$4 sm:$0xff]  }
 0x403   :  { %2068 = vmatprep.subr.bf16.mxu1 %v4711_v4  ;;  %v6119_v5 = vld [vmem:[#allocation68_spill] sm:$0xff] }
 0x405   :  { %1952 = vmatpush1.bf16.msra.mxu0 %v6032_v63  ;;  %v4732_v63 = vld [vmem:[#allocation8 + $0xc0] ss:$24 sps:$4 sm:$0xff]  }
 0x406   :  { %1953 = vmatprep.subr.bf16.mxu0 %v6033_v37  ;;  %2069 = vmatpush1.bf16.msra.mxu1 %v4716_v61  ;;  %v4735_v37 = vld [vmem:[#allocation8 + $0x94] ss:$24 sps:$4 sm:$0xff]  }
 0x407   :  { %2070 = vmatprep.subr.bf16.mxu1 %v4719_v15 }
 0x409   :  { %1954 = vmatpush1.bf16.msra.mxu0 %v6034_v35  ;;  %v4740_v35 = vld [vmem:[#allocation8 + $0x90] ss:$24 sps:$4 sm:$0xff]  }
 0x40a   :  { %1955 = vmatprep.subr.bf16.mxu0 %v6035_v13  ;;  %2071 = vmatpush1.bf16.msra.mxu1 %v4724_v23  ;;  %v4743_v13 = vld [vmem:[#allocation8 + $0x64] ss:$24 sps:$4 sm:$0xff]  }
 0x40b   :  { %2072 = vmatprep.subr.bf16.mxu1 %v4727_v47 }
 0x40d   :  { %1956 = vmatpush1.bf16.msra.mxu0 %v6036_v11  ;;  %v4748_v11 = vld [vmem:[#allocation8 + $0x60] ss:$24 sps:$4 sm:$0xff]  }
 0x40e   :  { %1957 = vmatprep.subr.bf16.mxu0 %v6037_v22  ;;  %2073 = vmatpush1.bf16.msra.mxu1 %v4732_v63  ;;  %v4751_v22 = vld [vmem:[#allocation8 + $0x34] ss:$24 sps:$4 sm:$0xff]  }
 0x40f   :  { %2074 = vmatprep.subr.bf16.mxu1 %v4735_v37 }
 0x411   :  { %1958 = vmatpush1.bf16.msra.mxu0 %v6038_v26  ;;  %v4756_v26 = vld [vmem:[#allocation8 + $0x30] ss:$24 sps:$4 sm:$0xff]  }
 0x412   :  { %1959 = vmatprep.subr.bf16.mxu0 %v6039_v30  ;;  %2075 = vmatpush1.bf16.msra.mxu1 %v4740_v35  ;;  %v4759_v30 = vld [vmem:[#allocation8 + $0x4] ss:$24 sps:$4 sm:$0xff]  }
 0x413   :  { %2076 = vmatprep.subr.bf16.mxu1 %v4743_v13 }
 0x415   :  { %1960 = vmatpush1.bf16.msra.mxu0 %v6040_v32  ;;  %v4764_v32 = vld [vmem:[#allocation8] ss:$24 sps:$4 sm:$0xff]  }
 0x416   :  { %1961 = vmatprep.subr.bf16.mxu0 %v6041_v34  ;;  %2077 = vmatpush1.bf16.msra.mxu1 %v4748_v11  ;;  %v4767_v34 = vld [vmem:[#allocation8 + $0x2d4] ss:$24 sps:$4 sm:$0xff]  }
 0x417   :  { %2078 = vmatprep.subr.bf16.mxu1 %v4751_v22 }
 0x419   :  { %1962 = vmatpush1.bf16.msra.mxu0 %v6042_v36  ;;  %v4772_v36 = vld [vmem:[#allocation8 + $0x2d0] ss:$24 sps:$4 sm:$0xff]  }
 0x41a   :  { %1963 = vmatprep.subr.bf16.mxu0 %v6043_v38  ;;  %2079 = vmatpush1.bf16.msra.mxu1 %v4756_v26  ;;  %v4775_v38 = vld [vmem:[#allocation8 + $0x2a4] ss:$24 sps:$4 sm:$0xff]  }
 0x41b   :  { %2080 = vmatprep.subr.bf16.mxu1 %v4759_v30 }
 0x41d   :  { %1964 = vmatpush1.bf16.msra.mxu0 %v6044_v40  ;;  %v4780_v40 = vld [vmem:[#allocation8 + $0x2a0] ss:$24 sps:$4 sm:$0xff]  }
 0x41e   :  { %1965 = vmatprep.subr.bf16.mxu0 %v6045_v42  ;;  %2081 = vmatpush1.bf16.msra.mxu1 %v4764_v32  ;;  %v4783_v42 = vld [vmem:[#allocation8 + $0x274] ss:$24 sps:$4 sm:$0xff]  }
 0x41f   :  { %2082 = vmatprep.subr.bf16.mxu1 %v4767_v34 }
 0x421   :  { %1966 = vmatpush2.bf16.msra.mxu0 %v6046_v44  ;;  %v4788_v44 = vld [vmem:[#allocation8 + $0x270] ss:$24 sps:$4 sm:$0xff]  }
 0x422   :  { %1967 = vmatprep.subr.bf16.mxu0 %v6047_v46  ;;  %2083 = vmatpush2.bf16.msra.mxu1 %v4772_v36  ;;  %v4791_v46 = vld [vmem:[#allocation8 + $0x244] ss:$24 sps:$4 sm:$0xff]  }
 0x423   :  { %2084 = vmatprep.subr.bf16.mxu1 %v4775_v38  ;;  %6090 = vst [vmem:[#allocation20_spill] sm:$0xff] %v4791_v46 }
 0x425   :  { %1968 = vmatpush2.bf16.msra.mxu0 %v6048_v48  ;;  %v4796_v48 = vld [vmem:[#allocation8 + $0x240] ss:$24 sps:$4 sm:$0xff]  }
 0x426   :  { %1969 = vmatprep.subr.bf16.mxu0 %v6049_v50  ;;  %2085 = vmatpush2.bf16.msra.mxu1 %v4780_v40  ;;  %6091 = vst [vmem:[#allocation22_spill] sm:$0xff] %v4796_v48  ;;  %v4799_v50 = vld [vmem:[#allocation8 + $0x214] ss:$24 sps:$4 sm:$0xff]  }
 0x427   :  { %2086 = vmatprep.subr.bf16.mxu1 %v4783_v42  ;;  %6092 = vst [vmem:[#allocation23_spill] sm:$0xff] %v4799_v50 }
 0x429   :  { %1970 = vmatpush2.bf16.msra.mxu0 %v6050_v52  ;;  %v4804_v52 = vld [vmem:[#allocation8 + $0x210] ss:$24 sps:$4 sm:$0xff]  }
 0x42a   :  { %1971 = vmatprep.subr.bf16.mxu0 %v6051_v54  ;;  %2087 = vmatpush2.bf16.msra.mxu1 %v4788_v44  ;;  %6093 = vst [vmem:[#allocation18_spill] sm:$0xff] %v4804_v52  ;;  %v4807_v54 = vld [vmem:[#allocation8 + $0x1e4] ss:$24 sps:$4 sm:$0xff]  }
 0x42b   :  { %2088 = vmatprep.subr.bf16.mxu1 %v4791_v46  ;;  %6094 = vst [vmem:[#allocation14_spill] sm:$0xff] %v4807_v54 }
 0x42d   :  { %1972 = vmatpush2.bf16.msra.mxu0 %v6052_v56  ;;  %v4812_v56 = vld [vmem:[#allocation8 + $0x1e0] ss:$24 sps:$4 sm:$0xff]  }
 0x42e   :  { %1973 = vmatprep.subr.bf16.mxu0 %v6053_v58  ;;  %2089 = vmatpush2.bf16.msra.mxu1 %v4796_v48  ;;  %6095 = vst [vmem:[#allocation13_spill] sm:$0xff] %v4812_v56  ;;  %v4815_v58 = vld [vmem:[#allocation8 + $0x1b4] ss:$24 sps:$4 sm:$0xff]  }
 0x42f   :  { %2090 = vmatprep.subr.bf16.mxu1 %v4799_v50  ;;  %6096 = vst [vmem:[#allocation21_spill] sm:$0xff] %v4815_v58 }
 0x431   :  { %1974 = vmatpush2.bf16.msra.mxu0 %v6054_v60  ;;  %v4820_v60 = vld [vmem:[#allocation8 + $0x1b0] ss:$24 sps:$4 sm:$0xff]  }
 0x432   :  { %1975 = vmatprep.subr.bf16.mxu0 %v6055_v62  ;;  %2091 = vmatpush2.bf16.msra.mxu1 %v4804_v52  ;;  %6097 = vst [vmem:[#allocation15_spill] sm:$0xff] %v4820_v60  ;;  %v4823_v62 = vld [vmem:[#allocation8 + $0x184] ss:$24 sps:$4 sm:$0xff]  }
 0x433   :  { %2092 = vmatprep.subr.bf16.mxu1 %v4807_v54  ;;  %6098 = vst [vmem:[#allocation25_spill] sm:$0xff] %v4823_v62 }
 0x435   :  { %1976 = vmatpush2.bf16.msra.mxu0 %v4435_v31  ;;  %v4830_v31 = vld [vmem:[#allocation8 + $0x180] ss:$24 sps:$4 sm:$0xff]  }
 0x436   :  { %1977 = vmatprep.subr.bf16.mxu0 %v4441_v28  ;;  %2093 = vmatpush2.bf16.msra.mxu1 %v4812_v56  ;;  %v4827_v28 = vld [vmem:[#allocation8 + $0x15c] ss:$24 sps:$4 sm:$0xff]   ;;  %6100 = vst [vmem:[#allocation29_spill] sm:$0xff] %v4830_v31 }
 0x437   :  { %2094 = vmatprep.subr.bf16.mxu1 %v4815_v58  ;;  %6099 = vst [vmem:[#allocation27_spill] sm:$0xff] %v4827_v28 }
 0x439   :  { %1978 = vmatpush2.bf16.msra.mxu0 %v4447_v21  ;;  %v4833_v21 = vld [vmem:[#allocation8 + $0x164] ss:$24 sps:$4 sm:$0xff]  }
 0x43a   :  { %1979 = vmatprep.subr.bf16.mxu0 %v4453_v19  ;;  %2095 = vmatpush2.bf16.msra.mxu1 %v4820_v60  ;;  %6101 = vst [vmem:[#allocation31_spill] sm:$0xff] %v4833_v21  ;;  %v4837_v19 = vld [vmem:[#allocation8 + $0x158] ss:$24 sps:$4 sm:$0xff]  }
 0x43b   :  { %2096 = vmatprep.subr.bf16.mxu1 %v4823_v62  ;;  %6102 = vst [vmem:[#allocation33_spill] sm:$0xff] %v4837_v19 }
 0x43d   :  { %1980 = vmatpush2.bf16.msra.mxu0 %v4459_v14  ;;  %v4843_v14 = vld [vmem:[#allocation8 + $0x128] ss:$24 sps:$4 sm:$0xff]  }
 0x43e   :  { %2107 = vmatprep.subr.bf16.mxu0 %v4827_v28  ;;  %2097 = vmatpush2.bf16.msra.mxu1 %v4830_v31  ;;  %6104 = vst [vmem:[#allocation37_spill] sm:$0xff] %v4843_v14 }
 0x43f   :  { %2148 = vmatprep.subr.bf16.mxu1 %v4833_v21 }
 0x440   :  { %1982 = vmatmul.mubr.bf16.vlgmr.msra.gmra.mxu0 %v4702_v9  ;;  %v6120_v9 = vld [vmem:[#allocation70_spill] sm:$0xff] }
 0x441   :  { %2108 = vmatpush1.bf16.msra.mxu0 %v4837_v19 }
 0x442   :  { %2109 = vmatprep.subr.bf16.mxu0 %v4840_v6 }
 0x445   :  { %2110 = vmatpush1.bf16.msra.mxu0 %v4843_v14 }
 0x446   :  { %2111 = vmatprep.subr.bf16.mxu0 %v4846_v20 }
 0x449   :  { %2112 = vmatpush1.bf16.msra.mxu0 %v4849_v1 }
 0x44a   :  { %2113 = vmatprep.subr.bf16.mxu0 %v4852_v8 }
 0x44d   :  { %2114 = vmatpush1.bf16.msra.mxu0 %v6062_v12  ;;  %v6114_v12 = vld [vmem:[#allocation58_spill] sm:$0xff] }
 0x44e   :  { %2115 = vmatprep.subr.bf16.mxu0 %v6063_v39  ;;  %v6115_v39 = vld [vmem:[#allocation60_spill] sm:$0xff] }
 0x451   :  { %2116 = vmatpush1.bf16.msra.mxu0 %v6064_v18  ;;  %v6116_v18 = vld [vmem:[#allocation62_spill] sm:$0xff] }
 0x452   :  { %2117 = vmatprep.subr.bf16.mxu0 %v6065_v33  ;;  %v6117_v33 = vld [vmem:[#allocation64_spill] sm:$0xff] }
 0x455   :  { %2118 = vmatpush1.bf16.msra.mxu0 %v6066_v45  ;;  %v6118_v45 = vld [vmem:[#allocation66_spill] sm:$0xff] }
 0x456   :  { %2119 = vmatprep.subr.bf16.mxu0 %v6108_v43  ;;  %v6121_v43 = vld [vmem:[#allocation72_spill] sm:$0xff] }
 0x459   :  { %2120 = vmatpush1.bf16.msra.mxu0 %v6109_v49  ;;  %v6122_v49 = vld [vmem:[#allocation74_spill] sm:$0xff] }
 0x45a   :  { %2121 = vmatprep.subr.bf16.mxu0 %v6110_v17  ;;  %v6123_v17 = vld [vmem:[#allocation76_spill] sm:$0xff] }
 0x45d   :  { %2122 = vmatpush1.bf16.msra.mxu0 %v6111_v24  ;;  %v6124_v24 = vld [vmem:[#allocation77_spill] sm:$0xff] }
 0x45e   :  { %2123 = vmatprep.subr.bf16.mxu0 %v6112_v0  ;;  %v6125_v0 = vld [vmem:[#allocation78_spill] sm:$0xff] }
 0x461   :  { %2124 = vmatpush2.bf16.msra.mxu0 %v6113_v51  ;;  %v6126_v51 = vld [vmem:[#allocation79_spill] sm:$0xff] }
 0x462   :  { %2125 = vmatprep.subr.bf16.mxu0 %v6114_v12  ;;  %v6127_v12 = vld [vmem:[#allocation80_spill] sm:$0xff] }
 0x465   :  { %2126 = vmatpush2.bf16.msra.mxu0 %v6115_v39  ;;  %v6128_v39 = vld [vmem:[#allocation19_spill] sm:$0xff] }
 0x466   :  { %2127 = vmatprep.subr.bf16.mxu0 %v6116_v18 }
 0x469   :  { %2128 = vmatpush2.bf16.msra.mxu0 %v6117_v33 }
 0x46a   :  { %2129 = vmatprep.subr.bf16.mxu0 %v6118_v45 }
 0x46d   :  { %2130 = vmatpush2.bf16.msra.mxu0 %v6119_v5 }
 0x46e   :  { %2131 = vmatprep.subr.bf16.mxu0 %v6120_v9 }
 0x471   :  { %2132 = vmatpush2.bf16.msra.mxu0 %v6121_v43 }
 0x472   :  { %2133 = vmatprep.subr.bf16.mxu0 %v6122_v49 }
 0x475   :  { %2134 = vmatpush2.bf16.msra.mxu0 %v6123_v17 }
 0x476   :  { %2135 = vmatprep.subr.bf16.mxu0 %v6124_v24 }
 0x479   :  { %2136 = vmatpush2.bf16.msra.mxu0 %v6125_v0 }
 0x47a   :  { %2137 = vmatprep.subr.bf16.mxu0 %v6126_v51 }
 0x47d   :  { %2138 = vmatpush2.bf16.msra.mxu0 %v6127_v12 }
 0x47e   :  { %2269 = vmatprep.subr.bf16.mxu0 %v6128_v39 }
 0x4c0   :  { %v1901_v18 = vpop.f32.mrf.mxu0  ;;  %v1942_v33 = vpop.f32.mrf.mxu1 }
 0x4c1   :  { %v1992_v1 = vrot.slane %v1901_v18, 6  ;;  %v2012_v12 = vrot.slane %v1942_v33, 6 }
 0x4c2   :  { %v1903_v45 = vpop.f32.mrf.mxu0  ;;  %v1944_v5 = vpop.f32.mrf.mxu1 }
 0x4c3   :  { %v1993_v17 = vrot.slane %v1903_v45, 6  ;;  %v1996_v24 = vadd.f32 %v1992_v1, %v6088_v41  ;;  %v2013_v39 = vrot.slane %v1944_v5, 6  ;;  %v2016_v14 = vadd.f32 %v2012_v12, %v4546_v3 }
 0x4c4   :  { %v1905_v9 = vpop.f32.mrf.mxu0  ;;  %v1946_v43 = vpop.f32.mrf.mxu1 }
 0x4c5   :  { %v1997_v0 = vadd.f32 %v1993_v17, %v4541_v25  ;;  %v3308_v20 = vmul.f32 -1.442695, %v1996_v24  ;;  %v2017_v6 = vadd.f32 %v2013_v39, %v6089_v53  ;;  %v3310_v9 = vmul.f32 -1.442695, %v2016_v14 }
 0x4c6   :  { %v1906_v8 = vpop.f32.mrf.mxu0  ;;  %v1947_v49 = vpop.f32.mrf.mxu1 }
 0x4c7   :  { %v3309_v51 = vmul.f32 -1.442695, %v1997_v0  ;;  %3677 = vpow2.f32 %v3308_v20  ;;  %v3311_v43 = vmul.f32 -1.442695, %v2017_v6 }
 0x4c9   :  { %3679 = vpow2.f32 %v3309_v51 }
 0x4ca   :  { %3681 = vpow2.f32 %v3310_v9 }
 0x4cb   :  { %3683 = vpow2.f32 %v3311_v43 }
 0x4d4   :  { %v3678_v8 = vpop.eup %3677 }
 0x4d5   :  { %v2004_v45 = vadd.f32 1.0, %v3678_v8 }
 0x4d6   :  { %v3680_v18 = vpop.eup %3679 }
 0x4d7   :  { %v2005_v1 = vadd.f32 1.0, %v3680_v18  ;;  %3685 = vrcp.f32 %v2004_v45  ;;  %v3682_v49 = vpop.eup %3681 }
 0x4d8   :  { %v3684_v17 = vpop.eup %3683  ;;  %v2024_v33 = vadd.f32 1.0, %v3682_v49 }
 0x4d9   :  { %3687 = vrcp.f32 %v2005_v1  ;;  %v2025_v0 = vadd.f32 1.0, %v3684_v17 }
 0x4da   :  { %3689 = vrcp.f32 %v2024_v33 }
 0x4db   :  { %3691 = vrcp.f32 %v2025_v0 }
 0x4e4   :  { %v3686_v6 = vpop.eup %3685 }
 0x4e6   :  { %v3688_v43 = vpop.eup %3687 }
 0x4e7   :  { %v3690_v49 = vpop.eup %3689 }
 0x4e8   :  { %v3692_v17 = vpop.eup %3691 }
 0x4e9   :  { %v2045_v33 = vsub.f32 1.0, %v3692_v17 }
 0x500   :  { %v1983_v20 = vpop.f32.mrf.mxu0 }
 0x501   :  { %v2030_v5 = vadd.f32 %v1983_v20, %v4556_v16  ;;  %v2044_v20 = vsub.f32 1.0, %v3690_v49 }
 0x502   :  { %v1985_v24 = vpop.f32.mrf.mxu0 }
 0x503   :  { %v2034_v51 = vrot.slane %v2030_v5, 6  ;;  %v2031_v14 = vadd.f32 %v1985_v24, %v4560_v57  ;;  %v2050_v5 = vrot.slane %v4694_v10, 7 }
 0x504   :  { %v1987_v39 = vpop.f32.mrf.mxu0 }
 0x505   :  { %v2038_v12 = vmul.f32 %v3686_v6, %v2034_v51  ;;  %v2035_v9 = vrot.slane %v2031_v14, 6  ;;  %v2051_v51 = vrot.slane %v4696_v29, 7  ;;  %v2054_v6 = vmul.f32 %v3690_v49, %v2050_v5 }
 0x506   :  { %v1988_v8 = vpop.f32.mrf.mxu0 }
 0x507   :  { %v2040_v18 = vadd.f32 %v2038_v12, %v4565_v59  ;;  %v2039_v45 = vmul.f32 %v3688_v43, %v2035_v9  ;;  %v2055_v12 = vmul.f32 %v3692_v17, %v2051_v51  ;;  %v3062_v43 = vsel %vm3061_vm2, %v4573_v55, %v4694_v10  ;;  %v4913_v55 = vld [vmem:[#allocation8 + $0x160] ss:$24 sps:$4 sm:$0xff]   ;;  %v4921_v10 = vld [vmem:[#allocation8 + $0x130] ss:$24 sps:$4 sm:$0xff]  }
 0x508   :  { %v4937_v51 = vld [vmem:[#allocation8 + $0xd0] ss:$24 sps:$4 sm:$0xff]  }
 0x509   :  { %3693 = vtanh.f32 %v2040_v18  ;;  %v2041_v1 = vadd.f32 %v2039_v45, %v4568_v27  ;;  %v3063_v45 = vsel %vm3061_vm2, %v4575_v7, %v4696_v29  ;;  %v4916_v7 = vld [vmem:[#allocation8 + $0x134] ss:$24 sps:$4 sm:$0xff]   ;;  %v4924_v29 = vld [vmem:[#allocation8 + $0x104] ss:$24 sps:$4 sm:$0xff]  }
 0x50b   :  { %3695 = vtanh.f32 %v2041_v1 }
 0x516   :  { %v3694_v24 = vpop.eup %3693 }
 0x517   :  { %v2046_v14 = vmul.f32 %v3694_v24, %v2044_v20  ;;  %v4929_v24 = vld [vmem:[#allocation8 + $0x100] ss:$24 sps:$4 sm:$0xff]  }
 0x518   :  { %v3696_v0 = vpop.eup %3695 }
 0x519   :  { %v2047_v39 = vmul.f32 %v3696_v0, %v2045_v33  ;;  %v4891_v9 = vadd.f32 %v2054_v6, %v2046_v14  ;;  %v4932_v33 = vld [vmem:[#allocation8 + $0xd4] ss:$24 sps:$4 sm:$0xff]   ;;  %v4940_v14 = vld [vmem:[#allocation8 + $0xa4] ss:$24 sps:$4 sm:$0xff]   ;;  %v4945_v6 = vld [vmem:[#allocation8 + $0xa0] ss:$24 sps:$4 sm:$0xff]  }
 0x51a   :  { %v4948_v0 = vld [vmem:[#allocation8 + $0x74] ss:$24 sps:$4 sm:$0xff]  }
 0x51b   :  { %v4895_v8 = vadd.f32 %v2055_v12, %v2047_v39  ;;  %v4898_v18 = vsel %vm3064_vm3, %v3062_v43, %v4891_v9  ;;  %v2058_v1 = vpack.c.bf16 %v4891_v9, %v4891_v9  ;;  %v4953_v39 = vld [vmem:[#allocation8 + $0x70] ss:$24 sps:$4 sm:$0xff]   ;;  %v4956_v12 = vld [vmem:[#allocation8 + $0x44] ss:$24 sps:$4 sm:$0xff]   ;;  %v4961_v43 = vld [vmem:[#allocation8 + $0x40] ss:$24 sps:$4 sm:$0xff]  }
 0x51d   :  { %v2059_v49 = vpack.c.bf16 %v4895_v8, %v4895_v8  ;;  %v4907_v17 = vsel %vm3064_vm3, %v3063_v45, %v4895_v8  ;;  %v4909_v5 = vrot.slane %v2058_v1, 1  ;;  %v4964_v45 = vld [vmem:[#allocation8 + $0x14] ss:$24 sps:$4 sm:$0xff]   ;;  %v4969_v1 = vld [vmem:[#allocation8 + $0x10] ss:$24 sps:$4 sm:$0xff]  }
 0x51e   :  { %6129 = vst [vmem:[#allocation45_spill] sm:$0xff] %v4964_v45  ;;  %6130 = vst [vmem:[#allocation47_spill] sm:$0xff] %v4969_v1 }
 0x51f   :  { %v2063_v20 = vrot.slane %v2059_v49, 1  ;;  %v4972_v49 = vld [vmem:[#allocation8 + $0x2e4] ss:$24 sps:$4 sm:$0xff]  }
 0x520   :  { %6131 = vst [vmem:[#allocation49_spill] sm:$0xff] %v4972_v49 }
 0x521   :  { %2098 = vmatprep.mubr.bf16.mxu1 %v2063_v20  ;;  %2139 = vmatprep.mubr.bf16.mxu0 %v2063_v20 }
 0x522   :  { %2099 = vmatmul.mubr.bf16.vlgmr.msra.gmra.mxu1 %v4909_v5  ;;  %2140 = vmatmul.mubr.bf16.vlgmr.msra.gmra.mxu0 %v4909_v5 }
 0x523   :  { %2149 = vmatpush1.bf16.msra.mxu1 %v4913_v55  ;;  %2180 = vmatprep.mubr.bf16.mxu1 %v2063_v20  ;;  %v4977_v20 = vld [vmem:[#allocation8 + $0x2e0] ss:$24 sps:$4 sm:$0xff]  }
 0x524   :  { %2150 = vmatprep.subr.bf16.mxu1 %v4916_v7  ;;  %2270 = vmatpush1.bf16.msra.mxu0 %v4708_v2  ;;  %6132 = vst [vmem:[#allocation51_spill] sm:$0xff] %v4977_v20 }
 0x525   :  { %2271 = vmatprep.subr.bf16.mxu0 %v4711_v4 }
 0x527   :  { %2151 = vmatpush1.bf16.msra.mxu1 %v4921_v10 }
 0x528   :  { %2152 = vmatprep.subr.bf16.mxu1 %v4924_v29  ;;  %2272 = vmatpush1.bf16.msra.mxu0 %v4716_v61 }
 0x529   :  { %2273 = vmatprep.subr.bf16.mxu0 %v4719_v15 }
 0x52b   :  { %2153 = vmatpush1.bf16.msra.mxu1 %v4929_v24 }
 0x52c   :  { %2154 = vmatprep.subr.bf16.mxu1 %v4932_v33  ;;  %2274 = vmatpush1.bf16.msra.mxu0 %v4724_v23 }
 0x52d   :  { %2275 = vmatprep.subr.bf16.mxu0 %v4727_v47 }
 0x52f   :  { %2155 = vmatpush1.bf16.msra.mxu1 %v4937_v51 }
 0x530   :  { %2156 = vmatprep.subr.bf16.mxu1 %v4940_v14  ;;  %2276 = vmatpush1.bf16.msra.mxu0 %v4732_v63 }
 0x531   :  { %2277 = vmatprep.subr.bf16.mxu0 %v4735_v37 }
 0x533   :  { %2157 = vmatpush1.bf16.msra.mxu1 %v4945_v6 }
 0x534   :  { %2158 = vmatprep.subr.bf16.mxu1 %v4948_v0  ;;  %2278 = vmatpush1.bf16.msra.mxu0 %v4740_v35 }
 0x535   :  { %2279 = vmatprep.subr.bf16.mxu0 %v4743_v13 }
 0x537   :  { %2159 = vmatpush1.bf16.msra.mxu1 %v4953_v39 }
 0x538   :  { %2160 = vmatprep.subr.bf16.mxu1 %v4956_v12  ;;  %2280 = vmatpush1.bf16.msra.mxu0 %v4748_v11 }
 0x539   :  { %2281 = vmatprep.subr.bf16.mxu0 %v4751_v22 }
 0x53b   :  { %2161 = vmatpush1.bf16.msra.mxu1 %v4961_v43 }
 0x53c   :  { %2162 = vmatprep.subr.bf16.mxu1 %v4964_v45  ;;  %2282 = vmatpush1.bf16.msra.mxu0 %v4756_v26  ;;  %v4980_v45 = vld [vmem:[#allocation8 + $0x2b4] ss:$24 sps:$4 sm:$0xff]  }
 0x53d   :  { %2283 = vmatprep.subr.bf16.mxu0 %v4759_v30  ;;  %6133 = vst [vmem:[#allocation53_spill] sm:$0xff] %v4980_v45 }
 0x53f   :  { %2163 = vmatpush1.bf16.msra.mxu1 %v4969_v1  ;;  %v4985_v1 = vld [vmem:[#allocation8 + $0x2b0] ss:$24 sps:$4 sm:$0xff]  }
 0x540   :  { %2164 = vmatprep.subr.bf16.mxu1 %v4972_v49  ;;  %2284 = vmatpush1.bf16.msra.mxu0 %v4764_v32  ;;  %6134 = vst [vmem:[#allocation55_spill] sm:$0xff] %v4985_v1  ;;  %v4988_v49 = vld [vmem:[#allocation8 + $0x284] ss:$24 sps:$4 sm:$0xff]  }
 0x541   :  { %2285 = vmatprep.subr.bf16.mxu0 %v4767_v34  ;;  %6135 = vst [vmem:[#allocation57_spill] sm:$0xff] %v4988_v49 }
 0x543   :  { %2165 = vmatpush2.bf16.msra.mxu1 %v4977_v20  ;;  %v4993_v20 = vld [vmem:[#allocation8 + $0x280] ss:$24 sps:$4 sm:$0xff]  }
 0x544   :  { %2166 = vmatprep.subr.bf16.mxu1 %v4980_v45  ;;  %2286 = vmatpush2.bf16.msra.mxu0 %v4772_v36  ;;  %6136 = vst [vmem:[#allocation59_spill] sm:$0xff] %v4993_v20  ;;  %v4996_v45 = vld [vmem:[#allocation8 + $0x254] ss:$24 sps:$4 sm:$0xff]  }
 0x545   :  { %2287 = vmatprep.subr.bf16.mxu0 %v4775_v38  ;;  %6137 = vst [vmem:[#allocation61_spill] sm:$0xff] %v4996_v45 }
 0x547   :  { %2167 = vmatpush2.bf16.msra.mxu1 %v4985_v1  ;;  %v5001_v1 = vld [vmem:[#allocation8 + $0x250] ss:$24 sps:$4 sm:$0xff]  }
 0x548   :  { %2168 = vmatprep.subr.bf16.mxu1 %v4988_v49  ;;  %2288 = vmatpush2.bf16.msra.mxu0 %v4780_v40  ;;  %6138 = vst [vmem:[#allocation63_spill] sm:$0xff] %v5001_v1  ;;  %v5004_v49 = vld [vmem:[#allocation8 + $0x224] ss:$24 sps:$4 sm:$0xff]  }
 0x549   :  { %2289 = vmatprep.subr.bf16.mxu0 %v4783_v42  ;;  %6139 = vst [vmem:[#allocation65_spill] sm:$0xff] %v5004_v49 }
 0x54b   :  { %2169 = vmatpush2.bf16.msra.mxu1 %v4993_v20  ;;  %v5009_v20 = vld [vmem:[#allocation8 + $0x220] ss:$24 sps:$4 sm:$0xff]  }
 0x54c   :  { %2170 = vmatprep.subr.bf16.mxu1 %v4996_v45  ;;  %2290 = vmatpush2.bf16.msra.mxu0 %v4788_v44  ;;  %6140 = vst [vmem:[#allocation67_spill] sm:$0xff] %v5009_v20  ;;  %v5012_v45 = vld [vmem:[#allocation8 + $0x1f4] ss:$24 sps:$4 sm:$0xff]  }
 0x54d   :  { %2291 = vmatprep.subr.bf16.mxu0 %v4791_v46  ;;  %6141 = vst [vmem:[#allocation69_spill] sm:$0xff] %v5012_v45 }
 0x54f   :  { %2171 = vmatpush2.bf16.msra.mxu1 %v5001_v1  ;;  %v5017_v1 = vld [vmem:[#allocation8 + $0x1f0] ss:$24 sps:$4 sm:$0xff]  }
 0x550   :  { %2172 = vmatprep.subr.bf16.mxu1 %v5004_v49  ;;  %2292 = vmatpush2.bf16.msra.mxu0 %v4796_v48  ;;  %6142 = vst [vmem:[#allocation71_spill] sm:$0xff] %v5017_v1  ;;  %v5020_v49 = vld [vmem:[#allocation8 + $0x1c4] ss:$24 sps:$4 sm:$0xff]  }
 0x551   :  { %2293 = vmatprep.subr.bf16.mxu0 %v4799_v50  ;;  %6143 = vst [vmem:[#allocation73_spill] sm:$0xff] %v5020_v49 }
 0x553   :  { %2173 = vmatpush2.bf16.msra.mxu1 %v5009_v20  ;;  %v5025_v20 = vld [vmem:[#allocation8 + $0x1c0] ss:$24 sps:$4 sm:$0xff]  }
 0x554   :  { %2174 = vmatprep.subr.bf16.mxu1 %v5012_v45  ;;  %2294 = vmatpush2.bf16.msra.mxu0 %v4804_v52  ;;  %6144 = vst [vmem:[#allocation75_spill] sm:$0xff] %v5025_v20  ;;  %v5028_v45 = vld [vmem:[#allocation8 + $0x194] ss:$24 sps:$4 sm:$0xff]  }
 0x555   :  { %2295 = vmatprep.subr.bf16.mxu0 %v4807_v54  ;;  %6145 = vst [vmem:[#allocation24_spill] sm:$0xff] %v5028_v45 }
 0x557   :  { %2175 = vmatpush2.bf16.msra.mxu1 %v5017_v1  ;;  %v5033_v1 = vld [vmem:[#allocation8 + $0x190] ss:$24 sps:$4 sm:$0xff]  }
 0x558   :  { %2176 = vmatprep.subr.bf16.mxu1 %v5020_v49  ;;  %2296 = vmatpush2.bf16.msra.mxu0 %v4812_v56  ;;  %6146 = vst [vmem:[#allocation26_spill] sm:$0xff] %v5033_v1 }
 0x559   :  { %2297 = vmatprep.subr.bf16.mxu0 %v4815_v58  ;;  %v6151_v58 = vld [vmem:[#allocation43_spill] sm:$0xff] }
 0x55b   :  { %2177 = vmatpush2.bf16.msra.mxu1 %v5025_v20  ;;  %v6147_v20 = vld [vmem:[#allocation35_spill] sm:$0xff] }
 0x55c   :  { %2178 = vmatprep.subr.bf16.mxu1 %v5028_v45  ;;  %2298 = vmatpush2.bf16.msra.mxu0 %v4820_v60  ;;  %v6148_v45 = vld [vmem:[#allocation37_spill] sm:$0xff]  ;;  %v6149_v60 = vld [vmem:[#allocation39_spill] sm:$0xff] }
 0x55d   :  { %2299 = vmatprep.subr.bf16.mxu0 %v4823_v62  ;;  %v6150_v62 = vld [vmem:[#allocation41_spill] sm:$0xff] }
 0x55f   :  { %2179 = vmatpush2.bf16.msra.mxu1 %v5033_v1  ;;  %v5046_v1 = vld [vmem:[#allocation8 + $0xc8] ss:$24 sps:$4 sm:$0xff]  }
 0x560   :  { %2310 = vmatprep.subr.bf16.mxu1 %v4827_v28  ;;  %2300 = vmatpush2.bf16.msra.mxu0 %v4830_v31  ;;  %6152 = vst [vmem:[#allocation28_spill] sm:$0xff] %v5046_v1  ;;  %v5049_v31 = vld [vmem:[#allocation8 + $0x9c] ss:$24 sps:$4 sm:$0xff]  }
 0x561   :  { %2351 = vmatprep.subr.bf16.mxu0 %v4833_v21  ;;  %6153 = vst [vmem:[#allocation30_spill] sm:$0xff] %v5049_v31 }
 0x562   :  { %2181 = vmatmul.mubr.bf16.vlgmr.msra.gmra.mxu1 %v4909_v5  ;;  %v5052_v5 = vld [vmem:[#allocation8 + $0x98] ss:$24 sps:$4 sm:$0xff]  }
 0x563   :  { %2311 = vmatpush1.bf16.msra.mxu1 %v4837_v19  ;;  %6154 = vst [vmem:[#allocation32_spill] sm:$0xff] %v5052_v5 }
 0x564   :  { %2312 = vmatprep.subr.bf16.mxu1 %v6147_v20  ;;  %v5055_v20 = vld [vmem:[#allocation8 + $0x6c] ss:$24 sps:$4 sm:$0xff]  }
 0x565   :  { %6155 = vst [vmem:[#allocation34_spill] sm:$0xff] %v5055_v20 }
 0x567   :  { %2313 = vmatpush1.bf16.msra.mxu1 %v6148_v45 }
 0x568   :  { %2314 = vmatprep.subr.bf16.mxu1 %v6149_v60  ;;  %v5058_v60 = vld [vmem:[#allocation8 + $0x68] ss:$24 sps:$4 sm:$0xff]  }
 0x569   :  { %6156 = vst [vmem:[#allocation36_spill] sm:$0xff] %v5058_v60 }
 0x56b   :  { %2315 = vmatpush1.bf16.msra.mxu1 %v6150_v62 }
 0x56c   :  { %2316 = vmatprep.subr.bf16.mxu1 %v6151_v58  ;;  %v5061_v58 = vld [vmem:[#allocation8 + $0x3c] ss:$24 sps:$4 sm:$0xff]  }
 0x56d   :  { %6157 = vst [vmem:[#allocation38_spill] sm:$0xff] %v5061_v58 }
 0x56f   :  { %2317 = vmatpush1.bf16.msra.mxu1 %v5046_v1  ;;  %v5064_v1 = vld [vmem:[#allocation8 + $0x38] ss:$24 sps:$4 sm:$0xff]  }
 0x570   :  { %2318 = vmatprep.subr.bf16.mxu1 %v5049_v31  ;;  %6158 = vst [vmem:[#allocation40_spill] sm:$0xff] %v5064_v1  ;;  %v5067_v31 = vld [vmem:[#allocation8 + $0xc] ss:$24 sps:$4 sm:$0xff]  }
 0x571   :  { %6159 = vst [vmem:[#allocation42_spill] sm:$0xff] %v5067_v31 }
 0x573   :  { %2319 = vmatpush1.bf16.msra.mxu1 %v5052_v5  ;;  %v5070_v5 = vld [vmem:[#allocation8 + $0x8] ss:$24 sps:$4 sm:$0xff]  }
 0x574   :  { %2320 = vmatprep.subr.bf16.mxu1 %v5055_v20  ;;  %6160 = vst [vmem:[#allocation44_spill] sm:$0xff] %v5070_v5  ;;  %v5073_v20 = vld [vmem:[#allocation8 + $0x2dc] ss:$24 sps:$4 sm:$0xff]  }
 0x575   :  { %6161 = vst [vmem:[#allocation16_spill] sm:$0xff] %v5073_v20 }
 0x577   :  { %2321 = vmatpush1.bf16.msra.mxu1 %v5058_v60  ;;  %v5076_v60 = vld [vmem:[#allocation8 + $0x2d8] ss:$24 sps:$4 sm:$0xff]  }
 0x578   :  { %2322 = vmatprep.subr.bf16.mxu1 %v5061_v58  ;;  %6162 = vst [vmem:[#allocation17_spill] sm:$0xff] %v5076_v60  ;;  %v5079_v58 = vld [vmem:[#allocation8 + $0x2ac] ss:$24 sps:$4 sm:$0xff]  }
 0x579   :  { %6163 = vst [vmem:[#allocation46_spill] sm:$0xff] %v5079_v58 }
 0x57b   :  { %2323 = vmatpush1.bf16.msra.mxu1 %v5064_v1  ;;  %v5082_v1 = vld [vmem:[#allocation8 + $0x2a8] ss:$24 sps:$4 sm:$0xff]  }
 0x57c   :  { %2324 = vmatprep.subr.bf16.mxu1 %v5067_v31  ;;  %6164 = vst [vmem:[#allocation48_spill] sm:$0xff] %v5082_v1  ;;  %v5085_v31 = vld [vmem:[#allocation8 + $0x27c] ss:$24 sps:$4 sm:$0xff]  }
 0x57d   :  { %6165 = vst [vmem:[#allocation50_spill] sm:$0xff] %v5085_v31 }
 0x57f   :  { %2325 = vmatpush1.bf16.msra.mxu1 %v5070_v5  ;;  %v5088_v5 = vld [vmem:[#allocation8 + $0x278] ss:$24 sps:$4 sm:$0xff]  }
 0x580   :  { %2326 = vmatprep.subr.bf16.mxu1 %v5073_v20  ;;  %6166 = vst [vmem:[#allocation52_spill] sm:$0xff] %v5088_v5  ;;  %v5091_v20 = vld [vmem:[#allocation8 + $0x24c] ss:$24 sps:$4 sm:$0xff]  }
 0x581   :  { %6167 = vst [vmem:[#allocation54_spill] sm:$0xff] %v5091_v20 }
 0x583   :  { %2327 = vmatpush2.bf16.msra.mxu1 %v5076_v60  ;;  %v5094_v60 = vld [vmem:[#allocation8 + $0x248] ss:$24 sps:$4 sm:$0xff]  }
 0x584   :  { %2328 = vmatprep.subr.bf16.mxu1 %v5079_v58  ;;  %6168 = vst [vmem:[#allocation56_spill] sm:$0xff] %v5094_v60  ;;  %v5097_v58 = vld [vmem:[#allocation8 + $0x21c] ss:$24 sps:$4 sm:$0xff]  }
 0x585   :  { %6169 = vst [vmem:[#allocation58_spill] sm:$0xff] %v5097_v58 }
 0x587   :  { %2329 = vmatpush2.bf16.msra.mxu1 %v5082_v1  ;;  %v5100_v1 = vld [vmem:[#allocation8 + $0x218] ss:$24 sps:$4 sm:$0xff]  }
 0x588   :  { %2330 = vmatprep.subr.bf16.mxu1 %v5085_v31  ;;  %6170 = vst [vmem:[#allocation60_spill] sm:$0xff] %v5100_v1  ;;  %v5103_v31 = vld [vmem:[#allocation8 + $0x1ec] ss:$24 sps:$4 sm:$0xff]  }
 0x589   :  { %6171 = vst [vmem:[#allocation62_spill] sm:$0xff] %v5103_v31 }
 0x58b   :  { %2331 = vmatpush2.bf16.msra.mxu1 %v5088_v5  ;;  %v5106_v5 = vld [vmem:[#allocation8 + $0x1e8] ss:$24 sps:$4 sm:$0xff]  }
 0x58c   :  { %2332 = vmatprep.subr.bf16.mxu1 %v5091_v20  ;;  %6172 = vst [vmem:[#allocation64_spill] sm:$0xff] %v5106_v5  ;;  %v5109_v20 = vld [vmem:[#allocation8 + $0x1bc] ss:$24 sps:$4 sm:$0xff]  }
 0x58d   :  { %6173 = vst [vmem:[#allocation66_spill] sm:$0xff] %v5109_v20 }
 0x58f   :  { %2333 = vmatpush2.bf16.msra.mxu1 %v5094_v60  ;;  %v5112_v60 = vld [vmem:[#allocation8 + $0x1b8] ss:$24 sps:$4 sm:$0xff]  }
 0x590   :  { %2334 = vmatprep.subr.bf16.mxu1 %v5097_v58  ;;  %6174 = vst [vmem:[#allocation68_spill] sm:$0xff] %v5112_v60  ;;  %v5115_v58 = vld [vmem:[#allocation8 + $0x18c] ss:$24 sps:$4 sm:$0xff]  }
 0x591   :  { %6175 = vst [vmem:[#allocation70_spill] sm:$0xff] %v5115_v58 }
 0x593   :  { %2335 = vmatpush2.bf16.msra.mxu1 %v5100_v1  ;;  %v5118_v1 = vld [vmem:[#allocation8 + $0x188] ss:$24 sps:$4 sm:$0xff]  }
 0x594   :  { %2336 = vmatprep.subr.bf16.mxu1 %v5103_v31  ;;  %6176 = vst [vmem:[#allocation72_spill] sm:$0xff] %v5118_v1  ;;  %v6177_v31 = vld [vmem:[#allocation19_spill] sm:$0xff] }
 0x597   :  { %2337 = vmatpush2.bf16.msra.mxu1 %v5106_v5 }
 0x598   :  { %2338 = vmatprep.subr.bf16.mxu1 %v5109_v20 }
 0x59b   :  { %2339 = vmatpush2.bf16.msra.mxu1 %v5112_v60 }
 0x59c   :  { %2340 = vmatprep.subr.bf16.mxu1 %v5115_v58 }
 0x59f   :  { %2341 = vmatpush2.bf16.msra.mxu1 %v5118_v1 }
 0x5a0   :  { %2468 = vmatprep.subr.bf16.mxu1 %v6177_v31 }
 0x5e2   :  { %v2100_v62 = vpop.f32.mrf.mxu1  ;;  %v2141_v5 = vpop.f32.mrf.mxu0 }
 0x5e3   :  { %v2191_v49 = vrot.slane %v2100_v62, 5  ;;  %v2211_v1 = vrot.slane %v2141_v5, 5 }
 0x5e4   :  { %v2102_v45 = vpop.f32.mrf.mxu1  ;;  %v2143_v19 = vpop.f32.mrf.mxu0 }
 0x5e5   :  { %v2192_v60 = vrot.slane %v2102_v45, 5  ;;  %v2195_v54 = vadd.f32 %v2191_v49, %v6088_v41  ;;  %v2212_v31 = vrot.slane %v2143_v19, 5  ;;  %v2215_v48 = vadd.f32 %v2211_v1, %v4546_v3 }
 0x5e6   :  { %v2104_v21 = vpop.f32.mrf.mxu1  ;;  %v2145_v20 = vpop.f32.mrf.mxu0 }
 0x5e7   :  { %v2196_v58 = vadd.f32 %v2192_v60, %v4541_v25  ;;  %v3312_v52 = vmul.f32 -1.442695, %v2195_v54  ;;  %v2216_v46 = vadd.f32 %v2212_v31, %v6089_v53  ;;  %v3314_v21 = vmul.f32 -1.442695, %v2215_v48 }
 0x5e8   :  { %v2105_v28 = vpop.f32.mrf.mxu1  ;;  %v2146_v56 = vpop.f32.mrf.mxu0 }
 0x5e9   :  { %v3313_v50 = vmul.f32 -1.442695, %v2196_v58  ;;  %3697 = vpow2.f32 %v3312_v52  ;;  %v3315_v20 = vmul.f32 -1.442695, %v2216_v46 }
 0x5eb   :  { %3699 = vpow2.f32 %v3313_v50 }
 0x5ec   :  { %3701 = vpow2.f32 %v3314_v21 }
 0x5ed   :  { %3703 = vpow2.f32 %v3315_v20 }
 0x5f6   :  { %v3698_v28 = vpop.eup %3697 }
 0x5f7   :  { %v2203_v62 = vadd.f32 1.0, %v3698_v28 }
 0x5f8   :  { %v3700_v56 = vpop.eup %3699 }
 0x5f9   :  { %v2204_v45 = vadd.f32 1.0, %v3700_v56  ;;  %3705 = vrcp.f32 %v2203_v62  ;;  %v3702_v54 = vpop.eup %3701 }
 0x5fa   :  { %v3704_v58 = vpop.eup %3703  ;;  %v2223_v60 = vadd.f32 1.0, %v3702_v54 }
 0x5fb   :  { %3707 = vrcp.f32 %v2204_v45  ;;  %v2224_v1 = vadd.f32 1.0, %v3704_v58 }
 0x5fc   :  { %3709 = vrcp.f32 %v2223_v60  ;;  %v2250_v60 = vrot.slane %v4895_v8, 7 }
 0x5fd   :  { %3711 = vrcp.f32 %v2224_v1 }
 0x606   :  { %v3706_v46 = vpop.eup %3705 }
 0x608   :  { %v3708_v20 = vpop.eup %3707 }
 0x609   :  { %v3710_v54 = vpop.eup %3709 }
 0x60a   :  { %v3712_v58 = vpop.eup %3711 }
 0x622   :  { %v2182_v52 = vpop.f32.mrf.mxu1 }
 0x623   :  { %v2229_v50 = vadd.f32 %v2182_v52, %v4556_v16  ;;  %v2243_v52 = vsub.f32 1.0, %v3710_v54 }
 0x624   :  { %v2184_v19 = vpop.f32.mrf.mxu1 }
 0x625   :  { %v2233_v49 = vrot.slane %v2229_v50, 5  ;;  %v2230_v48 = vadd.f32 %v2184_v19, %v4560_v57  ;;  %v2249_v50 = vrot.slane %v4891_v9, 7 }
 0x626   :  { %v2186_v5 = vpop.f32.mrf.mxu1 }
 0x627   :  { %v2237_v31 = vmul.f32 %v3706_v46, %v2233_v49  ;;  %v2234_v21 = vrot.slane %v2230_v48, 5  ;;  %v2244_v5 = vsub.f32 1.0, %v3712_v58  ;;  %v2253_v48 = vmul.f32 %v3710_v54, %v2249_v50  ;;  %v6202_v50 = vld [vmem:[#allocation15_spill] sm:$0xff] }
 0x628   :  { %v2187_v28 = vpop.f32.mrf.mxu1 }
 0x629   :  { %v2239_v56 = vadd.f32 %v2237_v31, %v4565_v59  ;;  %v2238_v62 = vmul.f32 %v3708_v20, %v2234_v21  ;;  %v2254_v31 = vmul.f32 %v3712_v58, %v2250_v60  ;;  %v6205_v60 = vld [vmem:[#allocation27_spill] sm:$0xff] }
 0x62b   :  { %3713 = vtanh.f32 %v2239_v56  ;;  %v2240_v45 = vadd.f32 %v2238_v62, %v4568_v27 }
 0x62d   :  { %3715 = vtanh.f32 %v2240_v45 }
 0x638   :  { %v3714_v19 = vpop.eup %3713 }
 0x639   :  { %v2245_v49 = vmul.f32 %v3714_v19, %v2243_v52  ;;  %v6201_v52 = vld [vmem:[#allocation24_spill] sm:$0xff]  ;;  %v6203_v19 = vld [vmem:[#allocation25_spill] sm:$0xff] }
 0x63a   :  { %v3716_v46 = vpop.eup %3715 }
 0x63b   :  { %v2246_v1 = vmul.f32 %v3716_v46, %v2244_v5  ;;  %v5132_v21 = vadd.f32 %v2253_v48, %v2245_v49  ;;  %v6204_v5 = vld [vmem:[#allocation26_spill] sm:$0xff]  ;;  %v6206_v49 = vld [vmem:[#allocation29_spill] sm:$0xff]  ;;  %v6207_v48 = vld [vmem:[#allocation31_spill] sm:$0xff] }
 0x63c   :  { %v6208_v46 = vld [vmem:[#allocation33_spill] sm:$0xff] }
 0x63d   :  { %v5134_v20 = vadd.f32 %v2254_v31, %v2246_v1  ;;  %v2257_v28 = vpack.c.bf16 %v5132_v21, %v5132_v21  ;;  %v5140_v9 = vsel %vm3067_vm4, %v4898_v18, %v5132_v21  ;;  %v6199_v18 = vld [vmem:[#allocation21_spill] sm:$0xff]  ;;  %v6209_v1 = vld [vmem:[#allocation35_spill] sm:$0xff] }
 0x63e   :  { %v6210_v31 = vld [vmem:[#allocation37_spill] sm:$0xff] }
 0x63f   :  { %v2258_v8 = vpack.c.bf16 %v5134_v20, %v5134_v20  ;;  %v5146_v56 = vsel %vm3067_vm4, %v4907_v17, %v5134_v20  ;;  %v2260_v62 = vshrl.u32 %v2257_v28, 16  ;;  %v6200_v17 = vld [vmem:[#allocation75_spill] sm:$0xff] }
 0x640   :  { %v6211_v28 = vld [vmem:[#allocation39_spill] sm:$0xff] }
 0x641   :  { %v2264_v45 = vshrl.u32 %v2258_v8, 16  ;;  %v5148_v58 = vrot.slane %v2260_v62, 1  ;;  %v6212_v8 = vld [vmem:[#allocation41_spill] sm:$0xff]  ;;  %v6213_v62 = vld [vmem:[#allocation43_spill] sm:$0xff] }
 0x643   :  { %v2266_v54 = vrot.slane %v2264_v45, 1  ;;  %v6214_v45 = vld [vmem:[#allocation28_spill] sm:$0xff] }
 0x645   :  { %2301 = vmatprep.mubr.bf16.mxu0 %v2266_v54  ;;  %2342 = vmatprep.mubr.bf16.mxu1 %v2266_v54 }
 0x646   :  { %2302 = vmatmul.mubr.bf16.vlgmr.msra.gmra.mxu0 %v5148_v58  ;;  %2343 = vmatmul.mubr.bf16.vlgmr.msra.gmra.mxu1 %v5148_v58 }
 0x647   :  { %2352 = vmatpush1.bf16.msra.mxu0 %v4913_v55  ;;  %2383 = vmatprep.mubr.bf16.mxu0 %v2266_v54  ;;  %v6215_v54 = vld [vmem:[#allocation30_spill] sm:$0xff] }
 0x648   :  { %2353 = vmatprep.subr.bf16.mxu0 %v4916_v7  ;;  %2469 = vmatpush1.bf16.msra.mxu1 %v4708_v2  ;;  %v6178_v2 = vld [vmem:[#allocation45_spill] sm:$0xff] }
 0x649   :  { %2470 = vmatprep.subr.bf16.mxu1 %v4711_v4  ;;  %v6179_v4 = vld [vmem:[#allocation47_spill] sm:$0xff] }
 0x64b   :  { %2354 = vmatpush1.bf16.msra.mxu0 %v4921_v10 }
 0x64c   :  { %2355 = vmatprep.subr.bf16.mxu0 %v4924_v29  ;;  %2471 = vmatpush1.bf16.msra.mxu1 %v4716_v61  ;;  %v6180_v61 = vld [vmem:[#allocation49_spill] sm:$0xff] }
 0x64d   :  { %2472 = vmatprep.subr.bf16.mxu1 %v4719_v15  ;;  %v6181_v15 = vld [vmem:[#allocation51_spill] sm:$0xff] }
 0x64f   :  { %2356 = vmatpush1.bf16.msra.mxu0 %v4929_v24 }
 0x650   :  { %2357 = vmatprep.subr.bf16.mxu0 %v4932_v33  ;;  %2473 = vmatpush1.bf16.msra.mxu1 %v4724_v23  ;;  %v6182_v23 = vld [vmem:[#allocation53_spill] sm:$0xff] }
 0x651   :  { %2474 = vmatprep.subr.bf16.mxu1 %v4727_v47  ;;  %v6183_v47 = vld [vmem:[#allocation55_spill] sm:$0xff] }
 0x653   :  { %2358 = vmatpush1.bf16.msra.mxu0 %v4937_v51 }
 0x654   :  { %2359 = vmatprep.subr.bf16.mxu0 %v4940_v14  ;;  %2475 = vmatpush1.bf16.msra.mxu1 %v4732_v63  ;;  %v6184_v63 = vld [vmem:[#allocation57_spill] sm:$0xff] }
 0x655   :  { %2476 = vmatprep.subr.bf16.mxu1 %v4735_v37  ;;  %v6185_v37 = vld [vmem:[#allocation59_spill] sm:$0xff] }
 0x657   :  { %2360 = vmatpush1.bf16.msra.mxu0 %v4945_v6 }
 0x658   :  { %2361 = vmatprep.subr.bf16.mxu0 %v4948_v0  ;;  %2477 = vmatpush1.bf16.msra.mxu1 %v4740_v35  ;;  %v6186_v35 = vld [vmem:[#allocation61_spill] sm:$0xff] }
 0x659   :  { %2478 = vmatprep.subr.bf16.mxu1 %v4743_v13  ;;  %v6187_v13 = vld [vmem:[#allocation20_spill] sm:$0xff] }
 0x65b   :  { %2362 = vmatpush1.bf16.msra.mxu0 %v4953_v39 }
 0x65c   :  { %2363 = vmatprep.subr.bf16.mxu0 %v4956_v12  ;;  %2479 = vmatpush1.bf16.msra.mxu1 %v4748_v11  ;;  %v6188_v11 = vld [vmem:[#allocation63_spill] sm:$0xff] }
 0x65d   :  { %2480 = vmatprep.subr.bf16.mxu1 %v4751_v22  ;;  %v6189_v22 = vld [vmem:[#allocation65_spill] sm:$0xff] }
 0x65f   :  { %2364 = vmatpush1.bf16.msra.mxu0 %v4961_v43 }
 0x660   :  { %2365 = vmatprep.subr.bf16.mxu0 %v6178_v2  ;;  %2481 = vmatpush1.bf16.msra.mxu1 %v4756_v26  ;;  %v6190_v26 = vld [vmem:[#allocation22_spill] sm:$0xff] }
 0x661   :  { %2482 = vmatprep.subr.bf16.mxu1 %v4759_v30  ;;  %v6191_v30 = vld [vmem:[#allocation23_spill] sm:$0xff] }
 0x663   :  { %2366 = vmatpush1.bf16.msra.mxu0 %v6179_v4 }
 0x664   :  { %2367 = vmatprep.subr.bf16.mxu0 %v6180_v61  ;;  %2483 = vmatpush1.bf16.msra.mxu1 %v4764_v32  ;;  %v6192_v32 = vld [vmem:[#allocation67_spill] sm:$0xff] }
 0x665   :  { %2484 = vmatprep.subr.bf16.mxu1 %v4767_v34  ;;  %v6193_v34 = vld [vmem:[#allocation69_spill] sm:$0xff] }
 0x667   :  { %2368 = vmatpush2.bf16.msra.mxu0 %v6181_v15 }
 0x668   :  { %2369 = vmatprep.subr.bf16.mxu0 %v6182_v23  ;;  %2485 = vmatpush2.bf16.msra.mxu1 %v4772_v36  ;;  %v6194_v36 = vld [vmem:[#allocation18_spill] sm:$0xff] }
 0x669   :  { %2486 = vmatprep.subr.bf16.mxu1 %v4775_v38  ;;  %v6195_v38 = vld [vmem:[#allocation14_spill] sm:$0xff] }
 0x66b   :  { %2370 = vmatpush2.bf16.msra.mxu0 %v6183_v47 }
 0x66c   :  { %2371 = vmatprep.subr.bf16.mxu0 %v6184_v63  ;;  %2487 = vmatpush2.bf16.msra.mxu1 %v4780_v40  ;;  %v6196_v40 = vld [vmem:[#allocation71_spill] sm:$0xff] }
 0x66d   :  { %2488 = vmatprep.subr.bf16.mxu1 %v4783_v42  ;;  %v6197_v42 = vld [vmem:[#allocation73_spill] sm:$0xff] }
 0x66f   :  { %2372 = vmatpush2.bf16.msra.mxu0 %v6185_v37 }
 0x670   :  { %2373 = vmatprep.subr.bf16.mxu0 %v6186_v35  ;;  %2489 = vmatpush2.bf16.msra.mxu1 %v4788_v44  ;;  %v6198_v44 = vld [vmem:[#allocation13_spill] sm:$0xff] }
 0x671   :  { %2490 = vmatprep.subr.bf16.mxu1 %v6187_v13  ;;  %v6216_v13 = vld [vmem:[#allocation32_spill] sm:$0xff] }
 0x673   :  { %2374 = vmatpush2.bf16.msra.mxu0 %v6188_v11 }
 0x674   :  { %2375 = vmatprep.subr.bf16.mxu0 %v6189_v22  ;;  %2491 = vmatpush2.bf16.msra.mxu1 %v6190_v26  ;;  %v6217_v26 = vld [vmem:[#allocation34_spill] sm:$0xff] }
 0x675   :  { %2492 = vmatprep.subr.bf16.mxu1 %v6191_v30  ;;  %v6219_v30 = vld [vmem:[#allocation38_spill] sm:$0xff] }
 0x677   :  { %2376 = vmatpush2.bf16.msra.mxu0 %v6192_v32 }
 0x678   :  { %2377 = vmatprep.subr.bf16.mxu0 %v6193_v34  ;;  %2493 = vmatpush2.bf16.msra.mxu1 %v6194_v36  ;;  %v6220_v36 = vld [vmem:[#allocation40_spill] sm:$0xff] }
 0x679   :  { %2494 = vmatprep.subr.bf16.mxu1 %v6195_v38  ;;  %v6221_v38 = vld [vmem:[#allocation42_spill] sm:$0xff] }
 0x67b   :  { %2378 = vmatpush2.bf16.msra.mxu0 %v6196_v40 }
 0x67c   :  { %2379 = vmatprep.subr.bf16.mxu0 %v6197_v42  ;;  %2495 = vmatpush2.bf16.msra.mxu1 %v6198_v44  ;;  %v6222_v44 = vld [vmem:[#allocation44_spill] sm:$0xff] }
 0x67d   :  { %2496 = vmatprep.subr.bf16.mxu1 %v6199_v18  ;;  %v6223_v18 = vld [vmem:[#allocation16_spill] sm:$0xff] }
 0x67f   :  { %2380 = vmatpush2.bf16.msra.mxu0 %v6200_v17 }
 0x680   :  { %2381 = vmatprep.subr.bf16.mxu0 %v6201_v52  ;;  %2497 = vmatpush2.bf16.msra.mxu1 %v6202_v50  ;;  %v6224_v50 = vld [vmem:[#allocation17_spill] sm:$0xff] }
 0x681   :  { %2498 = vmatprep.subr.bf16.mxu1 %v6203_v19  ;;  %v6225_v19 = vld [vmem:[#allocation46_spill] sm:$0xff] }
 0x683   :  { %2382 = vmatpush2.bf16.msra.mxu0 %v6204_v5 }
 0x684   :  { %2509 = vmatprep.subr.bf16.mxu0 %v6205_v60  ;;  %2499 = vmatpush2.bf16.msra.mxu1 %v6206_v49  ;;  %v6226_v60 = vld [vmem:[#allocation48_spill] sm:$0xff]  ;;  %v6227_v49 = vld [vmem:[#allocation50_spill] sm:$0xff] }
 0x685   :  { %2550 = vmatprep.subr.bf16.mxu1 %v6207_v48  ;;  %v6228_v48 = vld [vmem:[#allocation52_spill] sm:$0xff] }
 0x686   :  { %2384 = vmatmul.mubr.bf16.vlgmr.msra.gmra.mxu0 %v5148_v58  ;;  %v6218_v58 = vld [vmem:[#allocation36_spill] sm:$0xff] }
 0x687   :  { %2510 = vmatpush1.bf16.msra.mxu0 %v6208_v46  ;;  %v6229_v46 = vld [vmem:[#allocation54_spill] sm:$0xff] }
 0x688   :  { %2511 = vmatprep.subr.bf16.mxu0 %v6209_v1  ;;  %v6230_v1 = vld [vmem:[#allocation56_spill] sm:$0xff] }
 0x68b   :  { %2512 = vmatpush1.bf16.msra.mxu0 %v6210_v31  ;;  %v6231_v31 = vld [vmem:[#allocation58_spill] sm:$0xff] }
 0x68c   :  { %2513 = vmatprep.subr.bf16.mxu0 %v6211_v28  ;;  %v6232_v28 = vld [vmem:[#allocation60_spill] sm:$0xff] }
 0x68f   :  { %2514 = vmatpush1.bf16.msra.mxu0 %v6212_v8  ;;  %v6233_v8 = vld [vmem:[#allocation62_spill] sm:$0xff] }
 0x690   :  { %2515 = vmatprep.subr.bf16.mxu0 %v6213_v62  ;;  %v6234_v62 = vld [vmem:[#allocation64_spill] sm:$0xff] }
 0x693   :  { %2516 = vmatpush1.bf16.msra.mxu0 %v6214_v45 }
 0x694   :  { %2517 = vmatprep.subr.bf16.mxu0 %v6215_v54 }
 0x697   :  { %2518 = vmatpush1.bf16.msra.mxu0 %v6216_v13 }
 0x698   :  { %2519 = vmatprep.subr.bf16.mxu0 %v6217_v26 }
 0x69b   :  { %2520 = vmatpush1.bf16.msra.mxu0 %v6218_v58 }
 0x69c   :  { %2521 = vmatprep.subr.bf16.mxu0 %v6219_v30 }
 0x69f   :  { %2522 = vmatpush1.bf16.msra.mxu0 %v6220_v36 }
 0x6a0   :  { %2523 = vmatprep.subr.bf16.mxu0 %v6221_v38 }
 0x6a3   :  { %2524 = vmatpush1.bf16.msra.mxu0 %v6222_v44 }
 0x6a4   :  { %2525 = vmatprep.subr.bf16.mxu0 %v6223_v18 }
 0x6a7   :  { %2526 = vmatpush2.bf16.msra.mxu0 %v6224_v50  ;;  %v6235_v50 = vld [vmem:[#allocation66_spill] sm:$0xff] }
 0x6a8   :  { %2527 = vmatprep.subr.bf16.mxu0 %v6225_v19  ;;  %v6236_v19 = vld [vmem:[#allocation68_spill] sm:$0xff] }
 0x6ab   :  { %2528 = vmatpush2.bf16.msra.mxu0 %v6226_v60  ;;  %v6237_v60 = vld [vmem:[#allocation70_spill] sm:$0xff] }
 0x6ac   :  { %2529 = vmatprep.subr.bf16.mxu0 %v6227_v49  ;;  %v6238_v49 = vld [vmem:[#allocation72_spill] sm:$0xff] }
 0x6af   :  { %2530 = vmatpush2.bf16.msra.mxu0 %v6228_v48  ;;  %v5248_v48 = vld [vmem:[#allocation8 + $0x154] ss:$24 sps:$4 sm:$0xff]  }
 0x6b0   :  { %2531 = vmatprep.subr.bf16.mxu0 %v6229_v46  ;;  %6239 = vst [vmem:[#allocation74_spill] sm:$0xff] %v5248_v48 }
 0x6b3   :  { %2532 = vmatpush2.bf16.msra.mxu0 %v6230_v1 }
 0x6b4   :  { %2533 = vmatprep.subr.bf16.mxu0 %v6231_v31 }
 0x6b7   :  { %2534 = vmatpush2.bf16.msra.mxu0 %v6232_v28 }
 0x6b8   :  { %2535 = vmatprep.subr.bf16.mxu0 %v6233_v8 }
 0x6bb   :  { %2536 = vmatpush2.bf16.msra.mxu0 %v6234_v62 }
 0x6bc   :  { %2537 = vmatprep.subr.bf16.mxu0 %v6235_v50 }
 0x6bf   :  { %2538 = vmatpush2.bf16.msra.mxu0 %v6236_v19 }
 0x6c0   :  { %2539 = vmatprep.subr.bf16.mxu0 %v6237_v60 }
 0x6c3   :  { %2540 = vmatpush2.bf16.msra.mxu0 %v6238_v49 }
 0x6c4   :  { %2671 = vmatprep.subr.bf16.mxu0 %v5248_v48 }
 0x706   :  { %v2303_v1 = vpop.f32.mrf.mxu0  ;;  %v2344_v31 = vpop.f32.mrf.mxu1 }
 0x707   :  { %v2394_v38 = vrot.slane %v2303_v1, 4  ;;  %v2414_v30 = vrot.slane %v2344_v31, 4 }
 0x708   :  { %v2305_v46 = vpop.f32.mrf.mxu0  ;;  %v2346_v28 = vpop.f32.mrf.mxu1 }
 0x709   :  { %v2395_v50 = vrot.slane %v2305_v46, 4  ;;  %v2398_v19 = vadd.f32 %v2394_v38, %v6088_v41  ;;  %v2415_v48 = vrot.slane %v2346_v28, 4  ;;  %v2418_v58 = vadd.f32 %v2414_v30, %v4546_v3 }
 0x70a   :  { %v2307_v18 = vpop.f32.mrf.mxu0  ;;  %v2348_v8 = vpop.f32.mrf.mxu1 }
 0x70b   :  { %v2399_v60 = vadd.f32 %v2395_v50, %v4541_v25  ;;  %v3316_v36 = vmul.f32 -1.442695, %v2398_v19  ;;  %v2419_v26 = vadd.f32 %v2415_v48, %v6089_v53  ;;  %v3318_v18 = vmul.f32 -1.442695, %v2418_v58 }
 0x70c   :  { %v2308_v44 = vpop.f32.mrf.mxu0  ;;  %v2349_v62 = vpop.f32.mrf.mxu1 }
 0x70d   :  { %v3317_v49 = vmul.f32 -1.442695, %v2399_v60  ;;  %3717 = vpow2.f32 %v3316_v36  ;;  %v3319_v8 = vmul.f32 -1.442695, %v2419_v26 }
 0x70f   :  { %3719 = vpow2.f32 %v3317_v49 }
 0x710   :  { %3721 = vpow2.f32 %v3318_v18 }
 0x711   :  { %3723 = vpow2.f32 %v3319_v8 }
 0x71a   :  { %v3718_v44 = vpop.eup %3717 }
 0x71b   :  { %v2406_v46 = vadd.f32 1.0, %v3718_v44 }
 0x71c   :  { %v3720_v1 = vpop.eup %3719 }
 0x71d   :  { %v2407_v38 = vadd.f32 1.0, %v3720_v1  ;;  %3725 = vrcp.f32 %v2406_v46  ;;  %v3722_v50 = vpop.eup %3721 }
 0x71e   :  { %v3724_v19 = vpop.eup %3723  ;;  %v2426_v60 = vadd.f32 1.0, %v3722_v50 }
 0x71f   :  { %3727 = vrcp.f32 %v2407_v38  ;;  %v2427_v30 = vadd.f32 1.0, %v3724_v19 }
 0x720   :  { %3729 = vrcp.f32 %v2426_v60  ;;  %v2453_v60 = vrot.slane %v5134_v20, 7 }
 0x721   :  { %3731 = vrcp.f32 %v2427_v30 }
 0x72a   :  { %v3726_v26 = vpop.eup %3725 }
 0x72c   :  { %v3728_v8 = vpop.eup %3727 }
 0x72d   :  { %v3730_v50 = vpop.eup %3729 }
 0x72e   :  { %v3732_v19 = vpop.eup %3731 }
 0x746   :  { %v2385_v36 = vpop.f32.mrf.mxu0 }
 0x747   :  { %v2432_v49 = vadd.f32 %v2385_v36, %v4556_v16  ;;  %v2446_v36 = vsub.f32 1.0, %v3730_v50 }
 0x748   :  { %v2387_v31 = vpop.f32.mrf.mxu0 }
 0x749   :  { %v2436_v28 = vrot.slane %v2432_v49, 4  ;;  %v2433_v58 = vadd.f32 %v2387_v31, %v4560_v57  ;;  %v2452_v49 = vrot.slane %v5132_v21, 7 }
 0x74a   :  { %v2389_v48 = vpop.f32.mrf.mxu0 }
 0x74b   :  { %v2440_v62 = vmul.f32 %v3726_v26, %v2436_v28  ;;  %v2437_v18 = vrot.slane %v2433_v58, 4  ;;  %v2447_v48 = vsub.f32 1.0, %v3732_v19  ;;  %v2456_v58 = vmul.f32 %v3730_v50, %v2452_v49  ;;  %v5291_v50 = vld [vmem:[#allocation8 + $0x120] ss:$24 sps:$4 sm:$0xff]   ;;  %v5421_v49 = vld [vmem:[#allocation8 + $0xfc] ss:$24 sps:$4 sm:$0xff]  }
 0x74c   :  { %v2390_v44 = vpop.f32.mrf.mxu0  ;;  %6242 = vst [vmem:[#allocation78_spill] sm:$0xff] %v5421_v49 }
 0x74d   :  { %v2442_v1 = vadd.f32 %v2440_v62, %v4565_v59  ;;  %v2441_v46 = vmul.f32 %v3728_v8, %v2437_v18  ;;  %v2457_v62 = vmul.f32 %v3732_v19, %v2453_v60  ;;  %v5302_v19 = vld [vmem:[#allocation8 + $0xc4] ss:$24 sps:$4 sm:$0xff]  }
 0x74e   :  { %v6245_v60 = vld [vmem:[#allocation34_spill] sm:$0xff] }
 0x74f   :  { %3733 = vtanh.f32 %v2442_v1  ;;  %v2443_v38 = vadd.f32 %v2441_v46, %v4568_v27 }
 0x751   :  { %3735 = vtanh.f32 %v2443_v38 }
 0x75c   :  { %v3734_v31 = vpop.eup %3733 }
 0x75d   :  { %v2448_v28 = vmul.f32 %v3734_v31, %v2446_v36  ;;  %v5415_v36 = vld [vmem:[#allocation8 + $0x12c] ss:$24 sps:$4 sm:$0xff]   ;;  %v5424_v31 = vld [vmem:[#allocation8 + $0xf8] ss:$24 sps:$4 sm:$0xff]  }
 0x75e   :  { %v3736_v26 = vpop.eup %3735  ;;  %6240 = vst [vmem:[#allocation76_spill] sm:$0xff] %v5415_v36  ;;  %6243 = vst [vmem:[#allocation79_spill] sm:$0xff] %v5424_v31 }
 0x75f   :  { %v2449_v30 = vmul.f32 %v3736_v26, %v2447_v48  ;;  %v5261_v18 = vadd.f32 %v2456_v58, %v2448_v28  ;;  %v5427_v48 = vld [vmem:[#allocation8 + $0xcc] ss:$24 sps:$4 sm:$0xff]   ;;  %v6247_v58 = vld [vmem:[#allocation38_spill] sm:$0xff] }
 0x760   :  { %6244 = vst [vmem:[#allocation80_spill] sm:$0xff] %v5427_v48  ;;  %v6246_v28 = vld [vmem:[#allocation36_spill] sm:$0xff] }
 0x761   :  { %v5263_v8 = vadd.f32 %v2457_v62, %v2449_v30  ;;  %v5267_v44 = vsel %vm3070_vm5, %v5140_v9, %v5261_v18  ;;  %v2460_v21 = vpack.c.bf16 %v5261_v18, %v5261_v18  ;;  %v5283_v9 = vld [vmem:[#allocation8 + $0x150] ss:$24 sps:$4 sm:$0xff]   ;;  %v6249_v30 = vld [vmem:[#allocation42_spill] sm:$0xff] }
 0x762   :  { %v6248_v26 = vld [vmem:[#allocation40_spill] sm:$0xff] }
 0x763   :  { %v2461_v20 = vpack.c.bf16 %v5263_v8, %v5263_v8  ;;  %v5275_v1 = vsel %vm3070_vm5, %v5146_v56, %v5263_v8  ;;  %v5277_v38 = vrot.slane %v2460_v21, 2  ;;  %v5286_v56 = vld [vmem:[#allocation8 + $0x124] ss:$24 sps:$4 sm:$0xff]   ;;  %v6250_v62 = vld [vmem:[#allocation44_spill] sm:$0xff] }
 0x764   :  { %v6251_v21 = vld [vmem:[#allocation16_spill] sm:$0xff] }
 0x765   :  { %v2465_v46 = vrot.slane %v2461_v20, 2  ;;  %v6252_v20 = vld [vmem:[#allocation17_spill] sm:$0xff] }
 0x767   :  { %2500 = vmatprep.mubr.bf16.mxu1 %v2465_v46  ;;  %2541 = vmatprep.mubr.bf16.mxu0 %v2465_v46 }
 0x768   :  { %2501 = vmatmul.mubr.bf16.vlgmr.msra.gmra.mxu1 %v5277_v38  ;;  %2542 = vmatmul.mubr.bf16.vlgmr.msra.gmra.mxu0 %v5277_v38 }
 0x769   :  { %2551 = vmatpush1.bf16.msra.mxu1 %v4913_v55  ;;  %2582 = vmatprep.mubr.bf16.mxu1 %v2465_v46  ;;  %v5294_v55 = vld [vmem:[#allocation8 + $0xf4] ss:$24 sps:$4 sm:$0xff]  }
 0x76a   :  { %2552 = vmatprep.subr.bf16.mxu1 %v4916_v7  ;;  %2672 = vmatpush1.bf16.msra.mxu0 %v5283_v9  ;;  %v5299_v7 = vld [vmem:[#allocation8 + $0xf0] ss:$24 sps:$4 sm:$0xff]  }
 0x76b   :  { %2673 = vmatprep.subr.bf16.mxu0 %v5286_v56  ;;  %v6256_v46 = vld [vmem:[#allocation52_spill] sm:$0xff] }
 0x76d   :  { %2553 = vmatpush1.bf16.msra.mxu1 %v4921_v10  ;;  %v5307_v10 = vld [vmem:[#allocation8 + $0xc0] ss:$24 sps:$4 sm:$0xff]  }
 0x76e   :  { %2554 = vmatprep.subr.bf16.mxu1 %v4924_v29  ;;  %2674 = vmatpush1.bf16.msra.mxu0 %v5291_v50  ;;  %v5310_v29 = vld [vmem:[#allocation8 + $0x94] ss:$24 sps:$4 sm:$0xff]  }
 0x76f   :  { %2675 = vmatprep.subr.bf16.mxu0 %v5294_v55 }
 0x771   :  { %2555 = vmatpush1.bf16.msra.mxu1 %v4929_v24  ;;  %v5315_v24 = vld [vmem:[#allocation8 + $0x90] ss:$24 sps:$4 sm:$0xff]  }
 0x772   :  { %2556 = vmatprep.subr.bf16.mxu1 %v4932_v33  ;;  %2676 = vmatpush1.bf16.msra.mxu0 %v5299_v7  ;;  %v5318_v33 = vld [vmem:[#allocation8 + $0x64] ss:$24 sps:$4 sm:$0xff]  }
 0x773   :  { %2677 = vmatprep.subr.bf16.mxu0 %v5302_v19 }
 0x775   :  { %2557 = vmatpush1.bf16.msra.mxu1 %v4937_v51  ;;  %v5323_v51 = vld [vmem:[#allocation8 + $0x60] ss:$24 sps:$4 sm:$0xff]  }
 0x776   :  { %2558 = vmatprep.subr.bf16.mxu1 %v4940_v14  ;;  %2678 = vmatpush1.bf16.msra.mxu0 %v5307_v10  ;;  %v5326_v14 = vld [vmem:[#allocation8 + $0x34] ss:$24 sps:$4 sm:$0xff]  }
 0x777   :  { %2679 = vmatprep.subr.bf16.mxu0 %v5310_v29 }
 0x779   :  { %2559 = vmatpush1.bf16.msra.mxu1 %v4945_v6  ;;  %v5331_v6 = vld [vmem:[#allocation8 + $0x30] ss:$24 sps:$4 sm:$0xff]  }
 0x77a   :  { %2560 = vmatprep.subr.bf16.mxu1 %v4948_v0  ;;  %2680 = vmatpush1.bf16.msra.mxu0 %v5315_v24  ;;  %v5334_v0 = vld [vmem:[#allocation8 + $0x4] ss:$24 sps:$4 sm:$0xff]  }
 0x77b   :  { %2681 = vmatprep.subr.bf16.mxu0 %v5318_v33 }
 0x77d   :  { %2561 = vmatpush1.bf16.msra.mxu1 %v4953_v39  ;;  %v5339_v39 = vld [vmem:[#allocation8] ss:$24 sps:$4 sm:$0xff]  }
 0x77e   :  { %2562 = vmatprep.subr.bf16.mxu1 %v4956_v12  ;;  %2682 = vmatpush1.bf16.msra.mxu0 %v5323_v51  ;;  %v5342_v12 = vld [vmem:[#allocation8 + $0x2d4] ss:$24 sps:$4 sm:$0xff]  }
 0x77f   :  { %2683 = vmatprep.subr.bf16.mxu0 %v5326_v14 }
 0x781   :  { %2563 = vmatpush1.bf16.msra.mxu1 %v4961_v43  ;;  %v5347_v43 = vld [vmem:[#allocation8 + $0x2d0] ss:$24 sps:$4 sm:$0xff]  }
 0x782   :  { %2564 = vmatprep.subr.bf16.mxu1 %v6178_v2  ;;  %2684 = vmatpush1.bf16.msra.mxu0 %v5331_v6  ;;  %v5350_v2 = vld [vmem:[#allocation8 + $0x2a4] ss:$24 sps:$4 sm:$0xff]  }
 0x783   :  { %2685 = vmatprep.subr.bf16.mxu0 %v5334_v0 }
 0x785   :  { %2565 = vmatpush1.bf16.msra.mxu1 %v6179_v4  ;;  %v5355_v4 = vld [vmem:[#allocation8 + $0x2a0] ss:$24 sps:$4 sm:$0xff]  }
 0x786   :  { %2566 = vmatprep.subr.bf16.mxu1 %v6180_v61  ;;  %2686 = vmatpush1.bf16.msra.mxu0 %v5339_v39  ;;  %v5358_v61 = vld [vmem:[#allocation8 + $0x274] ss:$24 sps:$4 sm:$0xff]  }
 0x787   :  { %2687 = vmatprep.subr.bf16.mxu0 %v5342_v12 }
 0x789   :  { %2567 = vmatpush2.bf16.msra.mxu1 %v6181_v15  ;;  %v5363_v15 = vld [vmem:[#allocation8 + $0x270] ss:$24 sps:$4 sm:$0xff]  }
 0x78a   :  { %2568 = vmatprep.subr.bf16.mxu1 %v6182_v23  ;;  %2688 = vmatpush2.bf16.msra.mxu0 %v5347_v43  ;;  %v5366_v23 = vld [vmem:[#allocation8 + $0x244] ss:$24 sps:$4 sm:$0xff]  }
 0x78b   :  { %2689 = vmatprep.subr.bf16.mxu0 %v5350_v2 }
 0x78d   :  { %2569 = vmatpush2.bf16.msra.mxu1 %v6183_v47  ;;  %v5371_v47 = vld [vmem:[#allocation8 + $0x240] ss:$24 sps:$4 sm:$0xff]  }
 0x78e   :  { %2570 = vmatprep.subr.bf16.mxu1 %v6184_v63  ;;  %2690 = vmatpush2.bf16.msra.mxu0 %v5355_v4  ;;  %v5374_v63 = vld [vmem:[#allocation8 + $0x214] ss:$24 sps:$4 sm:$0xff]  }
 0x78f   :  { %2691 = vmatprep.subr.bf16.mxu0 %v5358_v61 }
 0x791   :  { %2571 = vmatpush2.bf16.msra.mxu1 %v6185_v37  ;;  %v5379_v37 = vld [vmem:[#allocation8 + $0x210] ss:$24 sps:$4 sm:$0xff]  }
 0x792   :  { %2572 = vmatprep.subr.bf16.mxu1 %v6186_v35  ;;  %2692 = vmatpush2.bf16.msra.mxu0 %v5363_v15  ;;  %v5382_v35 = vld [vmem:[#allocation8 + $0x1e4] ss:$24 sps:$4 sm:$0xff]  }
 0x793   :  { %2693 = vmatprep.subr.bf16.mxu0 %v5366_v23 }
 0x795   :  { %2573 = vmatpush2.bf16.msra.mxu1 %v6188_v11  ;;  %v5387_v11 = vld [vmem:[#allocation8 + $0x1e0] ss:$24 sps:$4 sm:$0xff]  }
 0x796   :  { %2574 = vmatprep.subr.bf16.mxu1 %v6189_v22  ;;  %2694 = vmatpush2.bf16.msra.mxu0 %v5371_v47  ;;  %v5390_v22 = vld [vmem:[#allocation8 + $0x1b4] ss:$24 sps:$4 sm:$0xff]  }
 0x797   :  { %2695 = vmatprep.subr.bf16.mxu0 %v5374_v63 }
 0x799   :  { %2575 = vmatpush2.bf16.msra.mxu1 %v6192_v32  ;;  %v5395_v32 = vld [vmem:[#allocation8 + $0x1b0] ss:$24 sps:$4 sm:$0xff]  }
 0x79a   :  { %2576 = vmatprep.subr.bf16.mxu1 %v6193_v34  ;;  %2696 = vmatpush2.bf16.msra.mxu0 %v5379_v37  ;;  %v5398_v34 = vld [vmem:[#allocation8 + $0x184] ss:$24 sps:$4 sm:$0xff]  }
 0x79b   :  { %2697 = vmatprep.subr.bf16.mxu0 %v5382_v35 }
 0x79d   :  { %2577 = vmatpush2.bf16.msra.mxu1 %v6196_v40  ;;  %v5402_v40 = vld [vmem:[#allocation8 + $0x15c] ss:$24 sps:$4 sm:$0xff]  }
 0x79e   :  { %2578 = vmatprep.subr.bf16.mxu1 %v6197_v42  ;;  %2698 = vmatpush2.bf16.msra.mxu0 %v5387_v11  ;;  %v5405_v42 = vld [vmem:[#allocation8 + $0x180] ss:$24 sps:$4 sm:$0xff]  }
 0x79f   :  { %2699 = vmatprep.subr.bf16.mxu0 %v5390_v22 }
 0x7a1   :  { %2579 = vmatpush2.bf16.msra.mxu1 %v6200_v17  ;;  %v5408_v17 = vld [vmem:[#allocation8 + $0x164] ss:$24 sps:$4 sm:$0xff]  }
 0x7a2   :  { %2580 = vmatprep.subr.bf16.mxu1 %v6201_v52  ;;  %2700 = vmatpush2.bf16.msra.mxu0 %v5395_v32  ;;  %v5412_v52 = vld [vmem:[#allocation8 + $0x158] ss:$24 sps:$4 sm:$0xff]  }
 0x7a3   :  { %2701 = vmatprep.subr.bf16.mxu0 %v5398_v34 }
 0x7a5   :  { %2581 = vmatpush2.bf16.msra.mxu1 %v6204_v5  ;;  %v5418_v5 = vld [vmem:[#allocation8 + $0x128] ss:$24 sps:$4 sm:$0xff]  }
 0x7a6   :  { %2712 = vmatprep.subr.bf16.mxu1 %v5402_v40  ;;  %2702 = vmatpush2.bf16.msra.mxu0 %v5405_v42  ;;  %6241 = vst [vmem:[#allocation77_spill] sm:$0xff] %v5418_v5 }
 0x7a7   :  { %2753 = vmatprep.subr.bf16.mxu0 %v5408_v17 }
 0x7a8   :  { %2583 = vmatmul.mubr.bf16.vlgmr.msra.gmra.mxu1 %v5277_v38  ;;  %v6257_v38 = vld [vmem:[#allocation54_spill] sm:$0xff] }
 0x7a9   :  { %2713 = vmatpush1.bf16.msra.mxu1 %v5412_v52 }
 0x7aa   :  { %2714 = vmatprep.subr.bf16.mxu1 %v5415_v36 }
 0x7ad   :  { %2715 = vmatpush1.bf16.msra.mxu1 %v5418_v5 }
 0x7ae   :  { %2716 = vmatprep.subr.bf16.mxu1 %v5421_v49 }
 0x7b1   :  { %2717 = vmatpush1.bf16.msra.mxu1 %v5424_v31 }
 0x7b2   :  { %2718 = vmatprep.subr.bf16.mxu1 %v5427_v48 }
 0x7b5   :  { %2719 = vmatpush1.bf16.msra.mxu1 %v6214_v45  ;;  %v6253_v45 = vld [vmem:[#allocation46_spill] sm:$0xff] }
 0x7b6   :  { %2720 = vmatprep.subr.bf16.mxu1 %v6215_v54  ;;  %v6254_v54 = vld [vmem:[#allocation48_spill] sm:$0xff] }
 0x7b9   :  { %2721 = vmatpush1.bf16.msra.mxu1 %v6216_v13  ;;  %v6255_v13 = vld [vmem:[#allocation50_spill] sm:$0xff] }
 0x7ba   :  { %2722 = vmatprep.subr.bf16.mxu1 %v6245_v60  ;;  %v6258_v60 = vld [vmem:[#allocation56_spill] sm:$0xff] }
 0x7bd   :  { %2723 = vmatpush1.bf16.msra.mxu1 %v6246_v28  ;;  %v6259_v28 = vld [vmem:[#allocation58_spill] sm:$0xff] }
 0x7be   :  { %2724 = vmatprep.subr.bf16.mxu1 %v6247_v58  ;;  %v6260_v58 = vld [vmem:[#allocation60_spill] sm:$0xff] }
 0x7c1   :  { %2725 = vmatpush1.bf16.msra.mxu1 %v6248_v26  ;;  %v6261_v26 = vld [vmem:[#allocation62_spill] sm:$0xff] }
 0x7c2   :  { %2726 = vmatprep.subr.bf16.mxu1 %v6249_v30  ;;  %v6262_v30 = vld [vmem:[#allocation64_spill] sm:$0xff] }
 0x7c5   :  { %2727 = vmatpush1.bf16.msra.mxu1 %v6250_v62  ;;  %v6263_v62 = vld [vmem:[#allocation66_spill] sm:$0xff] }
 0x7c6   :  { %2728 = vmatprep.subr.bf16.mxu1 %v6251_v21  ;;  %v6264_v21 = vld [vmem:[#allocation68_spill] sm:$0xff] }
 0x7c9   :  { %2729 = vmatpush2.bf16.msra.mxu1 %v6252_v20  ;;  %v6265_v20 = vld [vmem:[#allocation70_spill] sm:$0xff] }
 0x7ca   :  { %2730 = vmatprep.subr.bf16.mxu1 %v6253_v45  ;;  %v6266_v45 = vld [vmem:[#allocation72_spill] sm:$0xff] }
 0x7cd   :  { %2731 = vmatpush2.bf16.msra.mxu1 %v6254_v54  ;;  %v6267_v54 = vld [vmem:[#allocation74_spill] sm:$0xff] }
 0x7ce   :  { %2732 = vmatprep.subr.bf16.mxu1 %v6255_v13 }
 0x7d1   :  { %2733 = vmatpush2.bf16.msra.mxu1 %v6256_v46 }
 0x7d2   :  { %2734 = vmatprep.subr.bf16.mxu1 %v6257_v38 }
 0x7d5   :  { %2735 = vmatpush2.bf16.msra.mxu1 %v6258_v60 }
 0x7d6   :  { %2736 = vmatprep.subr.bf16.mxu1 %v6259_v28 }
 0x7d9   :  { %2737 = vmatpush2.bf16.msra.mxu1 %v6260_v58 }
 0x7da   :  { %2738 = vmatprep.subr.bf16.mxu1 %v6261_v26 }
 0x7dd   :  { %2739 = vmatpush2.bf16.msra.mxu1 %v6262_v30 }
 0x7de   :  { %2740 = vmatprep.subr.bf16.mxu1 %v6263_v62 }
 0x7e1   :  { %2741 = vmatpush2.bf16.msra.mxu1 %v6264_v21 }
 0x7e2   :  { %2742 = vmatprep.subr.bf16.mxu1 %v6265_v20 }
 0x7e5   :  { %2743 = vmatpush2.bf16.msra.mxu1 %v6266_v45 }
 0x7e6   :  { %2870 = vmatprep.subr.bf16.mxu1 %v6267_v54 }
 0x828   :  { %v2502_v13 = vpop.f32.mrf.mxu1  ;;  %v2543_v46 = vpop.f32.mrf.mxu0 }
 0x829   :  { %v2593_v31 = vrot.slane %v2502_v13, 3  ;;  %v2613_v45 = vrot.slane %v2543_v46, 3 }
 0x82a   :  { %v2504_v38 = vpop.f32.mrf.mxu1  ;;  %v2545_v60 = vpop.f32.mrf.mxu0 }
 0x82b   :  { %v2594_v30 = vrot.slane %v2504_v38, 3  ;;  %v2597_v62 = vadd.f32 %v2593_v31, %v6088_v41  ;;  %v2614_v54 = vrot.slane %v2545_v60, 3  ;;  %v2617_v5 = vadd.f32 %v2613_v45, %v4546_v3 }
 0x82c   :  { %v2506_v28 = vpop.f32.mrf.mxu1  ;;  %v2547_v58 = vpop.f32.mrf.mxu0 }
 0x82d   :  { %v2598_v21 = vadd.f32 %v2594_v30, %v4541_v25  ;;  %v3320_v49 = vmul.f32 -1.442695, %v2597_v62  ;;  %v2618_v36 = vadd.f32 %v2614_v54, %v6089_v53  ;;  %v3322_v28 = vmul.f32 -1.442695, %v2617_v5 }
 0x82e   :  { %v2507_v48 = vpop.f32.mrf.mxu1  ;;  %v2548_v26 = vpop.f32.mrf.mxu0 }
 0x82f   :  { %v3321_v20 = vmul.f32 -1.442695, %v2598_v21  ;;  %3737 = vpow2.f32 %v3320_v49  ;;  %v3323_v58 = vmul.f32 -1.442695, %v2618_v36 }
 0x831   :  { %3739 = vpow2.f32 %v3321_v20 }
 0x832   :  { %3741 = vpow2.f32 %v3322_v28 }
 0x833   :  { %3743 = vpow2.f32 %v3323_v58 }
 0x83c   :  { %v3738_v48 = vpop.eup %3737 }
 0x83d   :  { %v2605_v38 = vadd.f32 1.0, %v3738_v48 }
 0x83e   :  { %v3740_v13 = vpop.eup %3739 }
 0x83f   :  { %v2606_v31 = vadd.f32 1.0, %v3740_v13  ;;  %3745 = vrcp.f32 %v2605_v38  ;;  %v3742_v26 = vpop.eup %3741 }
 0x840   :  { %v3744_v30 = vpop.eup %3743  ;;  %v2625_v46 = vadd.f32 1.0, %v3742_v26 }
 0x841   :  { %3747 = vrcp.f32 %v2606_v31  ;;  %v2626_v21 = vadd.f32 1.0, %v3744_v30 }
 0x842   :  { %3749 = vrcp.f32 %v2625_v46  ;;  %v2652_v46 = vrot.slane %v5263_v8, 7 }
 0x843   :  { %3751 = vrcp.f32 %v2626_v21 }
 0x84c   :  { %v3746_v36 = vpop.eup %3745 }
 0x84e   :  { %v3748_v58 = vpop.eup %3747 }
 0x84f   :  { %v3750_v26 = vpop.eup %3749 }
 0x850   :  { %v3752_v30 = vpop.eup %3751 }
 0x868   :  { %v2584_v49 = vpop.f32.mrf.mxu1 }
 0x869   :  { %v2631_v60 = vadd.f32 %v2584_v49, %v4556_v16  ;;  %v2645_v49 = vsub.f32 1.0, %v3750_v26 }
 0x86a   :  { %v2586_v62 = vpop.f32.mrf.mxu1 }
 0x86b   :  { %v2635_v20 = vrot.slane %v2631_v60, 3  ;;  %v2632_v5 = vadd.f32 %v2586_v62, %v4560_v57  ;;  %v2651_v60 = vrot.slane %v5261_v18, 7 }
 0x86c   :  { %v2588_v45 = vpop.f32.mrf.mxu1 }
 0x86d   :  { %v2639_v54 = vmul.f32 %v3746_v36, %v2635_v20  ;;  %v2636_v28 = vrot.slane %v2632_v5, 3  ;;  %v2646_v45 = vsub.f32 1.0, %v3752_v30  ;;  %v2655_v5 = vmul.f32 %v3750_v26, %v2651_v60  ;;  %v5497_v60 = vld [vmem:[#allocation8 + $0x104] ss:$24 sps:$4 sm:$0xff]  }
 0x86e   :  { %v2589_v48 = vpop.f32.mrf.mxu1 }
 0x86f   :  { %v2641_v13 = vadd.f32 %v2639_v54, %v4565_v59  ;;  %v2640_v38 = vmul.f32 %v3748_v58, %v2636_v28  ;;  %v2656_v54 = vmul.f32 %v3752_v30, %v2652_v46  ;;  %v3964_v46 = vld [vmem:[#allocation8 + $0xc8] ss:$24 sps:$4 sm:$0xff]  }
 0x871   :  { %3753 = vtanh.f32 %v2641_v13  ;;  %v2642_v31 = vadd.f32 %v2640_v38, %v4568_v27 }
 0x873   :  { %3755 = vtanh.f32 %v2642_v31 }
 0x87e   :  { %v3754_v62 = vpop.eup %3753 }
 0x87f   :  { %v2647_v20 = vmul.f32 %v3754_v62, %v2645_v49  ;;  %v5489_v49 = vld [vmem:[#allocation8 + $0x134] ss:$24 sps:$4 sm:$0xff]   ;;  %v5502_v62 = vld [vmem:[#allocation8 + $0x100] ss:$24 sps:$4 sm:$0xff]  }
 0x880   :  { %v3756_v36 = vpop.eup %3755 }
 0x881   :  { %v2648_v21 = vmul.f32 %v3756_v36, %v2646_v45  ;;  %v5466_v28 = vadd.f32 %v2655_v5, %v2647_v20  ;;  %v5505_v45 = vld [vmem:[#allocation8 + $0xd4] ss:$24 sps:$4 sm:$0xff]   ;;  %v3968_v20 = vld [vmem:[#allocation8 + $0x68] ss:$24 sps:$4 sm:$0xff]   ;;  %v3970_v5 = vld [vmem:[#allocation8 + $0x38] ss:$24 sps:$4 sm:$0xff]  }
 0x882   :  { %v3971_v36 = vld [vmem:[#allocation8 + $0xc] ss:$24 sps:$4 sm:$0xff]  }
 0x883   :  { %v5468_v58 = vadd.f32 %v2656_v54, %v2648_v21  ;;  %v2659_v48 = vpack.c.bf16 %v5466_v28, %v5466_v28  ;;  %v5474_v18 = vsel %vm3073_vm6, %v5267_v44, %v5466_v28  ;;  %v5486_v44 = vld [vmem:[#allocation8 + $0x160] ss:$24 sps:$4 sm:$0xff]   ;;  %v3973_v54 = vld [vmem:[#allocation8 + $0x2dc] ss:$24 sps:$4 sm:$0xff]  }
 0x884   :  { %v3972_v21 = vld [vmem:[#allocation8 + $0x8] ss:$24 sps:$4 sm:$0xff]  }
 0x885   :  { %v2660_v8 = vpack.c.bf16 %v5468_v58, %v5468_v58  ;;  %v5480_v13 = vsel %vm3073_vm6, %v5275_v1, %v5468_v58  ;;  %v2662_v38 = vshrl.u32 %v2659_v48, 16  ;;  %v5494_v1 = vld [vmem:[#allocation8 + $0x130] ss:$24 sps:$4 sm:$0xff]  }
 0x886   :  { %v3974_v48 = vld [vmem:[#allocation8 + $0x2d8] ss:$24 sps:$4 sm:$0xff]  }
 0x887   :  { %v2666_v31 = vshrl.u32 %v2660_v8, 16  ;;  %v5482_v30 = vrot.slane %v2662_v38, 2  ;;  %v3975_v8 = vld [vmem:[#allocation8 + $0x2ac] ss:$24 sps:$4 sm:$0xff]   ;;  %v3976_v38 = vld [vmem:[#allocation8 + $0x2a8] ss:$24 sps:$4 sm:$0xff]  }
 0x889   :  { %v2668_v26 = vrot.slane %v2666_v31, 2  ;;  %v3977_v31 = vld [vmem:[#allocation8 + $0x27c] ss:$24 sps:$4 sm:$0xff]  }
 0x88b   :  { %2703 = vmatprep.mubr.bf16.mxu0 %v2668_v26  ;;  %2744 = vmatprep.mubr.bf16.mxu1 %v2668_v26 }
 0x88c   :  { %2704 = vmatmul.mubr.bf16.vlgmr.msra.gmra.mxu0 %v5482_v30  ;;  %2745 = vmatmul.mubr.bf16.vlgmr.msra.gmra.mxu1 %v5482_v30 }
 0x88d   :  { %2754 = vmatpush1.bf16.msra.mxu0 %v5486_v44  ;;  %2785 = vmatprep.mubr.bf16.mxu0 %v2668_v26  ;;  %v3978_v26 = vld [vmem:[#allocation8 + $0x278] ss:$24 sps:$4 sm:$0xff]  }
 0x88e   :  { %2755 = vmatprep.subr.bf16.mxu0 %v5489_v49  ;;  %2871 = vmatpush1.bf16.msra.mxu1 %v5283_v9  ;;  %v5510_v9 = vld [vmem:[#allocation8 + $0xd0] ss:$24 sps:$4 sm:$0xff]  }
 0x88f   :  { %2872 = vmatprep.subr.bf16.mxu1 %v5286_v56  ;;  %v5513_v56 = vld [vmem:[#allocation8 + $0xa4] ss:$24 sps:$4 sm:$0xff]  }
 0x891   :  { %2756 = vmatpush1.bf16.msra.mxu0 %v5494_v1 }
 0x892   :  { %2757 = vmatprep.subr.bf16.mxu0 %v5497_v60  ;;  %2873 = vmatpush1.bf16.msra.mxu1 %v5291_v50  ;;  %v5518_v50 = vld [vmem:[#allocation8 + $0xa0] ss:$24 sps:$4 sm:$0xff]  }
 0x893   :  { %2874 = vmatprep.subr.bf16.mxu1 %v5294_v55  ;;  %v5521_v55 = vld [vmem:[#allocation8 + $0x74] ss:$24 sps:$4 sm:$0xff]  }
 0x895   :  { %2758 = vmatpush1.bf16.msra.mxu0 %v5502_v62 }
 0x896   :  { %2759 = vmatprep.subr.bf16.mxu0 %v5505_v45  ;;  %2875 = vmatpush1.bf16.msra.mxu1 %v5299_v7  ;;  %v5526_v7 = vld [vmem:[#allocation8 + $0x70] ss:$24 sps:$4 sm:$0xff]  }
 0x897   :  { %2876 = vmatprep.subr.bf16.mxu1 %v5302_v19  ;;  %v5529_v19 = vld [vmem:[#allocation8 + $0x44] ss:$24 sps:$4 sm:$0xff]  }
 0x899   :  { %2760 = vmatpush1.bf16.msra.mxu0 %v5510_v9 }
 0x89a   :  { %2761 = vmatprep.subr.bf16.mxu0 %v5513_v56  ;;  %2877 = vmatpush1.bf16.msra.mxu1 %v5307_v10  ;;  %v5534_v10 = vld [vmem:[#allocation8 + $0x40] ss:$24 sps:$4 sm:$0xff]  }
 0x89b   :  { %2878 = vmatprep.subr.bf16.mxu1 %v5310_v29  ;;  %v5537_v29 = vld [vmem:[#allocation8 + $0x14] ss:$24 sps:$4 sm:$0xff]  }
 0x89d   :  { %2762 = vmatpush1.bf16.msra.mxu0 %v5518_v50 }
 0x89e   :  { %2763 = vmatprep.subr.bf16.mxu0 %v5521_v55  ;;  %2879 = vmatpush1.bf16.msra.mxu1 %v5315_v24  ;;  %v5542_v24 = vld [vmem:[#allocation8 + $0x10] ss:$24 sps:$4 sm:$0xff]  }
 0x89f   :  { %2880 = vmatprep.subr.bf16.mxu1 %v5318_v33  ;;  %v5545_v33 = vld [vmem:[#allocation8 + $0x2e4] ss:$24 sps:$4 sm:$0xff]  }
 0x8a1   :  { %2764 = vmatpush1.bf16.msra.mxu0 %v5526_v7 }
 0x8a2   :  { %2765 = vmatprep.subr.bf16.mxu0 %v5529_v19  ;;  %2881 = vmatpush1.bf16.msra.mxu1 %v5323_v51  ;;  %v5550_v51 = vld [vmem:[#allocation8 + $0x2e0] ss:$24 sps:$4 sm:$0xff]  }
 0x8a3   :  { %2882 = vmatprep.subr.bf16.mxu1 %v5326_v14  ;;  %v5553_v14 = vld [vmem:[#allocation8 + $0x2b4] ss:$24 sps:$4 sm:$0xff]  }
 0x8a5   :  { %2766 = vmatpush1.bf16.msra.mxu0 %v5534_v10 }
 0x8a6   :  { %2767 = vmatprep.subr.bf16.mxu0 %v5537_v29  ;;  %2883 = vmatpush1.bf16.msra.mxu1 %v5331_v6  ;;  %v5558_v6 = vld [vmem:[#allocation8 + $0x2b0] ss:$24 sps:$4 sm:$0xff]  }
 0x8a7   :  { %2884 = vmatprep.subr.bf16.mxu1 %v5334_v0  ;;  %v5561_v0 = vld [vmem:[#allocation8 + $0x284] ss:$24 sps:$4 sm:$0xff]  }
 0x8a9   :  { %2768 = vmatpush1.bf16.msra.mxu0 %v5542_v24 }
 0x8aa   :  { %2769 = vmatprep.subr.bf16.mxu0 %v5545_v33  ;;  %2885 = vmatpush1.bf16.msra.mxu1 %v5339_v39  ;;  %v5566_v39 = vld [vmem:[#allocation8 + $0x280] ss:$24 sps:$4 sm:$0xff]  }
 0x8ab   :  { %2886 = vmatprep.subr.bf16.mxu1 %v5342_v12  ;;  %v5569_v12 = vld [vmem:[#allocation8 + $0x254] ss:$24 sps:$4 sm:$0xff]  }
 0x8ad   :  { %2770 = vmatpush2.bf16.msra.mxu0 %v5550_v51 }
 0x8ae   :  { %2771 = vmatprep.subr.bf16.mxu0 %v5553_v14  ;;  %2887 = vmatpush2.bf16.msra.mxu1 %v5347_v43  ;;  %v5574_v43 = vld [vmem:[#allocation8 + $0x250] ss:$24 sps:$4 sm:$0xff]  }
 0x8af   :  { %2888 = vmatprep.subr.bf16.mxu1 %v5350_v2  ;;  %v5577_v2 = vld [vmem:[#allocation8 + $0x224] ss:$24 sps:$4 sm:$0xff]  }
 0x8b1   :  { %2772 = vmatpush2.bf16.msra.mxu0 %v5558_v6 }
 0x8b2   :  { %2773 = vmatprep.subr.bf16.mxu0 %v5561_v0  ;;  %2889 = vmatpush2.bf16.msra.mxu1 %v5355_v4  ;;  %v5582_v4 = vld [vmem:[#allocation8 + $0x220] ss:$24 sps:$4 sm:$0xff]  }
 0x8b3   :  { %2890 = vmatprep.subr.bf16.mxu1 %v5358_v61  ;;  %v5585_v61 = vld [vmem:[#allocation8 + $0x1f4] ss:$24 sps:$4 sm:$0xff]  }
 0x8b5   :  { %2774 = vmatpush2.bf16.msra.mxu0 %v5566_v39 }
 0x8b6   :  { %2775 = vmatprep.subr.bf16.mxu0 %v5569_v12  ;;  %2891 = vmatpush2.bf16.msra.mxu1 %v5363_v15  ;;  %v5590_v15 = vld [vmem:[#allocation8 + $0x1f0] ss:$24 sps:$4 sm:$0xff]  }
 0x8b7   :  { %2892 = vmatprep.subr.bf16.mxu1 %v5366_v23  ;;  %v5593_v23 = vld [vmem:[#allocation8 + $0x1c4] ss:$24 sps:$4 sm:$0xff]  }
 0x8b9   :  { %2776 = vmatpush2.bf16.msra.mxu0 %v5574_v43 }
 0x8ba   :  { %2777 = vmatprep.subr.bf16.mxu0 %v5577_v2  ;;  %2893 = vmatpush2.bf16.msra.mxu1 %v5371_v47  ;;  %v5598_v47 = vld [vmem:[#allocation8 + $0x1c0] ss:$24 sps:$4 sm:$0xff]  }
 0x8bb   :  { %2894 = vmatprep.subr.bf16.mxu1 %v5374_v63  ;;  %v5601_v63 = vld [vmem:[#allocation8 + $0x194] ss:$24 sps:$4 sm:$0xff]  }
 0x8bd   :  { %2778 = vmatpush2.bf16.msra.mxu0 %v5582_v4 }
 0x8be   :  { %2779 = vmatprep.subr.bf16.mxu0 %v5585_v61  ;;  %2895 = vmatpush2.bf16.msra.mxu1 %v5379_v37  ;;  %v5606_v37 = vld [vmem:[#allocation8 + $0x190] ss:$24 sps:$4 sm:$0xff]  }
 0x8bf   :  { %2896 = vmatprep.subr.bf16.mxu1 %v5382_v35  ;;  %v6268_v35 = vld [vmem:[#allocation76_spill] sm:$0xff] }
 0x8c1   :  { %2780 = vmatpush2.bf16.msra.mxu0 %v5590_v15 }
 0x8c2   :  { %2781 = vmatprep.subr.bf16.mxu0 %v5593_v23  ;;  %2897 = vmatpush2.bf16.msra.mxu1 %v5387_v11  ;;  %v6269_v11 = vld [vmem:[#allocation77_spill] sm:$0xff] }
 0x8c3   :  { %2898 = vmatprep.subr.bf16.mxu1 %v5390_v22  ;;  %v6270_v22 = vld [vmem:[#allocation78_spill] sm:$0xff] }
 0x8c5   :  { %2782 = vmatpush2.bf16.msra.mxu0 %v5598_v47 }
 0x8c6   :  { %2783 = vmatprep.subr.bf16.mxu0 %v5601_v63  ;;  %2899 = vmatpush2.bf16.msra.mxu1 %v5395_v32  ;;  %v6271_v32 = vld [vmem:[#allocation79_spill] sm:$0xff] }
 0x8c7   :  { %2900 = vmatprep.subr.bf16.mxu1 %v5398_v34  ;;  %v6272_v34 = vld [vmem:[#allocation80_spill] sm:$0xff] }
 0x8c9   :  { %2784 = vmatpush2.bf16.msra.mxu0 %v5606_v37 }
 0x8ca   :  { %2911 = vmatprep.subr.bf16.mxu0 %v5402_v40  ;;  %2901 = vmatpush2.bf16.msra.mxu1 %v5405_v42  ;;  %v3965_v40 = vld [vmem:[#allocation8 + $0x9c] ss:$24 sps:$4 sm:$0xff]   ;;  %v3966_v42 = vld [vmem:[#allocation8 + $0x98] ss:$24 sps:$4 sm:$0xff]  }
 0x8cb   :  { %2952 = vmatprep.subr.bf16.mxu1 %v5408_v17  ;;  %v3967_v17 = vld [vmem:[#allocation8 + $0x6c] ss:$24 sps:$4 sm:$0xff]  }
 0x8cc   :  { %2786 = vmatmul.mubr.bf16.vlgmr.msra.gmra.mxu0 %v5482_v30  ;;  %v3979_v30 = vld [vmem:[#allocation8 + $0x24c] ss:$24 sps:$4 sm:$0xff]  }
 0x8cd   :  { %2912 = vmatpush1.bf16.msra.mxu0 %v5412_v52  ;;  %v3969_v52 = vld [vmem:[#allocation8 + $0x3c] ss:$24 sps:$4 sm:$0xff]  }
 0x8ce   :  { %2913 = vmatprep.subr.bf16.mxu0 %v6268_v35  ;;  %v3980_v35 = vld [vmem:[#allocation8 + $0x248] ss:$24 sps:$4 sm:$0xff]  }
 0x8d1   :  { %2914 = vmatpush1.bf16.msra.mxu0 %v6269_v11  ;;  %v3981_v11 = vld [vmem:[#allocation8 + $0x21c] ss:$24 sps:$4 sm:$0xff]  }
 0x8d2   :  { %2915 = vmatprep.subr.bf16.mxu0 %v6270_v22  ;;  %v3982_v22 = vld [vmem:[#allocation8 + $0x218] ss:$24 sps:$4 sm:$0xff]  }
 0x8d5   :  { %2916 = vmatpush1.bf16.msra.mxu0 %v6271_v32  ;;  %v3983_v32 = vld [vmem:[#allocation8 + $0x1ec] ss:$24 sps:$4 sm:$0xff]  }
 0x8d6   :  { %2917 = vmatprep.subr.bf16.mxu0 %v6272_v34  ;;  %v3984_v34 = vld [vmem:[#allocation8 + $0x1e8] ss:$24 sps:$4 sm:$0xff]  }
 0x8d9   :  { %2918 = vmatpush1.bf16.msra.mxu0 %v3964_v46  ;;  %v3985_v46 = vld [vmem:[#allocation8 + $0x1bc] ss:$24 sps:$4 sm:$0xff]  }
 0x8da   :  { %2919 = vmatprep.subr.bf16.mxu0 %v3965_v40  ;;  %v3986_v40 = vld [vmem:[#allocation8 + $0x1b8] ss:$24 sps:$4 sm:$0xff]  }
 0x8dd   :  { %2920 = vmatpush1.bf16.msra.mxu0 %v3966_v42  ;;  %v3987_v42 = vld [vmem:[#allocation8 + $0x18c] ss:$24 sps:$4 sm:$0xff]  }
 0x8de   :  { %2921 = vmatprep.subr.bf16.mxu0 %v3967_v17  ;;  %v3988_v17 = vld [vmem:[#allocation8 + $0x188] ss:$24 sps:$4 sm:$0xff]  }
 0x8e1   :  { %2922 = vmatpush1.bf16.msra.mxu0 %v3968_v20 }
 0x8e2   :  { %2923 = vmatprep.subr.bf16.mxu0 %v3969_v52 }
 0x8e5   :  { %2924 = vmatpush1.bf16.msra.mxu0 %v3970_v5 }
 0x8e6   :  { %2925 = vmatprep.subr.bf16.mxu0 %v3971_v36 }
 0x8e9   :  { %2926 = vmatpush1.bf16.msra.mxu0 %v3972_v21 }
 0x8ea   :  { %2927 = vmatprep.subr.bf16.mxu0 %v3973_v54 }
 0x8ed   :  { %2928 = vmatpush2.bf16.msra.mxu0 %v3974_v48 }
 0x8ee   :  { %2929 = vmatprep.subr.bf16.mxu0 %v3975_v8 }
 0x8f1   :  { %2930 = vmatpush2.bf16.msra.mxu0 %v3976_v38 }
 0x8f2   :  { %2931 = vmatprep.subr.bf16.mxu0 %v3977_v31 }
 0x8f5   :  { %2932 = vmatpush2.bf16.msra.mxu0 %v3978_v26 }
 0x8f6   :  { %2933 = vmatprep.subr.bf16.mxu0 %v3979_v30 }
 0x8f9   :  { %2934 = vmatpush2.bf16.msra.mxu0 %v3980_v35 }
 0x8fa   :  { %2935 = vmatprep.subr.bf16.mxu0 %v3981_v11 }
 0x8fd   :  { %2936 = vmatpush2.bf16.msra.mxu0 %v3982_v22 }
 0x8fe   :  { %2937 = vmatprep.subr.bf16.mxu0 %v3983_v32 }
 0x901   :  { %2938 = vmatpush2.bf16.msra.mxu0 %v3984_v34 }
 0x902   :  { %2939 = vmatprep.subr.bf16.mxu0 %v3985_v46 }
 0x905   :  { %2940 = vmatpush2.bf16.msra.mxu0 %v3986_v40 }
 0x906   :  { %2941 = vmatprep.subr.bf16.mxu0 %v3987_v42 }
 0x909   :  { %2942 = vmatpush2.bf16.msra.mxu0 %v3988_v17 }
 0x94c   :  { %v2705_v20 = vpop.f32.mrf.mxu0  ;;  %v2746_v52 = vpop.f32.mrf.mxu1 }
 0x94d   :  { %v2796_v38 = vrot.slane %v2705_v20, 2  ;;  %v2816_v22 = vrot.slane %v2746_v52, 2 }
 0x94e   :  { %v2707_v5 = vpop.f32.mrf.mxu0  ;;  %v2748_v36 = vpop.f32.mrf.mxu1 }
 0x94f   :  { %v2797_v31 = vrot.slane %v2707_v5, 2  ;;  %v2800_v26 = vadd.f32 %v2796_v38, %v6088_v41  ;;  %v2817_v32 = vrot.slane %v2748_v36, 2  ;;  %v2820_v34 = vadd.f32 %v2816_v22, %v4546_v3 }
 0x950   :  { %v2709_v21 = vpop.f32.mrf.mxu0  ;;  %v2750_v54 = vpop.f32.mrf.mxu1 }
 0x951   :  { %v2801_v30 = vadd.f32 %v2797_v31, %v4541_v25  ;;  %v3324_v35 = vmul.f32 -1.442695, %v2800_v26  ;;  %v2821_v46 = vadd.f32 %v2817_v32, %v6089_v53  ;;  %v3326_v40 = vmul.f32 -1.442695, %v2820_v34 }
 0x952   :  { %v2710_v48 = vpop.f32.mrf.mxu0  ;;  %v2751_v8 = vpop.f32.mrf.mxu1 }
 0x953   :  { %v3325_v11 = vmul.f32 -1.442695, %v2801_v30  ;;  %3757 = vpow2.f32 %v3324_v35  ;;  %v3327_v42 = vmul.f32 -1.442695, %v2821_v46 }
 0x955   :  { %3759 = vpow2.f32 %v3325_v11 }
 0x956   :  { %3761 = vpow2.f32 %v3326_v40 }
 0x957   :  { %3763 = vpow2.f32 %v3327_v42 }
 0x960   :  { %v3758_v17 = vpop.eup %3757 }
 0x961   :  { %v2808_v5 = vadd.f32 1.0, %v3758_v17 }
 0x962   :  { %v3760_v20 = vpop.eup %3759 }
 0x963   :  { %v2809_v21 = vadd.f32 1.0, %v3760_v20  ;;  %3765 = vrcp.f32 %v2808_v5  ;;  %v3762_v54 = vpop.eup %3761 }
 0x964   :  { %v3764_v48 = vpop.eup %3763  ;;  %v2828_v52 = vadd.f32 1.0, %v3762_v54  ;;  %v2854_v54 = vrot.slane %v5466_v28, 7 }
 0x965   :  { %3767 = vrcp.f32 %v2809_v21  ;;  %v2829_v31 = vadd.f32 1.0, %v3764_v48 }
 0x966   :  { %3769 = vrcp.f32 %v2828_v52  ;;  %v2855_v52 = vrot.slane %v5468_v58, 7 }
 0x967   :  { %3771 = vrcp.f32 %v2829_v31 }
 0x970   :  { %v3766_v35 = vpop.eup %3765 }
 0x972   :  { %v3768_v34 = vpop.eup %3767 }
 0x973   :  { %v3770_v20 = vpop.eup %3769 }
 0x974   :  { %v3772_v5 = vpop.eup %3771  ;;  %v2848_v21 = vsub.f32 1.0, %v3770_v20 }
 0x98c   :  { %v2787_v8 = vpop.f32.mrf.mxu0 }
 0x98d   :  { %v2834_v36 = vadd.f32 %v2787_v8, %v4556_v16  ;;  %v2849_v8 = vsub.f32 1.0, %v3772_v5 }
 0x98e   :  { %v2789_v38 = vpop.f32.mrf.mxu0 }
 0x98f   :  { %v2838_v26 = vrot.slane %v2834_v36, 2  ;;  %v2835_v30 = vadd.f32 %v2789_v38, %v4560_v57  ;;  %v2858_v38 = vmul.f32 %v3770_v20, %v2854_v54 }
 0x990   :  { %v2791_v11 = vpop.f32.mrf.mxu0 }
 0x991   :  { %v2842_v22 = vmul.f32 %v3766_v35, %v2838_v26  ;;  %v2839_v32 = vrot.slane %v2835_v30, 2  ;;  %v2859_v30 = vmul.f32 %v3772_v5, %v2855_v52 }
 0x992   :  { %v2792_v46 = vpop.f32.mrf.mxu0 }
 0x993   :  { %v2844_v40 = vadd.f32 %v2842_v22, %v4565_v59  ;;  %v2843_v42 = vmul.f32 %v3768_v34, %v2839_v32 }
 0x995   :  { %3773 = vtanh.f32 %v2844_v40  ;;  %v2845_v17 = vadd.f32 %v2843_v42, %v4568_v27 }
 0x997   :  { %3775 = vtanh.f32 %v2845_v17 }
 0x9a2   :  { %v3774_v48 = vpop.eup %3773 }
 0x9a3   :  { %v2850_v36 = vmul.f32 %v3774_v48, %v2848_v21 }
 0x9a4   :  { %v3776_v26 = vpop.eup %3775 }
 0x9a5   :  { %v2851_v31 = vmul.f32 %v3776_v26, %v2849_v8  ;;  %v5629_v35 = vadd.f32 %v2858_v38, %v2850_v36 }
 0x9a7   :  { %v5631_v11 = vadd.f32 %v2859_v30, %v2851_v31  ;;  %v5635_v22 = vsel %vm3076_vm7, %v5474_v18, %v5629_v35  ;;  %v2862_v28 = vpack.c.bf16 %v5629_v35, %v5629_v35 }
 0x9a9   :  { %v2863_v58 = vpack.c.bf16 %v5631_v11, %v5631_v11  ;;  %v5643_v32 = vsel %vm3076_vm7, %v5480_v13, %v5631_v11  ;;  %v2866_v46 = vrot.slane %v2862_v28, 3  ;;  %v3054_v36 = vrot.slane %v5631_v11, 7 }
 0x9ab   :  { %v2867_v34 = vrot.slane %v2863_v58, 3 }
 0x9ad   :  { %2902 = vmatprep.mubr.bf16.mxu1 %v2867_v34  ;;  %2943 = vmatprep.mubr.bf16.mxu0 %v2867_v34 }
 0x9ae   :  { %2903 = vmatmul.mubr.bf16.vlgmr.msra.gmra.mxu1 %v2866_v46  ;;  %2944 = vmatmul.mubr.bf16.vlgmr.msra.gmra.mxu0 %v2866_v46 }
 0x9af   :  { %2953 = vmatpush1.bf16.msra.mxu1 %v5486_v44  ;;  %2984 = vmatprep.mubr.bf16.mxu1 %v2867_v34 }
 0x9b0   :  { %2954 = vmatprep.subr.bf16.mxu1 %v5489_v49 }
 0x9b3   :  { %2955 = vmatpush1.bf16.msra.mxu1 %v5494_v1 }
 0x9b4   :  { %2956 = vmatprep.subr.bf16.mxu1 %v5497_v60 }
 0x9b7   :  { %2957 = vmatpush1.bf16.msra.mxu1 %v5502_v62 }
 0x9b8   :  { %2958 = vmatprep.subr.bf16.mxu1 %v5505_v45 }
 0x9bb   :  { %2959 = vmatpush1.bf16.msra.mxu1 %v5510_v9 }
 0x9bc   :  { %2960 = vmatprep.subr.bf16.mxu1 %v5513_v56 }
 0x9bf   :  { %2961 = vmatpush1.bf16.msra.mxu1 %v5518_v50 }
 0x9c0   :  { %2962 = vmatprep.subr.bf16.mxu1 %v5521_v55 }
 0x9c3   :  { %2963 = vmatpush1.bf16.msra.mxu1 %v5526_v7 }
 0x9c4   :  { %2964 = vmatprep.subr.bf16.mxu1 %v5529_v19 }
 0x9c7   :  { %2965 = vmatpush1.bf16.msra.mxu1 %v5534_v10 }
 0x9c8   :  { %2966 = vmatprep.subr.bf16.mxu1 %v5537_v29 }
 0x9cb   :  { %2967 = vmatpush1.bf16.msra.mxu1 %v5542_v24 }
 0x9cc   :  { %2968 = vmatprep.subr.bf16.mxu1 %v5545_v33 }
 0x9cf   :  { %2969 = vmatpush2.bf16.msra.mxu1 %v5550_v51 }
 0x9d0   :  { %2970 = vmatprep.subr.bf16.mxu1 %v5553_v14 }
 0x9d3   :  { %2971 = vmatpush2.bf16.msra.mxu1 %v5558_v6 }
 0x9d4   :  { %2972 = vmatprep.subr.bf16.mxu1 %v5561_v0 }
 0x9d7   :  { %2973 = vmatpush2.bf16.msra.mxu1 %v5566_v39 }
 0x9d8   :  { %2974 = vmatprep.subr.bf16.mxu1 %v5569_v12 }
 0x9db   :  { %2975 = vmatpush2.bf16.msra.mxu1 %v5574_v43 }
 0x9dc   :  { %2976 = vmatprep.subr.bf16.mxu1 %v5577_v2 }
 0x9df   :  { %2977 = vmatpush2.bf16.msra.mxu1 %v5582_v4 }
 0x9e0   :  { %2978 = vmatprep.subr.bf16.mxu1 %v5585_v61 }
 0x9e3   :  { %2979 = vmatpush2.bf16.msra.mxu1 %v5590_v15 }
 0x9e4   :  { %2980 = vmatprep.subr.bf16.mxu1 %v5593_v23 }
 0x9e7   :  { %2981 = vmatpush2.bf16.msra.mxu1 %v5598_v47 }
 0x9e8   :  { %2982 = vmatprep.subr.bf16.mxu1 %v5601_v63 }
 0x9eb   :  { %2983 = vmatpush2.bf16.msra.mxu1 %v5606_v37 }
 0x9ee   :  { %2985 = vmatmul.mubr.bf16.vlgmr.msra.gmra.mxu1 %v2866_v46 }
 0xa6e   :  { %v2904_v18 = vpop.f32.mrf.mxu1  ;;  %v2945_v13 = vpop.f32.mrf.mxu0 }
 0xa6f   :  { %v2995_v9 = vrot.slane %v2904_v18, 1  ;;  %v3015_v10 = vrot.slane %v2945_v13, 1 }
 0xa70   :  { %v2906_v44 = vpop.f32.mrf.mxu1  ;;  %v2947_v49 = vpop.f32.mrf.mxu0 }
 0xa71   :  { %v2996_v56 = vrot.slane %v2906_v44, 1  ;;  %v2999_v50 = vadd.f32 %v2995_v9, %v6088_v41  ;;  %v3016_v29 = vrot.slane %v2947_v49, 1  ;;  %v3019_v24 = vadd.f32 %v3015_v10, %v4546_v3 }
 0xa72   :  { %v2908_v1 = vpop.f32.mrf.mxu1  ;;  %v2949_v60 = vpop.f32.mrf.mxu0 }
 0xa73   :  { %v3000_v55 = vadd.f32 %v2996_v56, %v4541_v25  ;;  %v3328_v7 = vmul.f32 -1.442695, %v2999_v50  ;;  %v3020_v33 = vadd.f32 %v3016_v29, %v6089_v53  ;;  %v3330_v51 = vmul.f32 -1.442695, %v3019_v24 }
 0xa74   :  { %v2909_v62 = vpop.f32.mrf.mxu1  ;;  %v2950_v45 = vpop.f32.mrf.mxu0 }
 0xa75   :  { %v3329_v19 = vmul.f32 -1.442695, %v3000_v55  ;;  %3777 = vpow2.f32 %v3328_v7  ;;  %v3331_v14 = vmul.f32 -1.442695, %v3020_v33 }
 0xa77   :  { %3779 = vpow2.f32 %v3329_v19 }
 0xa78   :  { %3781 = vpow2.f32 %v3330_v51 }
 0xa79   :  { %3783 = vpow2.f32 %v3331_v14 }
 0xa82   :  { %v3778_v6 = vpop.eup %3777 }
 0xa83   :  { %v3007_v39 = vadd.f32 1.0, %v3778_v6 }
 0xa84   :  { %v3780_v0 = vpop.eup %3779 }
 0xa85   :  { %v3008_v41 = vadd.f32 1.0, %v3780_v0  ;;  %3785 = vrcp.f32 %v3007_v39  ;;  %v3782_v25 = vpop.eup %3781 }
 0xa86   :  { %v3784_v12 = vpop.eup %3783  ;;  %v3027_v2 = vadd.f32 1.0, %v3782_v25 }
 0xa87   :  { %3787 = vrcp.f32 %v3008_v41  ;;  %v3028_v3 = vadd.f32 1.0, %v3784_v12 }
 0xa88   :  { %3789 = vrcp.f32 %v3027_v2 }
 0xa89   :  { %3791 = vrcp.f32 %v3028_v3 }
 0xa92   :  { %v3786_v23 = vpop.eup %3785 }
 0xa94   :  { %v3788_v40 = vpop.eup %3787 }
 0xaae   :  { %v2986_v43 = vpop.f32.mrf.mxu1 }
 0xaaf   :  { %v3033_v4 = vadd.f32 %v2986_v43, %v4556_v16  ;;  %v3790_v16 = vpop.eup %3789 }
 0xab0   :  { %v2988_v61 = vpop.f32.mrf.mxu1  ;;  %v3792_v21 = vpop.eup %3791  ;;  %v3047_v54 = vsub.f32 1.0, %v3790_v16 }
 0xab1   :  { %v3037_v15 = vrot.slane %v3033_v4, 1  ;;  %v3034_v53 = vadd.f32 %v2988_v61, %v4560_v57  ;;  %v3053_v57 = vrot.slane %v5629_v35, 7  ;;  %v3048_v8 = vsub.f32 1.0, %v3792_v21 }
 0xab2   :  { %v2990_v47 = vpop.f32.mrf.mxu1 }
 0xab3   :  { %v3041_v63 = vmul.f32 %v3786_v23, %v3037_v15  ;;  %v3038_v37 = vrot.slane %v3034_v53, 1  ;;  %v3057_v38 = vmul.f32 %v3790_v16, %v3053_v57 }
 0xab4   :  { %v2991_v42 = vpop.f32.mrf.mxu1 }
 0xab5   :  { %v3043_v17 = vadd.f32 %v3041_v63, %v4565_v59  ;;  %v3042_v20 = vmul.f32 %v3788_v40, %v3038_v37  ;;  %v3058_v59 = vmul.f32 %v3792_v21, %v3054_v36 }
 0xab7   :  { %3793 = vtanh.f32 %v3043_v17  ;;  %v3044_v5 = vadd.f32 %v3042_v20, %v4568_v27 }
 0xab9   :  { %3795 = vtanh.f32 %v3044_v5 }
 0xac4   :  { %v3794_v48 = vpop.eup %3793 }
 0xac5   :  { %v3049_v52 = vmul.f32 %v3794_v48, %v3047_v54 }
 0xac6   :  { %v3796_v26 = vpop.eup %3795 }
 0xac7   :  { %v3050_v31 = vmul.f32 %v3796_v26, %v3048_v8  ;;  %v3059_v30 = vadd.f32 %v3057_v38, %v3049_v52 }
 0xac9   :  { %v3060_v27 = vadd.f32 %v3058_v59, %v3050_v31  ;;  %v3080_v28 = vsel %vm3079_vm8, %v5635_v22, %v3059_v30 }
 0xaca   :  { %3085 = vst [vmem:[#allocation9] sm:$0xff] %v3080_v28 }
 0xacb   :  { %v3081_v35 = vsel %vm3079_vm8, %v5643_v32, %v3060_v27 }
 0xacc   :  { %3086 = vst [vmem:[#allocation9 + $0x8] sm:$0xff] %v3081_v35 }
 0xacd   :  { %4060 = shalt.err (!%p4057_p5)
}
 0xace   :  { %3096 = dma.vmem_to_hbm [thread:$0]  %s3094_s22, 256, %s5698_s7, [#allocation5]  }
 0xacf   :  { %4073 = dma.done.wait [#allocation5], 256  }
 0xad0   :  { %4074 = vsyncadd [#allocation5], 4294967040 }
 0xad1   :  { %3100 = vsyncpa [#allocation4], 1 }
 0xad2   :  { %3101 = vsyncpa [#allocation7], 1 }
 0xad3   :  { %3102 = vsyncpa [#allocation5], 1 }

</bundles_post_ra>
